<compile_context>
chip_gen: v6e
topology: v6e:2x2x1
jax: 0.10.0
libtpu: 0.0.40
codegen_flags: <defaults>
</compile_context>

<pallas_src>
import functools

import jax
import jax.numpy as jnp
from jax.experimental import pallas as pl
from jax.experimental.pallas import tpu as pltpu


# ------------------------- per-chip sizing helpers -------------------------

@functools.lru_cache(maxsize=None)
def _vmem_limit_bytes():
    cap = 0
    try:
        cap = int(pltpu.get_tpu_info().vmem_capacity_bytes)
    except Exception:
        cap = 0
    if cap <= 0:
        cap = 64 * 1024 * 1024                 # conservative (v7x-sized) fallback
    # leave headroom for double buffers / compiler temporaries
    return int(max(32 * 1024 * 1024, min(cap - 16 * 1024 * 1024, 96 * 1024 * 1024)))


def _tile_cap():
    return 1024 if _vmem_limit_bytes() >= 64 * 1024 * 1024 else 512


def _cparams(semantics):
    return pltpu.CompilerParams(dimension_semantics=semantics,
                                vmem_limit_bytes=_vmem_limit_bytes())


def _row_tile(rows, cap):
    tm = min(rows, cap)
    while rows % tm != 0:
        tm -= 8
    return max(tm, 8)


# ------------------------------ Pallas kernels ------------------------------

def _linear_kernel(z_ref, w_ref, b_ref, o_ref):
    # o = z @ W^T + b  (W^T pre-transposed / column-permuted at init).
    o_ref[...] = (jnp.dot(z_ref[...], w_ref[...],
                          preferred_element_type=jnp.float32) + b_ref[...])


def _convt_stats_kernel(p_ref, w_ref, b_ref, y_ref, st_ref):
    """One row tile of the phase-folded ConvTranspose.

    p_ref : (TM, 9*Cin)     bf16  3x3 im2col patches (cover all 4 phases)
    w_ref : (9*Cin, 4*Cout) bf16  folded weights (zeros for unused taps)
    b_ref : (1, 4*Cout)     f32   bias replicated over the 4 phases
    y_ref : (TM, 4*Cout)    bf16  phase-packed pre-activations
    st_ref: (1, 2, 4*Cout)  f32   this tile's [sum ; sum-of-squares]
    """
    acc = jnp.dot(p_ref[...], w_ref[...], preferred_element_type=jnp.float32)
    acc = acc + b_ref[...]
    y_ref[...] = acc.astype(y_ref.dtype)                    # one lane-dense store
    s = jnp.sum(acc, axis=0, keepdims=True)                 # (1, 4*Cout)
    ss = jnp.sum(acc * acc, axis=0, keepdims=True)
    st_ref[...] = jnp.concatenate([s, ss], axis=0)[None]    # one full-block store


def _bn_lrelu_kernel(y_ref, st_ref, g_ref, bt_ref, o_ref, *, n_total, cout):
    """BatchNorm (training-mode batch stats, eps=1e-5) + LeakyReLU(0.01)."""
    # Reduce the tiny per-tile stats (n_tiles, 2, 4*Cout) -> (2, 4*Cout).
    st = st_ref[0]
    for t in range(1, st_ref.shape[0]):
        st = st + st_ref[t]
    s4, ss4 = st[0:1, :], st[1:2, :]
    # Fold the 4 phases into per-channel sums.
    s = (s4[:, 0:cout] + s4[:, cout:2 * cout]
         + s4[:, 2 * cout:3 * cout] + s4[:, 3 * cout:4 * cout])
    ss = (ss4[:, 0:cout] + ss4[:, cout:2 * cout]
          + ss4[:, 2 * cout:3 * cout] + ss4[:, 3 * cout:4 * cout])
    inv_n = 1.0 / n_total
    mean = s * inv_n
    var = jnp.maximum(ss * inv_n - mean * mean, 0.0)
    scale = g_ref[...] * jax.lax.rsqrt(var + 1e-5)           # (1, Cout)
    shift = bt_ref[...] - mean * scale
    scale4 = jnp.tile(scale, (1, 4))                          # phase-packed cols
    shift4 = jnp.tile(shift, (1, 4))
    z = y_ref[...].astype(jnp.float32) * scale4 + shift4
    o_ref[...] = jnp.where(z > 0, z, 0.01 * z).astype(o_ref.dtype)


def _final_conv_sigmoid_kernel(p_ref, w_ref, b_ref, o_ref):
    """3x3 conv with Cout=1 + Sigmoid as VPU multiply + lane reduction.
    p_ref: (TM, 9*Cf) bf16; w_ref: (1, 9*Cf) f32; o_ref: (TM, 1) f32."""
    x = p_ref[...].astype(jnp.float32)
    acc = jnp.sum(x * w_ref[...], axis=-1, keepdims=True) + b_ref[...]
    o_ref[...] = 1.0 / (1.0 + jnp.exp(-acc))                  # exact sigmoid


# ----------------------------- wrappers (glue) -----------------------------

def _im2col_3x3(x_nhwc):
    """NHWC -> (B*H*W, 9*C) bf16 patches of the 1-padded input (3x3 taps)."""
    x = x_nhwc.astype(jnp.bfloat16)
    B, H, W, C = x.shape
    xp = jnp.pad(x, ((0, 0), (1, 1), (1, 1), (0, 0)))
    taps = [xp[:, dy:dy + H, dx:dx + W, :] for dy in range(3) for dx in range(3)]
    return jnp.concatenate(taps, axis=-1).reshape(B * H * W, 9 * C)


def pallas_linear(z, w_t, b):
    B, L = z.shape
    D = w_t.shape[1]
    return pl.pallas_call(
        _linear_kernel,
        out_shape=jax.ShapeDtypeStruct((B, D), jnp.float32),
        grid=(1,),
        in_specs=[pl.BlockSpec((B, L), lambda i: (0, 0)),
                  pl.BlockSpec((L, D), lambda i: (0, 0)),
                  pl.BlockSpec((1, D), lambda i: (0, 0))],
        out_specs=pl.BlockSpec((B, D), lambda i: (0, 0)),
        compiler_params=_cparams(("arbitrary",)),
    )(z, w_t, b)


def pallas_convt_bn_lrelu(x_nhwc, layer):
    # ConvTranspose2d(Cin, Cout, 4, stride=2, padding=1) + BatchNorm2d + LeakyReLU
    B, H, W, cin = x_nhwc.shape
    cout = layer["gamma"].shape[1]
    rows = B * H * W
    n_total = 4.0 * rows                       # = B * (2H) * (2W) elems / channel
    tm = _row_tile(rows, _tile_cap())
    n_tiles = rows // tm

    patches = _im2col_3x3(x_nhwc)              # (rows, 9*cin) bf16

    # pass 1: folded conv + bias + per-tile BN partial stats (fully parallel)
    y, stats = pl.pallas_call(
        _convt_stats_kernel,
        out_shape=(jax.ShapeDtypeStruct((rows, 4 * cout), jnp.bfloat16),
                   jax.ShapeDtypeStruct((n_tiles, 2, 4 * cout), jnp.float32)),
        grid=(n_tiles,),
        in_specs=[pl.BlockSpec((tm, 9 * cin), lambda t: (t, 0)),
                  pl.BlockSpec((9 * cin, 4 * cout), lambda t: (0, 0)),
                  pl.BlockSpec((1, 4 * cout), lambda t: (0, 0))],
        out_specs=(pl.BlockSpec((tm, 4 * cout), lambda t: (t, 0)),
                   pl.BlockSpec((1, 2, 4 * cout), lambda t: (t, 0, 0))),
        compiler_params=_cparams(("parallel",)),
    )(patches, layer["w_fold"], layer["b4"])

    # pass 2: BN normalize (tiny stats reduced in-kernel) + LeakyReLU
    act = pl.pallas_call(
        functools.partial(_bn_lrelu_kernel, n_total=float(n_total), cout=cout),
        out_shape=jax.ShapeDtypeStruct((rows, 4 * cout), jnp.bfloat16),
        grid=(n_tiles,),
        in_specs=[pl.BlockSpec((tm, 4 * cout), lambda t: (t, 0)),
                  pl.BlockSpec((n_tiles, 2, 4 * cout), lambda t: (0, 0, 0)),
                  pl.BlockSpec((1, cout), lambda t: (0, 0)),
                  pl.BlockSpec((1, cout), lambda t: (0, 0))],
        out_specs=pl.BlockSpec((tm, 4 * cout), lambda t: (t, 0)),
        compiler_params=_cparams(("parallel",)),
    )(y, stats, layer["gamma"], layer["beta"])

    # interleave the 4 phases back to spatial NHWC: (rows, 4*Cout) -> (B,2H,2W,Cout)
    # TODO(synk): consume the phase-packed layout directly in the next layer's
    # tap gather to remove this per-layer relayout.
    a = act.reshape(B, H, W, 2, 2, cout)
    return a.transpose(0, 1, 3, 2, 4, 5).reshape(B, 2 * H, 2 * W, cout)


def pallas_final_conv_sigmoid(x_nhwc, w_vec, b):
    # Conv2d(Cf, 1, kernel_size=3, padding=1) + Sigmoid
    B, H, W, cf = x_nhwc.shape
    rows = B * H * W
    p = _im2col_3x3(x_nhwc)                    # (rows, 9*cf) bf16, channels on lanes
    tm = _row_tile(rows, _tile_cap())
    out = pl.pallas_call(
        _final_conv_sigmoid_kernel,
        out_shape=jax.ShapeDtypeStruct((rows, 1), jnp.float32),
        grid=(rows // tm,),
        in_specs=[pl.BlockSpec((tm, 9 * cf), lambda t: (t, 0)),
                  pl.BlockSpec((1, 9 * cf), lambda t: (0, 0)),
                  pl.BlockSpec((1, 1), lambda t: (0, 0))],
        out_specs=pl.BlockSpec((tm, 1), lambda t: (t, 0)),
        compiler_params=_cparams(("parallel",)),
    )(p, w_vec, b)
    return out.reshape(B, H, W)


# --------------------- parameters (prepared once at init) ---------------------

def _prep_convt_weight_folded(w_pt):
    """torch ConvTranspose2d weight (Cin, Cout, 4, 4) -> (9*Cin, 4*Cout) bf16.

    Output pixel (2i+r, 2j+c) only needs padded-input taps (dy, dx) with
    dy in {r, r+1}, dx in {c, c+1}, and kernel indices kh = 3+r-2*dy,
    kw = 3+c-2*dx.  Taps a phase does not use carry zero weights.
    """
    cin, cout = w_pt.shape[0], w_pt.shape[1]
    w = jnp.zeros((3, 3, cin, 4, cout), jnp.float32)
    for r in range(2):
        for c in range(2):
            ph = r * 2 + c
            for dy in (r, r + 1):
                for dx in (c, c + 1):
                    kh = 3 + r - 2 * dy
                    kw = 3 + c - 2 * dx
                    w = w.at[dy, dx, :, ph, :].set(w_pt[:, :, kh, kw])
    return w.reshape(9 * cin, 4 * cout).astype(jnp.bfloat16)


def _prep_final_weight(w_pt):
    """torch Conv2d weight (1, Cf, 3, 3) -> (1, 9*Cf) f32 tap vector."""
    cf = w_pt.shape[1]
    taps = [w_pt[0, :, kh, kw] for kh in range(3) for kw in range(3)]
    return jnp.concatenate(taps, axis=0).reshape(1, 9 * cf).astype(jnp.float32)


def init_decoder_params(key, latent_dim, hidden_dims):
    hd = list(hidden_dims)
    lin_out = hd[-1] * 16                 # Linear(latent_dim, hidden_dims[-1]*16)
    rev = hd[::-1]                        # hidden_dims.reverse()
    n_ct = len(rev) - 1
    c0 = rev[0]
    keys = iter(jax.random.split(key, 2 * n_ct + 4))

    w_t = 0.1 * jax.random.normal(next(keys), (latent_dim, lin_out), jnp.float32)
    b_l = 0.01 * jax.random.normal(next(keys), (1, lin_out), jnp.float32)
    # Permute columns so h.reshape(B, 4, 4, C0) is already NHWC (no transpose).
    w_t = w_t.reshape(latent_dim, c0, 16).transpose(0, 2, 1).reshape(latent_dim, lin_out)
    b_l = b_l.reshape(1, c0, 16).transpose(0, 2, 1).reshape(1, lin_out)

    params = {"lin_w_t": w_t, "lin_b": b_l, "ct": []}
    for i in range(n_ct):
        cin, cout = rev[i], rev[i + 1]
        w_pt = 0.1 * jax.random.normal(next(keys), (cin, cout, 4, 4), jnp.float32)
        bias = 0.01 * jax.random.normal(next(keys), (cout,), jnp.float32)
        params["ct"].append(dict(
            w_fold=_prep_convt_weight_folded(w_pt),          # (9*cin, 4*cout) bf16
            b4=jnp.tile(bias.reshape(1, cout), (1, 4)),      # (1, 4*cout) f32
            gamma=jnp.ones((1, cout), jnp.float32),
            beta=jnp.zeros((1, cout), jnp.float32),
        ))
    cfin = rev[-1]
    w_fin = 0.1 * jax.random.normal(next(keys), (1, cfin, 3, 3), jnp.float32)
    b_fin = 0.01 * jax.random.normal(next(keys), (1,), jnp.float32)
    params["final_w"] = _prep_final_weight(w_fin)            # (1, 9*cfin) f32
    params["final_b"] = b_fin.reshape(1, 1)
    return params


def decoder_forward(params, mu):
    B = mu.shape[0]
    h = pallas_linear(mu, params["lin_w_t"], params["lin_b"])     # (B, 16*C0)
    c0 = params["ct"][0]["w_fold"].shape[0] // 9
    x = h.reshape(B, 4, 4, c0)             # already NHWC thanks to column permute
    for layer in params["ct"]:
        x = pallas_convt_bn_lrelu(x, layer)
    y = pallas_final_conv_sigmoid(x, params["final_w"], params["final_b"])
    return jnp.squeeze(y)                  # torch .squeeze()


if __name__ == "__main__":
    key = jax.random.PRNGKey(0)
    k_param, k_mu = jax.random.split(key)

    latent_dim = 8
    hidden_dims = [8, 16, 32, 64]   # small analogue of the default [32, 64, 128, 256]

    params = init_decoder_params(k_param, latent_dim, hidden_dims)
    mu = jax.random.normal(k_mu, (2, latent_dim), jnp.float32)

    out = jax.jit(decoder_forward)(params, mu)
    out = jax.block_until_ready(out)

    assert out.shape == (2, 32, 32), out.shape
    assert bool(jnp.all(jnp.isfinite(out)))
    assert bool(jnp.all((out >= 0.0) & (out <= 1.0)))   # sigmoid output range
    print("KERNEL_OK")
</pallas_src>

<mosaic_0001>
module attributes {stable_mosaic.version = 11 : i64} {
  func.func @_linear_kernel(%arg0: i32, %arg1: memref<2x8xf32, #tpu.memory_space<vmem>>, %arg2: memref<8x1024xf32, #tpu.memory_space<vmem>>, %arg3: memref<1x1024xf32, #tpu.memory_space<vmem>>, %arg4: memref<2x1024xf32, #tpu.memory_space<vmem>>) attributes {dimension_semantics = [#tpu.dimension_semantics<arbitrary>], iteration_bounds = array<i64: 1>, scalar_prefetch = 0 : i64, scratch_operands = 0 : i64, tpu.core_type = #tpu.core_type<tc>, window_params = [{pipeline_mode = #tpu.pipeline_mode<synchronous>, transform_indices = @transform_0, window_bounds = array<i64: 2, 8>}, {pipeline_mode = #tpu.pipeline_mode<synchronous>, transform_indices = @transform_1, window_bounds = array<i64: 8, 1024>}, {pipeline_mode = #tpu.pipeline_mode<synchronous>, transform_indices = @transform_2, window_bounds = array<i64: 1, 1024>}, {pipeline_mode = #tpu.pipeline_mode<synchronous>, transform_indices = @transform_3, window_bounds = array<i64: 2, 1024>}]} {
    %c0 = arith.constant 0 : index
    %c0_0 = arith.constant 0 : index
    %0 = vector.load %arg1[%c0, %c0_0] : memref<2x8xf32, #tpu.memory_space<vmem>>, vector<2x8xf32>
    %c0_1 = arith.constant 0 : index
    %c0_2 = arith.constant 0 : index
    %1 = vector.load %arg2[%c0_1, %c0_2] : memref<8x1024xf32, #tpu.memory_space<vmem>>, vector<8x1024xf32>
    %cst = arith.constant dense<0.000000e+00> : vector<2x1024xf32>
    %2 = tpu.matmul %0, %1, %cst {dimension_numbers = #tpu.dot_dimension_numbers<[1], [0], [0], [1], [0, 0, 1, 1], [], []>} : vector<2x8xf32>, vector<8x1024xf32>, vector<2x1024xf32> -> vector<2x1024xf32>
    %c0_3 = arith.constant 0 : index
    %c0_4 = arith.constant 0 : index
    %3 = vector.load %arg3[%c0_3, %c0_4] : memref<1x1024xf32, #tpu.memory_space<vmem>>, vector<1x1024xf32>
    %4 = vector.broadcast %3 : vector<1x1024xf32> to vector<2x1024xf32>
    %5 = arith.addf %2, %4 : vector<2x1024xf32>
    %c0_5 = arith.constant 0 : index
    %c0_6 = arith.constant 0 : index
    %6 = vector.load %arg4[%c0_5, %c0_6] : memref<2x1024xf32, #tpu.memory_space<vmem>>, vector<2x1024xf32>
    tpu.vector_store %arg4[%c0_5, %c0_6], %5 {strides = array<i32>} : memref<2x1024xf32, #tpu.memory_space<vmem>>, vector<2x1024xf32>,
    return
  }
  func.func @transform_0(%arg0: i32) -> (i32, i32) {
    %c0_i32 = arith.constant 0 : i32
    %c0_i32_0 = arith.constant 0 : i32
    %c0_i32_1 = arith.constant 0 : i32
    return %c0_i32, %c0_i32_0 : i32, i32
  }
  func.func @transform_1(%arg0: i32) -> (i32, i32) {
    %c0_i32 = arith.constant 0 : i32
    %c0_i32_0 = arith.constant 0 : i32
    %c0_i32_1 = arith.constant 0 : i32
    return %c0_i32, %c0_i32_0 : i32, i32
  }
  func.func @transform_2(%arg0: i32) -> (i32, i32) {
    %c0_i32 = arith.constant 0 : i32
    %c0_i32_0 = arith.constant 0 : i32
    %c0_i32_1 = arith.constant 0 : i32
    return %c0_i32, %c0_i32_0 : i32, i32
  }
  func.func @transform_3(%arg0: i32) -> (i32, i32) {
    %c0_i32 = arith.constant 0 : i32
    %c0_i32_0 = arith.constant 0 : i32
    %c0_i32_1 = arith.constant 0 : i32
    return %c0_i32, %c0_i32_0 : i32, i32
  }
}

module attributes {stable_mosaic.version = 11 : i64} {
  func.func @_convt_stats_kernel(%arg0: i32, %arg1: memref<32x576xbf16, #tpu.memory_space<vmem>>, %arg2: memref<576x128xbf16, #tpu.memory_space<vmem>>, %arg3: memref<1x128xf32, #tpu.memory_space<vmem>>, %arg4: memref<32x128xbf16, #tpu.memory_space<vmem>>, %arg5: memref<1x2x128xf32, #tpu.memory_space<vmem>>) attributes {dimension_semantics = [#tpu.dimension_semantics<parallel>], iteration_bounds = array<i64: 1>, scalar_prefetch = 0 : i64, scratch_operands = 0 : i64, tpu.core_type = #tpu.core_type<tc>, window_params = [{transform_indices = @transform_0, window_bounds = array<i64: 32, 576>}, {pipeline_mode = #tpu.pipeline_mode<synchronous>, transform_indices = @transform_1, window_bounds = array<i64: 576, 128>}, {pipeline_mode = #tpu.pipeline_mode<synchronous>, transform_indices = @transform_2, window_bounds = array<i64: 1, 128>}, {transform_indices = @transform_3, window_bounds = array<i64: 32, 128>}, {transform_indices = @transform_4, window_bounds = array<i64: 1, 2, 128>}]} {
    %c0 = arith.constant 0 : index
    %c0_0 = arith.constant 0 : index
    %0 = vector.load %arg1[%c0, %c0_0] : memref<32x576xbf16, #tpu.memory_space<vmem>>, vector<32x576xbf16>
    %c0_1 = arith.constant 0 : index
    %c0_2 = arith.constant 0 : index
    %1 = vector.load %arg2[%c0_1, %c0_2] : memref<576x128xbf16, #tpu.memory_space<vmem>>, vector<576x128xbf16>
    %cst = arith.constant dense<0.000000e+00> : vector<32x128xf32>
    %2 = tpu.matmul %0, %1, %cst {dimension_numbers = #tpu.dot_dimension_numbers<[1], [0], [0], [1], [0, 0, 1, 1], [], []>} : vector<32x576xbf16>, vector<576x128xbf16>, vector<32x128xf32> -> vector<32x128xf32>
    %c0_3 = arith.constant 0 : index
    %c0_4 = arith.constant 0 : index
    %3 = vector.load %arg3[%c0_3, %c0_4] : memref<1x128xf32, #tpu.memory_space<vmem>>, vector<1x128xf32>
    %4 = vector.broadcast %3 : vector<1x128xf32> to vector<32x128xf32>
    %5 = arith.addf %2, %4 : vector<32x128xf32>
    %6 = arith.truncf %5 : vector<32x128xf32> to vector<32x128xbf16>
    %c0_5 = arith.constant 0 : index
    %c0_6 = arith.constant 0 : index
    %7 = vector.load %arg4[%c0_5, %c0_6] : memref<32x128xbf16, #tpu.memory_space<vmem>>, vector<32x128xbf16>
    tpu.vector_store %arg4[%c0_5, %c0_6], %6 {strides = array<i32>} : memref<32x128xbf16, #tpu.memory_space<vmem>>, vector<32x128xbf16>,
    %cst_7 = arith.constant dense<0.000000e+00> : vector<128xf32>
    %8 = vector.multi_reduction <add>, %5, %cst_7 [0] : vector<32x128xf32> to vector<128xf32>
    %9 = vector.shape_cast %8 : vector<128xf32> to vector<1x128xf32>
    %10 = arith.mulf %5, %5 : vector<32x128xf32>
    %cst_8 = arith.constant dense<0.000000e+00> : vector<128xf32>
    %11 = vector.multi_reduction <add>, %10, %cst_8 [0] : vector<32x128xf32> to vector<128xf32>
    %12 = vector.shape_cast %11 : vector<128xf32> to vector<1x128xf32>
    %13 = tpu.concatenate %9, %12 in 0 : vector<1x128xf32>, vector<1x128xf32> -> vector<2x128xf32>
    %14 = vector.shape_cast %13 : vector<2x128xf32> to vector<1x2x128xf32>
    %c0_9 = arith.constant 0 : index
    %c0_10 = arith.constant 0 : index
    %c0_11 = arith.constant 0 : index
    %15 = vector.load %arg5[%c0_9, %c0_10, %c0_11] : memref<1x2x128xf32, #tpu.memory_space<vmem>>, vector<1x2x128xf32>
    tpu.vector_store %arg5[%c0_9, %c0_10, %c0_11], %14 {strides = array<i32>} : memref<1x2x128xf32, #tpu.memory_space<vmem>>, vector<1x2x128xf32>,
    return
  }
  func.func @transform_0(%arg0: i32) -> (i32, i32) {
    %c0_i32 = arith.constant 0 : i32
    %c0_i32_0 = arith.constant 0 : i32
    return %arg0, %c0_i32 : i32, i32
  }
  func.func @transform_1(%arg0: i32) -> (i32, i32) {
    %c0_i32 = arith.constant 0 : i32
    %c0_i32_0 = arith.constant 0 : i32
    %c0_i32_1 = arith.constant 0 : i32
    return %c0_i32, %c0_i32_0 : i32, i32
  }
  func.func @transform_2(%arg0: i32) -> (i32, i32) {
    %c0_i32 = arith.constant 0 : i32
    %c0_i32_0 = arith.constant 0 : i32
    %c0_i32_1 = arith.constant 0 : i32
    return %c0_i32, %c0_i32_0 : i32, i32
  }
  func.func @transform_3(%arg0: i32) -> (i32, i32) {
    %c0_i32 = arith.constant 0 : i32
    %c0_i32_0 = arith.constant 0 : i32
    return %arg0, %c0_i32 : i32, i32
  }
  func.func @transform_4(%arg0: i32) -> (i32, i32, i32) {
    %c0_i32 = arith.constant 0 : i32
    %c0_i32_0 = arith.constant 0 : i32
    %c0_i32_1 = arith.constant 0 : i32
    return %arg0, %c0_i32, %c0_i32_0 : i32, i32, i32
  }
}

module attributes {stable_mosaic.version = 11 : i64} {
  func.func @_bn_lrelu_kernel(%arg0: i32, %arg1: memref<32x128xbf16, #tpu.memory_space<vmem>>, %arg2: memref<1x2x128xf32, #tpu.memory_space<vmem>>, %arg3: memref<1x32xf32, #tpu.memory_space<vmem>>, %arg4: memref<1x32xf32, #tpu.memory_space<vmem>>, %arg5: memref<32x128xbf16, #tpu.memory_space<vmem>>) attributes {dimension_semantics = [#tpu.dimension_semantics<parallel>], iteration_bounds = array<i64: 1>, scalar_prefetch = 0 : i64, scratch_operands = 0 : i64, tpu.core_type = #tpu.core_type<tc>, window_params = [{transform_indices = @transform_0, window_bounds = array<i64: 32, 128>}, {pipeline_mode = #tpu.pipeline_mode<synchronous>, transform_indices = @transform_1, window_bounds = array<i64: 1, 2, 128>}, {pipeline_mode = #tpu.pipeline_mode<synchronous>, transform_indices = @transform_2, window_bounds = array<i64: 1, 32>}, {pipeline_mode = #tpu.pipeline_mode<synchronous>, transform_indices = @transform_3, window_bounds = array<i64: 1, 32>}, {transform_indices = @transform_4, window_bounds = array<i64: 32, 128>}]} {
    %c0 = arith.constant 0 : index
    %c0_0 = arith.constant 0 : index
    %c0_1 = arith.constant 0 : index
    %0 = vector.load %arg2[%c0, %c0_0, %c0_1] : memref<1x2x128xf32, #tpu.memory_space<vmem>>, vector<1x2x128xf32>
    %1 = vector.shape_cast %0 : vector<1x2x128xf32> to vector<2x128xf32>
    %2 = vector.extract_strided_slice %1 {offsets = [0, 0], sizes = [1, 128], strides = [1, 1]} : vector<2x128xf32> to vector<1x128xf32>
    %3 = vector.extract_strided_slice %1 {offsets = [1, 0], sizes = [1, 128], strides = [1, 1]} : vector<2x128xf32> to vector<1x128xf32>
    %4 = vector.extract_strided_slice %2 {offsets = [0, 0], sizes = [1, 32], strides = [1, 1]} : vector<1x128xf32> to vector<1x32xf32>
    %5 = vector.extract_strided_slice %2 {offsets = [0, 32], sizes = [1, 32], strides = [1, 1]} : vector<1x128xf32> to vector<1x32xf32>
    %6 = arith.addf %4, %5 : vector<1x32xf32>
    %7 = vector.extract_strided_slice %2 {offsets = [0, 64], sizes = [1, 32], strides = [1, 1]} : vector<1x128xf32> to vector<1x32xf32>
    %8 = arith.addf %6, %7 : vector<1x32xf32>
    %9 = vector.extract_strided_slice %2 {offsets = [0, 96], sizes = [1, 32], strides = [1, 1]} : vector<1x128xf32> to vector<1x32xf32>
    %10 = arith.addf %8, %9 : vector<1x32xf32>
    %11 = vector.extract_strided_slice %3 {offsets = [0, 0], sizes = [1, 32], strides = [1, 1]} : vector<1x128xf32> to vector<1x32xf32>
    %12 = vector.extract_strided_slice %3 {offsets = [0, 32], sizes = [1, 32], strides = [1, 1]} : vector<1x128xf32> to vector<1x32xf32>
    %13 = arith.addf %11, %12 : vector<1x32xf32>
    %14 = vector.extract_strided_slice %3 {offsets = [0, 64], sizes = [1, 32], strides = [1, 1]} : vector<1x128xf32> to vector<1x32xf32>
    %15 = arith.addf %13, %14 : vector<1x32xf32>
    %16 = vector.extract_strided_slice %3 {offsets = [0, 96], sizes = [1, 32], strides = [1, 1]} : vector<1x128xf32> to vector<1x32xf32>
    %17 = arith.addf %15, %16 : vector<1x32xf32>
    %cst = arith.constant 7.812500e-03 : f32
    %18 = vector.broadcast %cst : f32 to vector<1x32xf32>
    %19 = arith.mulf %10, %18 : vector<1x32xf32>
    %cst_2 = arith.constant 7.812500e-03 : f32
    %20 = vector.broadcast %cst_2 : f32 to vector<1x32xf32>
    %21 = arith.mulf %17, %20 : vector<1x32xf32>
    %22 = arith.mulf %19, %19 : vector<1x32xf32>
    %23 = arith.subf %21, %22 : vector<1x32xf32>
    %cst_3 = arith.constant 0.000000e+00 : f32
    %24 = vector.broadcast %cst_3 : f32 to vector<1x32xf32>
    %25 = arith.maximumf %23, %24 : vector<1x32xf32>
    %c0_4 = arith.constant 0 : index
    %c0_5 = arith.constant 0 : index
    %26 = vector.load %arg3[%c0_4, %c0_5] : memref<1x32xf32, #tpu.memory_space<vmem>>, vector<1x32xf32>
    %cst_6 = arith.constant 9.99999974E-6 : f32
    %27 = vector.broadcast %cst_6 : f32 to vector<1x32xf32>
    %28 = arith.addf %25, %27 : vector<1x32xf32>
    %29 = math.rsqrt %28 : vector<1x32xf32>
    %30 = arith.mulf %26, %29 : vector<1x32xf32>
    %c0_7 = arith.constant 0 : index
    %c0_8 = arith.constant 0 : index
    %31 = vector.load %arg4[%c0_7, %c0_8] : memref<1x32xf32, #tpu.memory_space<vmem>>, vector<1x32xf32>
    %32 = arith.mulf %19, %30 : vector<1x32xf32>
    %33 = arith.subf %31, %32 : vector<1x32xf32>
    %34 = tpu.concatenate %30, %30, %30, %30 in 1 : vector<1x32xf32>, vector<1x32xf32>, vector<1x32xf32>, vector<1x32xf32> -> vector<1x128xf32>
    %35 = tpu.concatenate %33, %33, %33, %33 in 1 : vector<1x32xf32>, vector<1x32xf32>, vector<1x32xf32>, vector<1x32xf32> -> vector<1x128xf32>
    %c0_9 = arith.constant 0 : index
    %c0_10 = arith.constant 0 : index
    %36 = vector.load %arg1[%c0_9, %c0_10] : memref<32x128xbf16, #tpu.memory_space<vmem>>, vector<32x128xbf16>
    %37 = arith.extf %36 : vector<32x128xbf16> to vector<32x128xf32>
    %38 = vector.broadcast %34 : vector<1x128xf32> to vector<32x128xf32>
    %39 = arith.mulf %37, %38 : vector<32x128xf32>
    %40 = vector.broadcast %35 : vector<1x128xf32> to vector<32x128xf32>
    %41 = arith.addf %39, %40 : vector<32x128xf32>
    %cst_11 = arith.constant 0.000000e+00 : f32
    %42 = vector.broadcast %cst_11 : f32 to vector<32x128xf32>
    %43 = arith.cmpf ogt, %41, %42 : vector<32x128xf32>
    %cst_12 = arith.constant 0.00999999977 : f32
    %44 = vector.broadcast %cst_12 : f32 to vector<32x128xf32>
    %45 = arith.mulf %44, %41 : vector<32x128xf32>
    %46 = arith.select %43, %41, %45 : vector<32x128xi1>, vector<32x128xf32>
    %47 = arith.truncf %46 : vector<32x128xf32> to vector<32x128xbf16>
    %c0_13 = arith.constant 0 : index
    %c0_14 = arith.constant 0 : index
    %48 = vector.load %arg5[%c0_13, %c0_14] : memref<32x128xbf16, #tpu.memory_space<vmem>>, vector<32x128xbf16>
    tpu.vector_store %arg5[%c0_13, %c0_14], %47 {strides = array<i32>} : memref<32x128xbf16, #tpu.memory_space<vmem>>, vector<32x128xbf16>,
    return
  }
  func.func @transform_0(%arg0: i32) -> (i32, i32) {
    %c0_i32 = arith.constant 0 : i32
    %c0_i32_0 = arith.constant 0 : i32
    return %arg0, %c0_i32 : i32, i32
  }
  func.func @transform_1(%arg0: i32) -> (i32, i32, i32) {
    %c0_i32 = arith.constant 0 : i32
    %c0_i32_0 = arith.constant 0 : i32
    %c0_i32_1 = arith.constant 0 : i32
    %c0_i32_2 = arith.constant 0 : i32
    return %c0_i32, %c0_i32_0, %c0_i32_1 : i32, i32, i32
  }
  func.func @transform_2(%arg0: i32) -> (i32, i32) {
    %c0_i32 = arith.constant 0 : i32
    %c0_i32_0 = arith.constant 0 : i32
    %c0_i32_1 = arith.constant 0 : i32
    return %c0_i32, %c0_i32_0 : i32, i32
  }
  func.func @transform_3(%arg0: i32) -> (i32, i32) {
    %c0_i32 = arith.constant 0 : i32
    %c0_i32_0 = arith.constant 0 : i32
    %c0_i32_1 = arith.constant 0 : i32
    return %c0_i32, %c0_i32_0 : i32, i32
  }
  func.func @transform_4(%arg0: i32) -> (i32, i32) {
    %c0_i32 = arith.constant 0 : i32
    %c0_i32_0 = arith.constant 0 : i32
    return %arg0, %c0_i32 : i32, i32
  }
}

module attributes {stable_mosaic.version = 11 : i64} {
  func.func @_convt_stats_kernel(%arg0: i32, %arg1: memref<128x288xbf16, #tpu.memory_space<vmem>>, %arg2: memref<288x64xbf16, #tpu.memory_space<vmem>>, %arg3: memref<1x64xf32, #tpu.memory_space<vmem>>, %arg4: memref<128x64xbf16, #tpu.memory_space<vmem>>, %arg5: memref<1x2x64xf32, #tpu.memory_space<vmem>>) attributes {dimension_semantics = [#tpu.dimension_semantics<parallel>], iteration_bounds = array<i64: 1>, scalar_prefetch = 0 : i64, scratch_operands = 0 : i64, tpu.core_type = #tpu.core_type<tc>, window_params = [{transform_indices = @transform_0, window_bounds = array<i64: 128, 288>}, {pipeline_mode = #tpu.pipeline_mode<synchronous>, transform_indices = @transform_1, window_bounds = array<i64: 288, 64>}, {pipeline_mode = #tpu.pipeline_mode<synchronous>, transform_indices = @transform_2, window_bounds = array<i64: 1, 64>}, {transform_indices = @transform_3, window_bounds = array<i64: 128, 64>}, {transform_indices = @transform_4, window_bounds = array<i64: 1, 2, 64>}]} {
    %c0 = arith.constant 0 : index
    %c0_0 = arith.constant 0 : index
    %0 = vector.load %arg1[%c0, %c0_0] : memref<128x288xbf16, #tpu.memory_space<vmem>>, vector<128x288xbf16>
    %c0_1 = arith.constant 0 : index
    %c0_2 = arith.constant 0 : index
    %1 = vector.load %arg2[%c0_1, %c0_2] : memref<288x64xbf16, #tpu.memory_space<vmem>>, vector<288x64xbf16>
    %cst = arith.constant dense<0.000000e+00> : vector<128x64xf32>
    %2 = tpu.matmul %0, %1, %cst {dimension_numbers = #tpu.dot_dimension_numbers<[1], [0], [0], [1], [0, 0, 1, 1], [], []>} : vector<128x288xbf16>, vector<288x64xbf16>, vector<128x64xf32> -> vector<128x64xf32>
    %c0_3 = arith.constant 0 : index
    %c0_4 = arith.constant 0 : index
    %3 = vector.load %arg3[%c0_3, %c0_4] : memref<1x64xf32, #tpu.memory_space<vmem>>, vector<1x64xf32>
    %4 = vector.broadcast %3 : vector<1x64xf32> to vector<128x64xf32>
    %5 = arith.addf %2, %4 : vector<128x64xf32>
    %6 = arith.truncf %5 : vector<128x64xf32> to vector<128x64xbf16>
    %c0_5 = arith.constant 0 : index
    %c0_6 = arith.constant 0 : index
    %7 = vector.load %arg4[%c0_5, %c0_6] : memref<128x64xbf16, #tpu.memory_space<vmem>>, vector<128x64xbf16>
    tpu.vector_store %arg4[%c0_5, %c0_6], %6 {strides = array<i32>} : memref<128x64xbf16, #tpu.memory_space<vmem>>, vector<128x64xbf16>,
    %cst_7 = arith.constant dense<0.000000e+00> : vector<64xf32>
    %8 = vector.multi_reduction <add>, %5, %cst_7 [0] : vector<128x64xf32> to vector<64xf32>
    %9 = vector.shape_cast %8 : vector<64xf32> to vector<1x64xf32>
    %10 = arith.mulf %5, %5 : vector<128x64xf32>
    %cst_8 = arith.constant dense<0.000000e+00> : vector<64xf32>
    %11 = vector.multi_reduction <add>, %10, %cst_8 [0] : vector<128x64xf32> to vector<64xf32>
    %12 = vector.shape_cast %11 : vector<64xf32> to vector<1x64xf32>
    %13 = tpu.concatenate %9, %12 in 0 : vector<1x64xf32>, vector<1x64xf32> -> vector<2x64xf32>
    %14 = vector.shape_cast %13 : vector<2x64xf32> to vector<1x2x64xf32>
    %c0_9 = arith.constant 0 : index
    %c0_10 = arith.constant 0 : index
    %c0_11 = arith.constant 0 : index
    %15 = vector.load %arg5[%c0_9, %c0_10, %c0_11] : memref<1x2x64xf32, #tpu.memory_space<vmem>>, vector<1x2x64xf32>
    tpu.vector_store %arg5[%c0_9, %c0_10, %c0_11], %14 {strides = array<i32>} : memref<1x2x64xf32, #tpu.memory_space<vmem>>, vector<1x2x64xf32>,
    return
  }
  func.func @transform_0(%arg0: i32) -> (i32, i32) {
    %c0_i32 = arith.constant 0 : i32
    %c0_i32_0 = arith.constant 0 : i32
    return %arg0, %c0_i32 : i32, i32
  }
  func.func @transform_1(%arg0: i32) -> (i32, i32) {
    %c0_i32 = arith.constant 0 : i32
    %c0_i32_0 = arith.constant 0 : i32
    %c0_i32_1 = arith.constant 0 : i32
    return %c0_i32, %c0_i32_0 : i32, i32
  }
  func.func @transform_2(%arg0: i32) -> (i32, i32) {
    %c0_i32 = arith.constant 0 : i32
    %c0_i32_0 = arith.constant 0 : i32
    %c0_i32_1 = arith.constant 0 : i32
    return %c0_i32, %c0_i32_0 : i32, i32
  }
  func.func @transform_3(%arg0: i32) -> (i32, i32) {
    %c0_i32 = arith.constant 0 : i32
    %c0_i32_0 = arith.constant 0 : i32
    return %arg0, %c0_i32 : i32, i32
  }
  func.func @transform_4(%arg0: i32) -> (i32, i32, i32) {
    %c0_i32 = arith.constant 0 : i32
    %c0_i32_0 = arith.constant 0 : i32
    %c0_i32_1 = arith.constant 0 : i32
    return %arg0, %c0_i32, %c0_i32_0 : i32, i32, i32
  }
}

module attributes {stable_mosaic.version = 11 : i64} {
  func.func @_bn_lrelu_kernel(%arg0: i32, %arg1: memref<128x64xbf16, #tpu.memory_space<vmem>>, %arg2: memref<1x2x64xf32, #tpu.memory_space<vmem>>, %arg3: memref<1x16xf32, #tpu.memory_space<vmem>>, %arg4: memref<1x16xf32, #tpu.memory_space<vmem>>, %arg5: memref<128x64xbf16, #tpu.memory_space<vmem>>) attributes {dimension_semantics = [#tpu.dimension_semantics<parallel>], iteration_bounds = array<i64: 1>, scalar_prefetch = 0 : i64, scratch_operands = 0 : i64, tpu.core_type = #tpu.core_type<tc>, window_params = [{transform_indices = @transform_0, window_bounds = array<i64: 128, 64>}, {pipeline_mode = #tpu.pipeline_mode<synchronous>, transform_indices = @transform_1, window_bounds = array<i64: 1, 2, 64>}, {pipeline_mode = #tpu.pipeline_mode<synchronous>, transform_indices = @transform_2, window_bounds = array<i64: 1, 16>}, {pipeline_mode = #tpu.pipeline_mode<synchronous>, transform_indices = @transform_3, window_bounds = array<i64: 1, 16>}, {transform_indices = @transform_4, window_bounds = array<i64: 128, 64>}]} {
    %c0 = arith.constant 0 : index
    %c0_0 = arith.constant 0 : index
    %c0_1 = arith.constant 0 : index
    %0 = vector.load %arg2[%c0, %c0_0, %c0_1] : memref<1x2x64xf32, #tpu.memory_space<vmem>>, vector<1x2x64xf32>
    %1 = vector.shape_cast %0 : vector<1x2x64xf32> to vector<2x64xf32>
    %2 = vector.extract_strided_slice %1 {offsets = [0, 0], sizes = [1, 64], strides = [1, 1]} : vector<2x64xf32> to vector<1x64xf32>
    %3 = vector.extract_strided_slice %1 {offsets = [1, 0], sizes = [1, 64], strides = [1, 1]} : vector<2x64xf32> to vector<1x64xf32>
    %4 = vector.extract_strided_slice %2 {offsets = [0, 0], sizes = [1, 16], strides = [1, 1]} : vector<1x64xf32> to vector<1x16xf32>
    %5 = vector.extract_strided_slice %2 {offsets = [0, 16], sizes = [1, 16], strides = [1, 1]} : vector<1x64xf32> to vector<1x16xf32>
    %6 = arith.addf %4, %5 : vector<1x16xf32>
    %7 = vector.extract_strided_slice %2 {offsets = [0, 32], sizes = [1, 16], strides = [1, 1]} : vector<1x64xf32> to vector<1x16xf32>
    %8 = arith.addf %6, %7 : vector<1x16xf32>
    %9 = vector.extract_strided_slice %2 {offsets = [0, 48], sizes = [1, 16], strides = [1, 1]} : vector<1x64xf32> to vector<1x16xf32>
    %10 = arith.addf %8, %9 : vector<1x16xf32>
    %11 = vector.extract_strided_slice %3 {offsets = [0, 0], sizes = [1, 16], strides = [1, 1]} : vector<1x64xf32> to vector<1x16xf32>
    %12 = vector.extract_strided_slice %3 {offsets = [0, 16], sizes = [1, 16], strides = [1, 1]} : vector<1x64xf32> to vector<1x16xf32>
    %13 = arith.addf %11, %12 : vector<1x16xf32>
    %14 = vector.extract_strided_slice %3 {offsets = [0, 32], sizes = [1, 16], strides = [1, 1]} : vector<1x64xf32> to vector<1x16xf32>
    %15 = arith.addf %13, %14 : vector<1x16xf32>
    %16 = vector.extract_strided_slice %3 {offsets = [0, 48], sizes = [1, 16], strides = [1, 1]} : vector<1x64xf32> to vector<1x16xf32>
    %17 = arith.addf %15, %16 : vector<1x16xf32>
    %cst = arith.constant 0.001953125 : f32
    %18 = vector.broadcast %cst : f32 to vector<1x16xf32>
    %19 = arith.mulf %10, %18 : vector<1x16xf32>
    %cst_2 = arith.constant 0.001953125 : f32
    %20 = vector.broadcast %cst_2 : f32 to vector<1x16xf32>
    %21 = arith.mulf %17, %20 : vector<1x16xf32>
    %22 = arith.mulf %19, %19 : vector<1x16xf32>
    %23 = arith.subf %21, %22 : vector<1x16xf32>
    %cst_3 = arith.constant 0.000000e+00 : f32
    %24 = vector.broadcast %cst_3 : f32 to vector<1x16xf32>
    %25 = arith.maximumf %23, %24 : vector<1x16xf32>
    %c0_4 = arith.constant 0 : index
    %c0_5 = arith.constant 0 : index
    %26 = vector.load %arg3[%c0_4, %c0_5] : memref<1x16xf32, #tpu.memory_space<vmem>>, vector<1x16xf32>
    %cst_6 = arith.constant 9.99999974E-6 : f32
    %27 = vector.broadcast %cst_6 : f32 to vector<1x16xf32>
    %28 = arith.addf %25, %27 : vector<1x16xf32>
    %29 = math.rsqrt %28 : vector<1x16xf32>
    %30 = arith.mulf %26, %29 : vector<1x16xf32>
    %c0_7 = arith.constant 0 : index
    %c0_8 = arith.constant 0 : index
    %31 = vector.load %arg4[%c0_7, %c0_8] : memref<1x16xf32, #tpu.memory_space<vmem>>, vector<1x16xf32>
    %32 = arith.mulf %19, %30 : vector<1x16xf32>
    %33 = arith.subf %31, %32 : vector<1x16xf32>
    %34 = tpu.concatenate %30, %30, %30, %30 in 1 : vector<1x16xf32>, vector<1x16xf32>, vector<1x16xf32>, vector<1x16xf32> -> vector<1x64xf32>
    %35 = tpu.concatenate %33, %33, %33, %33 in 1 : vector<1x16xf32>, vector<1x16xf32>, vector<1x16xf32>, vector<1x16xf32> -> vector<1x64xf32>
    %c0_9 = arith.constant 0 : index
    %c0_10 = arith.constant 0 : index
    %36 = vector.load %arg1[%c0_9, %c0_10] : memref<128x64xbf16, #tpu.memory_space<vmem>>, vector<128x64xbf16>
    %37 = arith.extf %36 : vector<128x64xbf16> to vector<128x64xf32>
    %38 = vector.broadcast %34 : vector<1x64xf32> to vector<128x64xf32>
    %39 = arith.mulf %37, %38 : vector<128x64xf32>
    %40 = vector.broadcast %35 : vector<1x64xf32> to vector<128x64xf32>
    %41 = arith.addf %39, %40 : vector<128x64xf32>
    %cst_11 = arith.constant 0.000000e+00 : f32
    %42 = vector.broadcast %cst_11 : f32 to vector<128x64xf32>
    %43 = arith.cmpf ogt, %41, %42 : vector<128x64xf32>
    %cst_12 = arith.constant 0.00999999977 : f32
    %44 = vector.broadcast %cst_12 : f32 to vector<128x64xf32>
    %45 = arith.mulf %44, %41 : vector<128x64xf32>
    %46 = arith.select %43, %41, %45 : vector<128x64xi1>, vector<128x64xf32>
    %47 = arith.truncf %46 : vector<128x64xf32> to vector<128x64xbf16>
    %c0_13 = arith.constant 0 : index
    %c0_14 = arith.constant 0 : index
    %48 = vector.load %arg5[%c0_13, %c0_14] : memref<128x64xbf16, #tpu.memory_space<vmem>>, vector<128x64xbf16>
    tpu.vector_store %arg5[%c0_13, %c0_14], %47 {strides = array<i32>} : memref<128x64xbf16, #tpu.memory_space<vmem>>, vector<128x64xbf16>,
    return
  }
  func.func @transform_0(%arg0: i32) -> (i32, i32) {
    %c0_i32 = arith.constant 0 : i32
    %c0_i32_0 = arith.constant 0 : i32
    return %arg0, %c0_i32 : i32, i32
  }
  func.func @transform_1(%arg0: i32) -> (i32, i32, i32) {
    %c0_i32 = arith.constant 0 : i32
    %c0_i32_0 = arith.constant 0 : i32
    %c0_i32_1 = arith.constant 0 : i32
    %c0_i32_2 = arith.constant 0 : i32
    return %c0_i32, %c0_i32_0, %c0_i32_1 : i32, i32, i32
  }
  func.func @transform_2(%arg0: i32) -> (i32, i32) {
    %c0_i32 = arith.constant 0 : i32
    %c0_i32_0 = arith.constant 0 : i32
    %c0_i32_1 = arith.constant 0 : i32
    return %c0_i32, %c0_i32_0 : i32, i32
  }
  func.func @transform_3(%arg0: i32) -> (i32, i32) {
    %c0_i32 = arith.constant 0 : i32
    %c0_i32_0 = arith.constant 0 : i32
    %c0_i32_1 = arith.constant 0 : i32
    return %c0_i32, %c0_i32_0 : i32, i32
  }
  func.func @transform_4(%arg0: i32) -> (i32, i32) {
    %c0_i32 = arith.constant 0 : i32
    %c0_i32_0 = arith.constant 0 : i32
    return %arg0, %c0_i32 : i32, i32
  }
}

module attributes {stable_mosaic.version = 11 : i64} {
  func.func @_convt_stats_kernel(%arg0: i32, %arg1: memref<512x144xbf16, #tpu.memory_space<vmem>>, %arg2: memref<144x32xbf16, #tpu.memory_space<vmem>>, %arg3: memref<1x32xf32, #tpu.memory_space<vmem>>, %arg4: memref<512x32xbf16, #tpu.memory_space<vmem>>, %arg5: memref<1x2x32xf32, #tpu.memory_space<vmem>>) attributes {dimension_semantics = [#tpu.dimension_semantics<parallel>], iteration_bounds = array<i64: 1>, scalar_prefetch = 0 : i64, scratch_operands = 0 : i64, tpu.core_type = #tpu.core_type<tc>, window_params = [{transform_indices = @transform_0, window_bounds = array<i64: 512, 144>}, {pipeline_mode = #tpu.pipeline_mode<synchronous>, transform_indices = @transform_1, window_bounds = array<i64: 144, 32>}, {pipeline_mode = #tpu.pipeline_mode<synchronous>, transform_indices = @transform_2, window_bounds = array<i64: 1, 32>}, {transform_indices = @transform_3, window_bounds = array<i64: 512, 32>}, {transform_indices = @transform_4, window_bounds = array<i64: 1, 2, 32>}]} {
    %c0 = arith.constant 0 : index
    %c0_0 = arith.constant 0 : index
    %0 = vector.load %arg1[%c0, %c0_0] : memref<512x144xbf16, #tpu.memory_space<vmem>>, vector<512x144xbf16>
    %c0_1 = arith.constant 0 : index
    %c0_2 = arith.constant 0 : index
    %1 = vector.load %arg2[%c0_1, %c0_2] : memref<144x32xbf16, #tpu.memory_space<vmem>>, vector<144x32xbf16>
    %cst = arith.constant dense<0.000000e+00> : vector<512x32xf32>
    %2 = tpu.matmul %0, %1, %cst {dimension_numbers = #tpu.dot_dimension_numbers<[1], [0], [0], [1], [0, 0, 1, 1], [], []>} : vector<512x144xbf16>, vector<144x32xbf16>, vector<512x32xf32> -> vector<512x32xf32>
    %c0_3 = arith.constant 0 : index
    %c0_4 = arith.constant 0 : index
    %3 = vector.load %arg3[%c0_3, %c0_4] : memref<1x32xf32, #tpu.memory_space<vmem>>, vector<1x32xf32>
    %4 = vector.broadcast %3 : vector<1x32xf32> to vector<512x32xf32>
    %5 = arith.addf %2, %4 : vector<512x32xf32>
    %6 = arith.truncf %5 : vector<512x32xf32> to vector<512x32xbf16>
    %c0_5 = arith.constant 0 : index
    %c0_6 = arith.constant 0 : index
    %7 = vector.load %arg4[%c0_5, %c0_6] : memref<512x32xbf16, #tpu.memory_space<vmem>>, vector<512x32xbf16>
    tpu.vector_store %arg4[%c0_5, %c0_6], %6 {strides = array<i32>} : memref<512x32xbf16, #tpu.memory_space<vmem>>, vector<512x32xbf16>,
    %cst_7 = arith.constant dense<0.000000e+00> : vector<32xf32>
    %8 = vector.multi_reduction <add>, %5, %cst_7 [0] : vector<512x32xf32> to vector<32xf32>
    %9 = vector.shape_cast %8 : vector<32xf32> to vector<1x32xf32>
    %10 = arith.mulf %5, %5 : vector<512x32xf32>
    %cst_8 = arith.constant dense<0.000000e+00> : vector<32xf32>
    %11 = vector.multi_reduction <add>, %10, %cst_8 [0] : vector<512x32xf32> to vector<32xf32>
    %12 = vector.shape_cast %11 : vector<32xf32> to vector<1x32xf32>
    %13 = tpu.concatenate %9, %12 in 0 : vector<1x32xf32>, vector<1x32xf32> -> vector<2x32xf32>
    %14 = vector.shape_cast %13 : vector<2x32xf32> to vector<1x2x32xf32>
    %c0_9 = arith.constant 0 : index
    %c0_10 = arith.constant 0 : index
    %c0_11 = arith.constant 0 : index
    %15 = vector.load %arg5[%c0_9, %c0_10, %c0_11] : memref<1x2x32xf32, #tpu.memory_space<vmem>>, vector<1x2x32xf32>
    tpu.vector_store %arg5[%c0_9, %c0_10, %c0_11], %14 {strides = array<i32>} : memref<1x2x32xf32, #tpu.memory_space<vmem>>, vector<1x2x32xf32>,
    return
  }
  func.func @transform_0(%arg0: i32) -> (i32, i32) {
    %c0_i32 = arith.constant 0 : i32
    %c0_i32_0 = arith.constant 0 : i32
    return %arg0, %c0_i32 : i32, i32
  }
  func.func @transform_1(%arg0: i32) -> (i32, i32) {
    %c0_i32 = arith.constant 0 : i32
    %c0_i32_0 = arith.constant 0 : i32
    %c0_i32_1 = arith.constant 0 : i32
    return %c0_i32, %c0_i32_0 : i32, i32
  }
  func.func @transform_2(%arg0: i32) -> (i32, i32) {
    %c0_i32 = arith.constant 0 : i32
    %c0_i32_0 = arith.constant 0 : i32
    %c0_i32_1 = arith.constant 0 : i32
    return %c0_i32, %c0_i32_0 : i32, i32
  }
  func.func @transform_3(%arg0: i32) -> (i32, i32) {
    %c0_i32 = arith.constant 0 : i32
    %c0_i32_0 = arith.constant 0 : i32
    return %arg0, %c0_i32 : i32, i32
  }
  func.func @transform_4(%arg0: i32) -> (i32, i32, i32) {
    %c0_i32 = arith.constant 0 : i32
    %c0_i32_0 = arith.constant 0 : i32
    %c0_i32_1 = arith.constant 0 : i32
    return %arg0, %c0_i32, %c0_i32_0 : i32, i32, i32
  }
}

module attributes {stable_mosaic.version = 11 : i64} {
  func.func @_bn_lrelu_kernel(%arg0: i32, %arg1: memref<512x32xbf16, #tpu.memory_space<vmem>>, %arg2: memref<1x2x32xf32, #tpu.memory_space<vmem>>, %arg3: memref<1x8xf32, #tpu.memory_space<vmem>>, %arg4: memref<1x8xf32, #tpu.memory_space<vmem>>, %arg5: memref<512x32xbf16, #tpu.memory_space<vmem>>) attributes {dimension_semantics = [#tpu.dimension_semantics<parallel>], iteration_bounds = array<i64: 1>, scalar_prefetch = 0 : i64, scratch_operands = 0 : i64, tpu.core_type = #tpu.core_type<tc>, window_params = [{transform_indices = @transform_0, window_bounds = array<i64: 512, 32>}, {pipeline_mode = #tpu.pipeline_mode<synchronous>, transform_indices = @transform_1, window_bounds = array<i64: 1, 2, 32>}, {pipeline_mode = #tpu.pipeline_mode<synchronous>, transform_indices = @transform_2, window_bounds = array<i64: 1, 8>}, {pipeline_mode = #tpu.pipeline_mode<synchronous>, transform_indices = @transform_3, window_bounds = array<i64: 1, 8>}, {transform_indices = @transform_4, window_bounds = array<i64: 512, 32>}]} {
    %c0 = arith.constant 0 : index
    %c0_0 = arith.constant 0 : index
    %c0_1 = arith.constant 0 : index
    %0 = vector.load %arg2[%c0, %c0_0, %c0_1] : memref<1x2x32xf32, #tpu.memory_space<vmem>>, vector<1x2x32xf32>
    %1 = vector.shape_cast %0 : vector<1x2x32xf32> to vector<2x32xf32>
    %2 = vector.extract_strided_slice %1 {offsets = [0, 0], sizes = [1, 32], strides = [1, 1]} : vector<2x32xf32> to vector<1x32xf32>
    %3 = vector.extract_strided_slice %1 {offsets = [1, 0], sizes = [1, 32], strides = [1, 1]} : vector<2x32xf32> to vector<1x32xf32>
    %4 = vector.extract_strided_slice %2 {offsets = [0, 0], sizes = [1, 8], strides = [1, 1]} : vector<1x32xf32> to vector<1x8xf32>
    %5 = vector.extract_strided_slice %2 {offsets = [0, 8], sizes = [1, 8], strides = [1, 1]} : vector<1x32xf32> to vector<1x8xf32>
    %6 = arith.addf %4, %5 : vector<1x8xf32>
    %7 = vector.extract_strided_slice %2 {offsets = [0, 16], sizes = [1, 8], strides = [1, 1]} : vector<1x32xf32> to vector<1x8xf32>
    %8 = arith.addf %6, %7 : vector<1x8xf32>
    %9 = vector.extract_strided_slice %2 {offsets = [0, 24], sizes = [1, 8], strides = [1, 1]} : vector<1x32xf32> to vector<1x8xf32>
    %10 = arith.addf %8, %9 : vector<1x8xf32>
    %11 = vector.extract_strided_slice %3 {offsets = [0, 0], sizes = [1, 8], strides = [1, 1]} : vector<1x32xf32> to vector<1x8xf32>
    %12 = vector.extract_strided_slice %3 {offsets = [0, 8], sizes = [1, 8], strides = [1, 1]} : vector<1x32xf32> to vector<1x8xf32>
    %13 = arith.addf %11, %12 : vector<1x8xf32>
    %14 = vector.extract_strided_slice %3 {offsets = [0, 16], sizes = [1, 8], strides = [1, 1]} : vector<1x32xf32> to vector<1x8xf32>
    %15 = arith.addf %13, %14 : vector<1x8xf32>
    %16 = vector.extract_strided_slice %3 {offsets = [0, 24], sizes = [1, 8], strides = [1, 1]} : vector<1x32xf32> to vector<1x8xf32>
    %17 = arith.addf %15, %16 : vector<1x8xf32>
    %cst = arith.constant 4.8828125E-4 : f32
    %18 = vector.broadcast %cst : f32 to vector<1x8xf32>
    %19 = arith.mulf %10, %18 : vector<1x8xf32>
    %cst_2 = arith.constant 4.8828125E-4 : f32
    %20 = vector.broadcast %cst_2 : f32 to vector<1x8xf32>
    %21 = arith.mulf %17, %20 : vector<1x8xf32>
    %22 = arith.mulf %19, %19 : vector<1x8xf32>
    %23 = arith.subf %21, %22 : vector<1x8xf32>
    %cst_3 = arith.constant 0.000000e+00 : f32
    %24 = vector.broadcast %cst_3 : f32 to vector<1x8xf32>
    %25 = arith.maximumf %23, %24 : vector<1x8xf32>
    %c0_4 = arith.constant 0 : index
    %c0_5 = arith.constant 0 : index
    %26 = vector.load %arg3[%c0_4, %c0_5] : memref<1x8xf32, #tpu.memory_space<vmem>>, vector<1x8xf32>
    %cst_6 = arith.constant 9.99999974E-6 : f32
    %27 = vector.broadcast %cst_6 : f32 to vector<1x8xf32>
    %28 = arith.addf %25, %27 : vector<1x8xf32>
    %29 = math.rsqrt %28 : vector<1x8xf32>
    %30 = arith.mulf %26, %29 : vector<1x8xf32>
    %c0_7 = arith.constant 0 : index
    %c0_8 = arith.constant 0 : index
    %31 = vector.load %arg4[%c0_7, %c0_8] : memref<1x8xf32, #tpu.memory_space<vmem>>, vector<1x8xf32>
    %32 = arith.mulf %19, %30 : vector<1x8xf32>
    %33 = arith.subf %31, %32 : vector<1x8xf32>
    %34 = tpu.concatenate %30, %30, %30, %30 in 1 : vector<1x8xf32>, vector<1x8xf32>, vector<1x8xf32>, vector<1x8xf32> -> vector<1x32xf32>
    %35 = tpu.concatenate %33, %33, %33, %33 in 1 : vector<1x8xf32>, vector<1x8xf32>, vector<1x8xf32>, vector<1x8xf32> -> vector<1x32xf32>
    %c0_9 = arith.constant 0 : index
    %c0_10 = arith.constant 0 : index
    %36 = vector.load %arg1[%c0_9, %c0_10] : memref<512x32xbf16, #tpu.memory_space<vmem>>, vector<512x32xbf16>
    %37 = arith.extf %36 : vector<512x32xbf16> to vector<512x32xf32>
    %38 = vector.broadcast %34 : vector<1x32xf32> to vector<512x32xf32>
    %39 = arith.mulf %37, %38 : vector<512x32xf32>
    %40 = vector.broadcast %35 : vector<1x32xf32> to vector<512x32xf32>
    %41 = arith.addf %39, %40 : vector<512x32xf32>
    %cst_11 = arith.constant 0.000000e+00 : f32
    %42 = vector.broadcast %cst_11 : f32 to vector<512x32xf32>
    %43 = arith.cmpf ogt, %41, %42 : vector<512x32xf32>
    %cst_12 = arith.constant 0.00999999977 : f32
    %44 = vector.broadcast %cst_12 : f32 to vector<512x32xf32>
    %45 = arith.mulf %44, %41 : vector<512x32xf32>
    %46 = arith.select %43, %41, %45 : vector<512x32xi1>, vector<512x32xf32>
    %47 = arith.truncf %46 : vector<512x32xf32> to vector<512x32xbf16>
    %c0_13 = arith.constant 0 : index
    %c0_14 = arith.constant 0 : index
    %48 = vector.load %arg5[%c0_13, %c0_14] : memref<512x32xbf16, #tpu.memory_space<vmem>>, vector<512x32xbf16>
    tpu.vector_store %arg5[%c0_13, %c0_14], %47 {strides = array<i32>} : memref<512x32xbf16, #tpu.memory_space<vmem>>, vector<512x32xbf16>,
    return
  }
  func.func @transform_0(%arg0: i32) -> (i32, i32) {
    %c0_i32 = arith.constant 0 : i32
    %c0_i32_0 = arith.constant 0 : i32
    return %arg0, %c0_i32 : i32, i32
  }
  func.func @transform_1(%arg0: i32) -> (i32, i32, i32) {
    %c0_i32 = arith.constant 0 : i32
    %c0_i32_0 = arith.constant 0 : i32
    %c0_i32_1 = arith.constant 0 : i32
    %c0_i32_2 = arith.constant 0 : i32
    return %c0_i32, %c0_i32_0, %c0_i32_1 : i32, i32, i32
  }
  func.func @transform_2(%arg0: i32) -> (i32, i32) {
    %c0_i32 = arith.constant 0 : i32
    %c0_i32_0 = arith.constant 0 : i32
    %c0_i32_1 = arith.constant 0 : i32
    return %c0_i32, %c0_i32_0 : i32, i32
  }
  func.func @transform_3(%arg0: i32) -> (i32, i32) {
    %c0_i32 = arith.constant 0 : i32
    %c0_i32_0 = arith.constant 0 : i32
    %c0_i32_1 = arith.constant 0 : i32
    return %c0_i32, %c0_i32_0 : i32, i32
  }
  func.func @transform_4(%arg0: i32) -> (i32, i32) {
    %c0_i32 = arith.constant 0 : i32
    %c0_i32_0 = arith.constant 0 : i32
    return %arg0, %c0_i32 : i32, i32
  }
}

module attributes {stable_mosaic.version = 11 : i64} {
  func.func @_final_conv_sigmoid_kernel(%arg0: i32, %arg1: memref<512x72xbf16, #tpu.memory_space<vmem>>, %arg2: memref<1x72xf32, #tpu.memory_space<vmem>>, %arg3: memref<1x1xf32, #tpu.memory_space<vmem>>, %arg4: memref<512x1xf32, #tpu.memory_space<vmem>>) attributes {dimension_semantics = [#tpu.dimension_semantics<parallel>], iteration_bounds = array<i64: 4>, scalar_prefetch = 0 : i64, scratch_operands = 0 : i64, tpu.core_type = #tpu.core_type<tc>, window_params = [{transform_indices = @transform_0, window_bounds = array<i64: 512, 72>}, {pipeline_mode = #tpu.pipeline_mode<synchronous>, transform_indices = @transform_1, window_bounds = array<i64: 1, 72>}, {pipeline_mode = #tpu.pipeline_mode<synchronous>, transform_indices = @transform_2, window_bounds = array<i64: 1, 1>}, {transform_indices = @transform_3, window_bounds = array<i64: 512, 1>}]} {
    %c0 = arith.constant 0 : index
    %c0_0 = arith.constant 0 : index
    %0 = vector.load %arg1[%c0, %c0_0] : memref<512x72xbf16, #tpu.memory_space<vmem>>, vector<512x72xbf16>
    %1 = arith.extf %0 : vector<512x72xbf16> to vector<512x72xf32>
    %c0_1 = arith.constant 0 : index
    %c0_2 = arith.constant 0 : index
    %2 = vector.load %arg2[%c0_1, %c0_2] : memref<1x72xf32, #tpu.memory_space<vmem>>, vector<1x72xf32>
    %3 = vector.broadcast %2 : vector<1x72xf32> to vector<512x72xf32>
    %4 = arith.mulf %1, %3 : vector<512x72xf32>
    %cst = arith.constant dense<0.000000e+00> : vector<512xf32>
    %5 = vector.multi_reduction <add>, %4, %cst [1] : vector<512x72xf32> to vector<512xf32>
    %6 = vector.shape_cast %5 : vector<512xf32> to vector<512x1xf32>
    %c0_3 = arith.constant 0 : index
    %c0_4 = arith.constant 0 : index
    %7 = vector.load %arg3[%c0_3, %c0_4] : memref<1x1xf32, #tpu.memory_space<vmem>>, vector<1x1xf32>
    %8 = vector.broadcast %7 : vector<1x1xf32> to vector<512x1xf32>
    %9 = arith.addf %6, %8 : vector<512x1xf32>
    %cst_5 = arith.constant 0.000000e+00 : f32
    %10 = vector.broadcast %cst_5 : f32 to vector<512x1xf32>
    %11 = arith.subf %10, %9 : vector<512x1xf32>
    %12 = math.exp %11 : vector<512x1xf32>
    %cst_6 = arith.constant 1.000000e+00 : f32
    %13 = vector.broadcast %cst_6 : f32 to vector<512x1xf32>
    %14 = arith.addf %13, %12 : vector<512x1xf32>
    %cst_7 = arith.constant 1.000000e+00 : f32
    %15 = vector.broadcast %cst_7 : f32 to vector<512x1xf32>
    %16 = arith.divf %15, %14 : vector<512x1xf32>
    %c0_8 = arith.constant 0 : index
    %c0_9 = arith.constant 0 : index
    %17 = vector.load %arg4[%c0_8, %c0_9] : memref<512x1xf32, #tpu.memory_space<vmem>>, vector<512x1xf32>
    tpu.vector_store %arg4[%c0_8, %c0_9], %16 {strides = array<i32>} : memref<512x1xf32, #tpu.memory_space<vmem>>, vector<512x1xf32>,
    return
  }
  func.func @transform_0(%arg0: i32) -> (i32, i32) {
    %c0_i32 = arith.constant 0 : i32
    %c0_i32_0 = arith.constant 0 : i32
    return %arg0, %c0_i32 : i32, i32
  }
  func.func @transform_1(%arg0: i32) -> (i32, i32) {
    %c0_i32 = arith.constant 0 : i32
    %c0_i32_0 = arith.constant 0 : i32
    %c0_i32_1 = arith.constant 0 : i32
    return %c0_i32, %c0_i32_0 : i32, i32
  }
  func.func @transform_2(%arg0: i32) -> (i32, i32) {
    %c0_i32 = arith.constant 0 : i32
    %c0_i32_0 = arith.constant 0 : i32
    %c0_i32_1 = arith.constant 0 : i32
    return %c0_i32, %c0_i32_0 : i32, i32
  }
  func.func @transform_3(%arg0: i32) -> (i32, i32) {
    %c0_i32 = arith.constant 0 : i32
    %c0_i32_0 = arith.constant 0 : i32
    return %arg0, %c0_i32 : i32, i32
  }
}

</mosaic_0001>

<bundles_post_ra>
// kernel: decoder_forward.8
= control target key start
LH: loop header
LB: loop body
LE: loop exit
PB: predicated region body
PF: predicated region fallthrough
CT: control target
= control target key end

     0   :  { %8 = vsyncpa [#allocation3], 0  ;;  %s445_s12 = smov [#allocation2]   ;;  %s487_s0 = inlined_call_operand.vmem [shape: f32[2,8], index: 0, kind: input, shape index: {}]   ;;  %s488_s1 = inlined_call_operand.hbm [shape: f32[8,1024], index: 1, kind: input, shape index: {}]   ;;  %s489_s2 = inlined_call_operand.vmem [shape: f32[1,1024], index: 2, kind: input, shape index: {}]   ;;  %s490_s3 = inlined_call_operand.vmem [shape: f32[2,1024], index: 3, kind: output, shape index: {}]  }
   0x1   :  { %s17_s13 = sshll.u32 %s445_s12, 4  ;;  %s18_s13 = int_to_ptr.vmem [resolvable:$true] %s17_s13 }
   0x2   :  { %s431_s14 = scalar_lea.vmem %s18_s13, 1024  ;;  %p436_p1 = scmp.lt.s32.totalorder %s18_s13, %s18_s13 }
   0x3   :  { %p432_p0 = scmp.ne.s32.totalorder %s18_s13, %s431_s14  ;;  %p437_p2 = scmp.lt.s32.totalorder %s431_s14, %s431_s14 }
   0x5   :  { %p438_p3 = por %p437_p2, %p436_p1 }
   0x7   :  { %p439_p4 = pnand %p438_p3, %p432_p0 }
   0x9   :  { %442 = shalt.err (!%p439_p4)
}
   0xa   :  { %20 = dma.hbm_to_vmem [thread:$0]  %s488_s1, 1024, %s18_s13, [#allocation3]  }
   0xb   :  { %443 = dma.done.wait [#allocation3], 1024  }
   0xc   :  { %444 = vsyncadd [#allocation3], 4294966272  ;;  %v446_v0 = vmov 0.0   ;;  %v28_v1 = vld [vmem:[#allocation2 + $0x8] sm:$0xff]  ;;  %v30_v2 = vld [vmem:[#allocation2 + $0x18] sm:$0xff]  ;;  %vm77_vm0 = vcmask 64512   ;;  %v37_v10 = vlaneseq }
   0xd   :  { %145 = vmatprep.mubr.f32.mxu0 %v446_v0  ;;  %216 = vmatprep.mubr.f32.mxu1 %v446_v0  ;;  %v27_v3 = vld [vmem:[#allocation2] sm:$0xff]  ;;  %v29_v4 = vld [vmem:[#allocation2 + $0x10] sm:$0xff]  ;;  %v32_v6 = vld [vmem:[#allocation2 + $0x28] sm:$0xff]  ;;  %v447_v12 = vmov 1983009808  }
   0xe   :  { %111 = vmatprep.subr.mxu0 %v28_v1  ;;  %182 = vmatprep.subr.mxu1 %v30_v2  ;;  %v26_v5 = vld [vmem:[%s487_s0] sm:$0x3]  ;;  %v34_v7 = vld [vmem:[#allocation2 + $0x38] sm:$0xff]  ;;  %v33_v9 = vld [vmem:[#allocation2 + $0x30] sm:$0xff]  ;;  %v38_v11 = vshrl.u32 %v37_v10, 7  ;;  %v376_v13 = vunpack.c.l.s4 %v447_v12 }
   0xf   :  { %112 = vmatpush1.msra.mxu0 %v27_v3  ;;  %183 = vmatpush1.msra.mxu1 %v29_v4  ;;  %v31_v8 = vld [vmem:[#allocation2 + $0x20] sm:$0xff] }
  0x10   :  { %416 = vmatmul.mubr.msk.f32.vlgmr.msra.gmra.mxu0 %vm77_vm0, %v26_v5  ;;  %417 = vmatmul.mubr.msk.f32.vlgmr.msra.gmra.mxu1 %vm77_vm0, %v26_v5  ;;  %v39_v14 = vsub.s32 0, %v38_v11  ;;  %v47_v15 = vsub.s32 2, %v38_v11  ;;  %v43_v16 = vsub.s32 1, %v38_v11  ;;  %v51_v17 = vsub.s32 3, %v38_v11  ;;  %v35_v18 = vld [vmem:[%s489_s2] sm:$0xff] }
  0x11   :  { %253 = vmatprep.subr.mxu0 %v32_v6  ;;  %324 = vmatprep.subr.mxu1 %v34_v7  ;;  %v55_v19 = vsub.s32 4, %v38_v11  ;;  %v377_v20 = vunpack.c.0.s8 %v376_v13  ;;  %v63_v21 = vsub.s32 6, %v38_v11  ;;  %v59_v22 = vsub.s32 5, %v38_v11 }
  0x12   :  { %254 = vmatpush1.msra.mxu0 %v31_v8  ;;  %325 = vmatpush1.msra.mxu1 %v33_v9  ;;  %v67_v23 = vsub.s32 7, %v38_v11  ;;  %v40_v24 = vrot.slane %v35_v18, %v39_v14  ;;  %v48_v25 = vrot.slane %v35_v18, %v47_v15  ;;  %v44_v26 = vrot.slane %v35_v18, %v43_v16 }
  0x13   :  { %287 = vmatprep.mubr.f32.mxu0 %v446_v0  ;;  %358 = vmatprep.mubr.f32.mxu1 %v446_v0  ;;  %v52_v27 = vrot.slane %v35_v18, %v51_v17  ;;  %v56_v30 = vrot.slane %v35_v18, %v55_v19  ;;  %v380_v32 = vsub.s32 %v377_v20, %v38_v11 }
  0x14   :  { %418 = vmatmul.mubr.msk.f32.vlgmr.msra.gmra.mxu0 %vm77_vm0, %v26_v5  ;;  %419 = vmatmul.mubr.msk.f32.vlgmr.msra.gmra.mxu1 %vm77_vm0, %v26_v5  ;;  %v64_v34 = vrot.slane %v35_v18, %v63_v21  ;;  %v60_v35 = vrot.slane %v35_v18, %v59_v22  ;;  %v68_v36 = vrot.slane %v35_v18, %v67_v23 }
  0xd0   :  { %v147_v28 = vpop.f32.mrf.mxu0  ;;  %v218_v29 = vpop.f32.mrf.mxu1 }
  0xd1   :  { %v148_v37 = vadd.f32 %v147_v28, %v40_v24  ;;  %v219_v38 = vadd.f32 %v218_v29, %v48_v25 }
  0xd2   :  { %v149_v31 = vpop.f32.mrf.mxu0  ;;  %v220_v33 = vpop.f32.mrf.mxu1 }
  0xd3   :  { %v150_v39 = vadd.f32 %v149_v31, %v44_v26  ;;  %v221_v40 = vadd.f32 %v220_v33, %v52_v27 }
  0xd4   :  { %v289_v41 = vpop.f32.mrf.mxu0  ;;  %v360_v42 = vpop.f32.mrf.mxu1 }
  0xd5   :  { %v373_v43 = vcombine.low %v148_v37, %v150_v39  ;;  %v374_v44 = vcombine.low %v219_v38, %v221_v40  ;;  %v290_v45 = vadd.f32 %v289_v41, %v56_v30  ;;  %v361_v46 = vadd.f32 %v360_v42, %v64_v34 }
  0xd6   :  { %v291_v47 = vpop.f32.mrf.mxu0  ;;  %v362_v48 = vpop.f32.mrf.mxu1 }
  0xd7   :  { %v381_v49 = vrot.slane %v373_v43, %v380_v32  ;;  %v388_v50 = vrot.slane %v374_v44, %v380_v32  ;;  %v292_v51 = vadd.f32 %v291_v47, %v60_v35  ;;  %v363_v52 = vadd.f32 %v362_v48, %v68_v36 }
  0xd9   :  { %v389_v53 = vcombine.low %v381_v49, %v388_v50  ;;  %v390_v54 = vcombine.low %v290_v45, %v292_v51  ;;  %v391_v55 = vcombine.low %v361_v46, %v363_v52 }
  0xdb   :  { %409 = vst [vmem:[%s490_s3] sm:$0xff] %v389_v53  ;;  %v398_v56 = vrot.slane %v390_v54, %v380_v32  ;;  %v405_v57 = vrot.slane %v391_v55, %v380_v32 }
  0xdd   :  { %v406_v58 = vcombine.low %v398_v56, %v405_v57 }
  0xdf   :  { %410 = vst [vmem:[%s490_s3 + $0x8] sm:$0xff] %v406_v58 }
  0xe0   :  { %415 = vsyncpa [#allocation3], 1 }

// kernel: decoder_forward.10
= control target key start
LH: loop header
LB: loop body
LE: loop exit
PB: predicated region body
PF: predicated region fallthrough
CT: control target
= control target key end

     0   :  { %s193_s17 = smov 96   ;;  %s194_s18 = smov 32   ;;  %v196_v13 = vmov 1966171168   ;;  %v45_v15 = vlaneseq  ;;  %vm76_vm0 = vcmask 261120   ;;  %vm78_vm1 = vcmask 523264   ;;  %s258_s1 = inlined_call_operand.vmem [shape: f32[1,2,128], index: 1, kind: input, shape index: {}]   ;;  %s259_s2 = inlined_call_operand.vmem [shape: f32[1,32], index: 2, kind: input, shape index: {}]   ;;  %s260_s3 = inlined_call_operand.vmem [shape: f32[1,32], index: 3, kind: input, shape index: {}]   ;;  %s261_s0 = inlined_call_operand.vmem [shape: bf16[32,128], index: 0, kind: input, shape index: {}]   ;;  %s262_s4 = inlined_call_operand.vmem [shape: bf16[32,128], index: 4, kind: output, shape index: {}]  }
   0x1   :  { %v17_v0 = vld [vmem:[%s258_s1] sm:$0x3]  ;;  %s195_s19 = smov 64   ;;  %v43_v14 = vunpack.c.l.s4 %v196_v13  ;;  %vm80_vm2 = vcmask 785408   ;;  %v185_v37 = vld [vmem:[%s261_s0 + $0x8] sm:$0xff]  }
   0x2   :  { %19 = vrot.lane.b32.xlu0 %v17_v0, %s193_s17  ;;  %27 = vrot.lane.b32.xlu1 %v17_v0, %s194_s18  ;;  %v46_v17 = vshrl.u32 %v45_v15, 7  ;;  %v38_v22 = vld [vmem:[%s259_s2] sm:$0x1]  ;;  %v173_v43 = vunpack.c.l.bf16 %v185_v37  ;;  %v174_v44 = vunpack.c.h.bf16 %v185_v37 }
   0x3   :  { %v44_v16 = vunpack.c.0.s8 %v43_v14  ;;  %v59_v26 = vld [vmem:[%s260_s3] sm:$0x1] }
   0x4   :  { %v65_v24 = vsub.s32 0, %v46_v17  ;;  %v168_v34 = vld [vmem:[%s261_s0] sm:$0xff]  }
   0x5   :  { %v47_v18 = vsub.s32 %v44_v16, %v46_v17  ;;  %v169_v40 = vunpack.c.l.bf16 %v168_v34  ;;  %v170_v42 = vunpack.c.h.bf16 %v168_v34 }
   0x6   :  { %23 = vrot.lane.b32.xlu0 %v17_v0, %s195_s19 }
  0x74   :  { %v20_v1 = vpop.permute.xlu0 %19  ;;  %v28_v4 = vpop.permute.xlu1 %27 }
  0x75   :  { %v22_v2 = vadd.f32 %v20_v1, %v17_v0 }
  0x78   :  { %v24_v3 = vpop.permute.xlu0 %23 }
  0x79   :  { %v26_v5 = vadd.f32 %v24_v3, %v22_v2 }
  0x7b   :  { %v30_v6 = vadd.f32 %v28_v4, %v26_v5 }
  0x7d   :  { %v31_v7 = vmul.f32 0.0078125, %v30_v6 }
  0x7f   :  { %v32_v8 = vmul.f32 %v31_v7, %v31_v7 }
  0x81   :  { %v34_v9 = vrot.slane %v32_v8, 7 }
  0x83   :  { %v36_v10 = vsub.f32 %v31_v7, %v34_v9 }
  0x85   :  { %v37_v11 = vmax.f32 %v36_v10, 0.0 }
  0x87   :  { %v39_v12 = vadd.f32 1e-05, %v37_v11 }
  0x89   :  { %191 = vrsqrt.f32 %v39_v12 }
  0x96   :  { %v192_v19 = vpop.eup %191 }
  0x97   :  { %v48_v20 = vrot.slane %v192_v19, %v47_v18 }
  0x99   :  { %v49_v21 = vcombine.high %v48_v20, %v48_v20 }
  0x9b   :  { %v56_v23 = vrot.slane %v49_v21, %v47_v18 }
  0x9d   :  { %v58_v25 = vmul.f32 %v56_v23, %v38_v22 }
  0x9f   :  { %v60_v27 = vmul.f32 %v58_v25, %v31_v7  ;;  %v66_v28 = vrot.slane %v58_v25, %v65_v24 }
  0xa1   :  { %70 = vrot.lane.b32.xlu0 %v66_v28, %s195_s19  ;;  %67 = vrot.lane.b32.xlu1 %v66_v28, %s194_s18  ;;  %v61_v29 = vsub.f32 %v59_v26, %v60_v27 }
  0xa3   :  { %v86_v30 = vrot.slane %v61_v29, %v65_v24 }
  0xa5   :  { %73 = vrot.lane.b32.xlu1 %v66_v28, %s193_s17  ;;  %87 = vrot.lane.b32.xlu0 %v86_v30, %s194_s18 }
  0xa9   :  { %90 = vrot.lane.b32.xlu1 %v86_v30, %s195_s19  ;;  %93 = vrot.lane.b32.xlu0 %v86_v30, %s193_s17 }
 0x113   :  { %v71_v31 = vpop.permute.xlu0 %70  ;;  %v68_v32 = vpop.permute.xlu1 %67 }
 0x114   :  { %v77_v33 = vsel %vm76_vm0, %v58_v25, %v68_v32 }
 0x115   :  { %v79_v35 = vsel %vm78_vm1, %v77_v33, %v71_v31 }
 0x117   :  { %v74_v36 = vpop.permute.xlu1 %73  ;;  %v88_v38 = vpop.permute.xlu0 %87 }
 0x118   :  { %v81_v39 = vsel %vm80_vm2, %v79_v35, %v74_v36  ;;  %v96_v45 = vsel %vm76_vm0, %v61_v29, %v88_v38 }
 0x119   :  { %v110_v41 = vrot.slane %v81_v39, %v65_v24 }
 0x11b   :  { %v91_v46 = vpop.permute.xlu1 %90  ;;  %v94_v47 = vpop.permute.xlu0 %93  ;;  %v111_v49 = vmul.f32 %v169_v40, %v110_v41  ;;  %v112_v51 = vmul.f32 %v170_v42, %v110_v41  ;;  %v113_v52 = vmul.f32 %v173_v43, %v110_v41  ;;  %v114_v53 = vmul.f32 %v174_v44, %v110_v41 }
 0x11c   :  { %v97_v48 = vsel %vm78_vm1, %v96_v45, %v91_v46 }
 0x11d   :  { %v98_v50 = vsel %vm80_vm2, %v97_v48, %v94_v47 }
 0x11e   :  { %v118_v54 = vrot.slane %v98_v50, %v65_v24 }
 0x120   :  { %v119_v55 = vadd.f32 %v118_v54, %v111_v49  ;;  %v120_v56 = vadd.f32 %v118_v54, %v112_v51  ;;  %v121_v57 = vadd.f32 %v118_v54, %v113_v52  ;;  %v122_v58 = vadd.f32 %v118_v54, %v114_v53 }
 0x122   :  { %vm123_vm3 = vcmp.gt.f32.partialorder %v119_v55, 0.0  ;;  %vm124_vm4 = vcmp.gt.f32.partialorder %v120_v56, 0.0  ;;  %vm125_vm5 = vcmp.gt.f32.partialorder %v121_v57, 0.0  ;;  %vm126_vm6 = vcmp.gt.f32.partialorder %v122_v58, 0.0 }
 0x123   :  { %v127_v59 = vmul.f32 0.01, %v119_v55  ;;  %v128_v60 = vmul.f32 0.01, %v120_v56  ;;  %v129_v61 = vmul.f32 0.01, %v121_v57 }
 0x124   :  { %v130_v62 = vmul.f32 0.01, %v122_v58 }
 0x125   :  { %v131_v63 = vsel %vm123_vm3, %v119_v55, %v127_v59  ;;  %v132_v0 = vsel %vm124_vm4, %v120_v56, %v128_v60  ;;  %v133_v1 = vsel %vm125_vm5, %v121_v57, %v129_v61 }
 0x126   :  { %v134_v2 = vsel %vm126_vm6, %v122_v58, %v130_v62  ;;  %v178_v3 = vpack.c.bf16 %v132_v0, %v131_v63 }
 0x127   :  { %v183_v4 = vpack.c.bf16 %v134_v2, %v133_v1 }
 0x128   :  { %179 = vst [vmem:[%s262_s4] sm:$0xff] %v178_v3  }
 0x129   :  { %186 = vst [vmem:[%s262_s4 + $0x8] sm:$0xff] %v183_v4  }

// kernel: decoder_forward.9
= control target key start
LH: loop header
LB: loop body
LE: loop exit
PB: predicated region body
PF: predicated region fallthrough
CT: control target
= control target key end

     0   :  { %vm374_vm0 = vcmask 523264   ;;  %vm570_vm1 = vcmask 1040384   ;;  %s948_s1 = inlined_call_operand.vmem [shape: bf16[576,128], index: 1, kind: input, shape index: {}]   ;;  %s949_s0 = inlined_call_operand.vmem [shape: bf16[32,576], index: 0, kind: input, shape index: {}]   ;;  %s950_s2 = inlined_call_operand.vmem [shape: f32[1,128], index: 2, kind: input, shape index: {}]   ;;  %s951_s3 = inlined_call_operand.vmem [shape: bf16[32,128], index: 3, kind: output, shape index: {0}]   ;;  %s952_s4 = inlined_call_operand.vmem [shape: f32[1,2,128], index: 4, kind: output, shape index: {1}]  }
   0x1   :  { %v723_v0 = vld [vmem:[%s948_s1 + $0x78] sm:$0xff]   ;;  %v727_v4 = vld [vmem:[%s948_s1 + $0x70] sm:$0xff]   ;;  %v731_v8 = vld [vmem:[%s948_s1 + $0x68] sm:$0xff]  }
   0x2   :  { %v724_v1 = vld [vmem:[%s948_s1 + $0x38] sm:$0xff]   ;;  %649 = vmatprep.subr.bf16.mxu0 %v723_v0  ;;  %v728_v5 = vld [vmem:[%s948_s1 + $0x30] sm:$0xff]   ;;  %v732_v9 = vld [vmem:[%s948_s1 + $0x28] sm:$0xff]  }
   0x3   :  { %v725_v2 = vld [vmem:[%s948_s1 + $0xf8] sm:$0xff]   ;;  %650 = vmatpush3.bf16.msra.mxu0 %v724_v1  ;;  %v729_v6 = vld [vmem:[%s948_s1 + $0xf0] sm:$0xff]   ;;  %v733_v10 = vld [vmem:[%s948_s1 + $0xe8] sm:$0xff]  }
   0x4   :  { %v726_v3 = vld [vmem:[%s948_s1 + $0xb8] sm:$0xff]   ;;  %677 = vmatprep.subr.bf16.mxu1 %v725_v2  ;;  %651 = vmatprep.subr.bf16.mxu0 %v727_v4  ;;  %v730_v7 = vld [vmem:[%s948_s1 + $0xb0] sm:$0xff]   ;;  %v734_v11 = vld [vmem:[%s948_s1 + $0xa8] sm:$0xff]  }
   0x5   :  { %678 = vmatpush3.bf16.msra.mxu1 %v726_v3  ;;  %v735_v12 = vld [vmem:[%s948_s1 + $0x60] sm:$0xff]   ;;  %v739_v16 = vld [vmem:[%s948_s1 + $0x58] sm:$0xff]   ;;  %v743_v20 = vld [vmem:[%s948_s1 + $0x50] sm:$0xff]  }
   0x6   :  { %679 = vmatprep.subr.bf16.mxu1 %v729_v6  ;;  %v736_v13 = vld [vmem:[%s948_s1 + $0x20] sm:$0xff]   ;;  %v740_v17 = vld [vmem:[%s948_s1 + $0x18] sm:$0xff]   ;;  %v744_v21 = vld [vmem:[%s948_s1 + $0x10] sm:$0xff]  }
   0x7   :  { %652 = vmatpush3.bf16.msra.mxu0 %v728_v5  ;;  %v737_v14 = vld [vmem:[%s948_s1 + $0xe0] sm:$0xff]   ;;  %v741_v18 = vld [vmem:[%s948_s1 + $0xd8] sm:$0xff]   ;;  %v745_v22 = vld [vmem:[%s948_s1 + $0xd0] sm:$0xff]  }
   0x8   :  { %653 = vmatprep.subr.bf16.mxu0 %v731_v8  ;;  %v738_v15 = vld [vmem:[%s948_s1 + $0xa0] sm:$0xff]   ;;  %v742_v19 = vld [vmem:[%s948_s1 + $0x98] sm:$0xff]   ;;  %v746_v23 = vld [vmem:[%s948_s1 + $0x90] sm:$0xff]  }
   0x9   :  { %680 = vmatpush3.bf16.msra.mxu1 %v730_v7  ;;  %v747_v24 = vld [vmem:[%s948_s1 + $0x48] sm:$0xff]   ;;  %v751_v28 = vld [vmem:[%s948_s1 + $0x40] sm:$0xff]   ;;  %v758_v34 = vld [vmem:[%s948_s1 + $0x118] sm:$0xff]  }
   0xa   :  { %681 = vmatprep.subr.bf16.mxu1 %v733_v10  ;;  %v748_v25 = vld [vmem:[%s948_s1 + $0x8] sm:$0xff]   ;;  %v752_v29 = vld [vmem:[%s948_s1] sm:$0xff]   ;;  %v762_v37 = vld [vmem:[%s948_s1 + $0x110] sm:$0xff]  }
   0xb   :  { %654 = vmatpush3.bf16.msra.mxu0 %v732_v9  ;;  %v749_v26 = vld [vmem:[%s948_s1 + $0xc8] sm:$0xff]   ;;  %v753_v30 = vld [vmem:[%s948_s1 + $0xc0] sm:$0xff]  }
   0xc   :  { %655 = vmatprep.subr.bf16.mxu0 %v735_v12  ;;  %v750_v27 = vld [vmem:[%s948_s1 + $0x88] sm:$0xff]   ;;  %v754_v31 = vld [vmem:[%s949_s0] ss:$20 sps:$4 sm:$0xff]   ;;  %v756_v32 = vld [vmem:[%s949_s0 + $0x4] ss:$20 sps:$4 sm:$0xff]  }
   0xd   :  { %682 = vmatpush3.bf16.msra.mxu1 %v734_v11  ;;  %v757_v33 = vld [vmem:[%s948_s1 + $0x80] sm:$0xff]   ;;  %413 = vmatprep.mubr.bf16.mxu0 %v756_v32  ;;  %v759_v35 = vld [vmem:[%s949_s0 + $0x8] ss:$20 sps:$4 sm:$0xff]   ;;  %v772_v45 = vld [vmem:[%s949_s0 + $0x38] ss:$20 sps:$4 sm:$0xff]  }
   0xe   :  { %683 = vmatprep.subr.bf16.mxu1 %v737_v14  ;;  %v761_v36 = vld [vmem:[%s949_s0 + $0xc] ss:$20 sps:$4 sm:$0xff]   ;;  %v765_v39 = vld [vmem:[%s949_s0 + $0x28] ss:$20 sps:$4 sm:$0xff]   ;;  %v769_v42 = vld [vmem:[%s949_s0 + $0x30] ss:$20 sps:$4 sm:$0xff]  }
   0xf   :  { %656 = vmatpush3.bf16.msra.mxu0 %v736_v13  ;;  %462 = vmatprep.mubr.bf16.mxu1 %v761_v36  ;;  %v763_v38 = vld [vmem:[%s949_s0 + $0x2c] ss:$20 sps:$4 sm:$0xff]   ;;  %v767_v41 = vld [vmem:[%s949_s0 + $0x34] ss:$20 sps:$4 sm:$0xff]   ;;  %v771_v44 = vld [vmem:[%s949_s0 + $0x10] ss:$20 sps:$4 sm:$0xff]  }
  0x10   :  { %657 = vmatprep.subr.bf16.mxu0 %v739_v16  ;;  %v766_v40 = vld [vmem:[%s948_s1 + $0x108] sm:$0xff]   ;;  %v770_v43 = vld [vmem:[%s948_s1 + $0x100] sm:$0xff]  }
  0x11   :  { %684 = vmatpush3.bf16.msra.mxu1 %v738_v15  ;;  %v581_v60 = vld [vmem:[%s950_s2] ss:$0 sm:$0xff] }
  0x12   :  { %685 = vmatprep.subr.bf16.mxu1 %v741_v18 }
  0x13   :  { %658 = vmatpush3.bf16.msra.mxu0 %v740_v17 }
  0x14   :  { %659 = vmatprep.subr.bf16.mxu0 %v743_v20 }
  0x15   :  { %686 = vmatpush3.bf16.msra.mxu1 %v742_v19 }
  0x16   :  { %687 = vmatprep.subr.bf16.mxu1 %v745_v22 }
  0x17   :  { %660 = vmatpush3.bf16.msra.mxu0 %v744_v21 }
  0x18   :  { %661 = vmatprep.subr.bf16.mxu0 %v747_v24 }
  0x19   :  { %688 = vmatpush3.bf16.msra.mxu1 %v746_v23 }
  0x1a   :  { %689 = vmatprep.subr.bf16.mxu1 %v749_v26 }
  0x1b   :  { %662 = vmatpush3.bf16.msra.mxu0 %v748_v25 }
  0x1c   :  { %663 = vmatprep.subr.bf16.mxu0 %v751_v28 }
  0x1d   :  { %690 = vmatpush3.bf16.msra.mxu1 %v750_v27 }
  0x1e   :  { %691 = vmatprep.subr.bf16.mxu1 %v753_v30 }
  0x1f   :  { %664 = vmatpush3.bf16.msra.mxu0 %v752_v29 }
  0x20   :  { %711 = vmatprep.subr.bf16.mxu0 %v758_v34 }
  0x21   :  { %692 = vmatpush3.bf16.msra.mxu1 %v757_v33 }
  0x22   :  { %414 = vmatmul.mubr.bf16.vlgmr.msra.gmra.mxu0 %v754_v31 }
  0x23   :  { %712 = vmatpush3.bf16.msra.mxu0 %v758_v34  ;;  %421 = vmatprep.mubr.bf16.mxu0 %v763_v38 }
  0x24   :  { %463 = vmatmul.mubr.bf16.vlgmr.msra.gmra.mxu1 %v759_v35  ;;  %713 = vmatprep.subr.bf16.mxu0 %v762_v37 }
  0x25   :  { %470 = vmatprep.mubr.bf16.mxu1 %v767_v41 }
  0x27   :  { %714 = vmatpush3.bf16.msra.mxu0 %v762_v37 }
  0x28   :  { %715 = vmatprep.subr.bf16.mxu0 %v766_v40 }
  0x2a   :  { %422 = vmatmul.mubr.bf16.gmra.mxu0 %v765_v39 }
  0x2b   :  { %719 = vmatprep.mubr.msk.bf16.mxu0 %vm374_vm0, %v771_v44  ;;  %716 = vmatpush3.bf16.msra.mxu0 %v766_v40 }
  0x2c   :  { %471 = vmatmul.mubr.bf16.gmra.mxu1 %v769_v42  ;;  %717 = vmatprep.subr.bf16.mxu0 %v770_v43 }
  0x2f   :  { %718 = vmatpush3.bf16.msra.mxu0 %v770_v43 }
  0x32   :  { %720 = vmatmul.mubr.msk.bf16.vlgmr.msra.gmra.mxu0 %vm374_vm0, %v772_v45 }
  0xe2   :  { %v665_v46 = vpop.f32.mrf.mxu0 }
  0xe4   :  { %v666_v47 = vpop.f32.mrf.mxu0  ;;  %v693_v48 = vpop.f32.mrf.mxu1 }
  0xe5   :  { %v667_v58 = vadd.f32 %v666_v47, %v665_v46 }
  0xe6   :  { %v668_v49 = vpop.f32.mrf.mxu0  ;;  %v694_v50 = vpop.f32.mrf.mxu1 }
  0xe7   :  { %v416_v4 = vadd.f32 %v667_v58, %v581_v60  ;;  %v695_v5 = vadd.f32 %v694_v50, %v693_v48 }
  0xe8   :  { %v669_v51 = vpop.f32.mrf.mxu0  ;;  %v696_v52 = vpop.f32.mrf.mxu1 }
  0xe9   :  { %v670_v62 = vadd.f32 %v669_v51, %v668_v49  ;;  %v465_v14 = vadd.f32 %v695_v5, %v416_v4 }
  0xea   :  { %v671_v53 = vpop.f32.mrf.mxu0  ;;  %v697_v54 = vpop.f32.mrf.mxu1 }
  0xeb   :  { %v419_v9 = vadd.f32 %v670_v62, %v581_v60  ;;  %v698_v10 = vadd.f32 %v697_v54, %v696_v52 }
  0xec   :  { %v672_v55 = vpop.f32.mrf.mxu0  ;;  %v699_v57 = vpop.f32.mrf.mxu1 }
  0xed   :  { %v673_v56 = vadd.f32 %v672_v55, %v671_v53  ;;  %v468_v20 = vadd.f32 %v698_v10, %v419_v9 }
  0xee   :  { %v674_v59 = vpop.f32.mrf.mxu0  ;;  %v700_v61 = vpop.f32.mrf.mxu1 }
  0xef   :  { %v424_v63 = vadd.f32 %v673_v56, %v581_v60  ;;  %v701_v0 = vadd.f32 %v700_v61, %v699_v57 }
  0xf0   :  { %v675_v1 = vpop.f32.mrf.mxu0  ;;  %v702_v3 = vpop.f32.mrf.mxu1 }
  0xf1   :  { %v676_v2 = vadd.f32 %v675_v1, %v674_v59  ;;  %v473_v12 = vadd.f32 %v701_v0, %v424_v63 }
  0xf2   :  { %v703_v7 = vpop.f32.mrf.mxu1  ;;  %v721_v8 = vpop.f32.mrf.mxu0 }
  0xf3   :  { %v427_v6 = vadd.f32 %v676_v2, %v581_v60  ;;  %v704_v11 = vadd.f32 %v703_v7, %v702_v3  ;;  %v522_v17 = vadd.f32 %v721_v8, %v473_v12 }
  0xf4   :  { %v513_v13 = vpop.f32.mrf.mxu0 }
  0xf5   :  { %v476_v15 = vadd.f32 %v704_v11, %v427_v6  ;;  %v514_v18 = vadd.f32 %v513_v13, %v465_v14  ;;  %v559_v28 = vmul.f32 %v522_v17, %v522_v17 }
  0xf6   :  { %v722_v16 = vpop.f32.mrf.mxu0 }
  0xf7   :  { %v525_v19 = vadd.f32 %v722_v16, %v476_v15  ;;  %v557_v24 = vmul.f32 %v514_v18, %v514_v18 }
  0xf8   :  { %v516_v21 = vpop.f32.mrf.mxu0 }
  0xf9   :  { %v646_v22 = vpack.c.bf16 %v525_v19, %v522_v17  ;;  %v517_v23 = vadd.f32 %v516_v21, %v468_v20  ;;  %v560_v31 = vmul.f32 %v525_v19, %v525_v19 }
  0xfb   :  { %648 = vst [vmem:[%s951_s3 + $0x8] sm:$0xff] %v646_v22   ;;  %v641_v25 = vpack.c.bf16 %v517_v23, %v514_v18  ;;  %v548_v26 = vadd.f32 %v517_v23, %v514_v18  ;;  %v558_v27 = vmul.f32 %v517_v23, %v517_v23 }
  0xfd   :  { %642 = vst [vmem:[%s951_s3] sm:$0xff] %v641_v25   ;;  %v549_v29 = vadd.f32 %v548_v26, %v522_v17  ;;  %v561_v30 = vadd.f32 %v558_v27, %v557_v24 }
  0xff   :  { %v550_v32 = vadd.f32 %v549_v29, %v525_v19  ;;  %v562_v33 = vadd.f32 %v561_v30, %v559_v28 }
 0x101   :  { %v551_v34 = vrot.slane %v550_v32, 4  ;;  %v563_v35 = vadd.f32 %v562_v33, %v560_v31 }
 0x103   :  { %v552_v36 = vadd.f32 %v551_v34, %v550_v32  ;;  %v564_v37 = vrot.slane %v563_v35, 4 }
 0x105   :  { %v553_v38 = vrot.slane %v552_v36, 2  ;;  %v565_v39 = vadd.f32 %v564_v37, %v563_v35 }
 0x107   :  { %v554_v40 = vadd.f32 %v553_v38, %v552_v36  ;;  %v566_v41 = vrot.slane %v565_v39, 2 }
 0x109   :  { %v555_v42 = vrot.slane %v554_v40, 1  ;;  %v567_v43 = vadd.f32 %v566_v41, %v565_v39 }
 0x10b   :  { %v568_v44 = vrot.slane %v567_v43, 1  ;;  %v556_v45 = vadd.f32 %v555_v42, %v554_v40 }
 0x10d   :  { %v569_v46 = vadd.f32 %v568_v44, %v567_v43 }
 0x10f   :  { %v571_v47 = vsel %vm570_vm1, %v556_v45, %v569_v46 }
 0x110   :  { %572 = vst [vmem:[%s952_s4] sm:$0x3] %v571_v47 }

// kernel: decoder_forward.11
= control target key start
LH: loop header
LB: loop body
LE: loop exit
PB: predicated region body
PF: predicated region fallthrough
CT: control target
= control target key end

     0   :  { %vm320_vm0 = vcmask 261120   ;;  %vm603_vm1 = vcmask 519168   ;;  %vm620_vm2 = vcmask 523264   ;;  %vm711_vm3 = vcmask 1040384   ;;  %s1282_s1 = inlined_call_operand.vmem [shape: bf16[288,64], index: 1, kind: input, shape index: {}]   ;;  %s1283_s0 = inlined_call_operand.vmem [shape: bf16[128,288], index: 0, kind: input, shape index: {}]   ;;  %s1284_s2 = inlined_call_operand.vmem [shape: f32[1,64], index: 2, kind: input, shape index: {}]   ;;  %s1285_s3 = inlined_call_operand.vmem [shape: bf16[128,64], index: 3, kind: output, shape index: {0}]   ;;  %s1286_s4 = inlined_call_operand.vmem [shape: f32[1,2,64], index: 4, kind: output, shape index: {1}]  }
   0x1   :  { %v916_v0 = vld [vmem:[%s1282_s1 + $0x78] sm:$0xff]   ;;  %v918_v2 = vld [vmem:[%s1282_s1 + $0x70] sm:$0xff]   ;;  %v920_v4 = vld [vmem:[%s1282_s1 + $0x68] sm:$0xff]   ;;  %vm713_vm4 = vcmask 517120  }
   0x2   :  { %v917_v1 = vld [vmem:[%s1282_s1 + $0x38] sm:$0xff]   ;;  %806 = vmatprep.subr.bf16.mxu0 %v916_v0  ;;  %900 = vmatprep.subr.bf16.mxu1 %v916_v0  ;;  %v919_v3 = vld [vmem:[%s1282_s1 + $0x30] sm:$0xff]   ;;  %v921_v5 = vld [vmem:[%s1282_s1 + $0x28] sm:$0xff]  }
   0x3   :  { %807 = vmatpush3.bf16.msra.mxu0 %v917_v1  ;;  %908 = vmatpush3.bf16.msra.mxu1 %v917_v1  ;;  %v922_v6 = vld [vmem:[%s1282_s1 + $0x60] sm:$0xff]   ;;  %v924_v8 = vld [vmem:[%s1282_s1 + $0x58] sm:$0xff]   ;;  %v926_v10 = vld [vmem:[%s1282_s1 + $0x50] sm:$0xff]  }
   0x4   :  { %808 = vmatprep.subr.bf16.mxu0 %v918_v2  ;;  %901 = vmatprep.subr.bf16.mxu1 %v918_v2  ;;  %v923_v7 = vld [vmem:[%s1282_s1 + $0x20] sm:$0xff]   ;;  %v925_v9 = vld [vmem:[%s1282_s1 + $0x18] sm:$0xff]   ;;  %v927_v13 = vld [vmem:[%s1282_s1 + $0x10] sm:$0xff]  }
   0x5   :  { %v934_v11 = vld [vmem:[%s1283_s0 + $0x4] ss:$12 sps:$4 sm:$0xff]   ;;  %v937_v12 = vld [vmem:[%s1283_s0 + $0x94] ss:$12 sps:$4 sm:$0xff]   ;;  %v928_v14 = vld [vmem:[%s1282_s1 + $0x48] sm:$0xff]  }
   0x6   :  { %377 = vmatprep.mubr.bf16.mxu0 %v934_v11  ;;  %425 = vmatprep.mubr.bf16.mxu1 %v937_v12  ;;  %v929_v15 = vld [vmem:[%s1282_s1 + $0x8] sm:$0xff]   ;;  %v930_v16 = vld [vmem:[%s1282_s1 + $0x40] sm:$0xff]   ;;  %v935_v20 = vld [vmem:[%s1283_s0 + $0x90] ss:$12 sps:$4 sm:$0xff]  }
   0x7   :  { %809 = vmatpush3.bf16.msra.mxu0 %v919_v3  ;;  %909 = vmatpush3.bf16.msra.mxu1 %v919_v3  ;;  %v931_v17 = vld [vmem:[%s1282_s1] sm:$0xff]   ;;  %v942_v19 = vld [vmem:[%s1282_s1 + $0x88] sm:$0xff]   ;;  %v949_v28 = vld [vmem:[%s1283_s0 + $0x30] ss:$12 sps:$4 sm:$0xff]  }
   0x8   :  { %810 = vmatprep.subr.bf16.mxu0 %v920_v4  ;;  %902 = vmatprep.subr.bf16.mxu1 %v920_v4  ;;  %v932_v18 = vld [vmem:[%s1283_s0] ss:$12 sps:$4 sm:$0xff]   ;;  %v938_v21 = vld [vmem:[%s1283_s0 + $0x1c] ss:$12 sps:$4 sm:$0xff]   ;;  %v943_v24 = vld [vmem:[%s1283_s0 + $0x18] ss:$12 sps:$4 sm:$0xff]  }
   0x9   :  { %v940_v22 = vld [vmem:[%s1283_s0 + $0xac] ss:$12 sps:$4 sm:$0xff]   ;;  %v945_v23 = vld [vmem:[%s1282_s1 + $0x80] sm:$0xff]   ;;  %v944_v25 = vld [vmem:[%s1283_s0 + $0xa8] ss:$12 sps:$4 sm:$0xff]  }
   0xa   :  { %v946_v26 = vld [vmem:[%s1283_s0 + $0x34] ss:$12 sps:$4 sm:$0xff]   ;;  %v951_v30 = vld [vmem:[%s1283_s0 + $0x4c] ss:$12 sps:$4 sm:$0xff]   ;;  %v955_v33 = vld [vmem:[%s1283_s0 + $0x50] ss:$12 sps:$4 sm:$0xff]  }
   0xb   :  { %811 = vmatpush3.bf16.msra.mxu0 %v921_v5  ;;  %910 = vmatpush3.bf16.msra.mxu1 %v921_v5  ;;  %v948_v27 = vld [vmem:[%s1283_s0 + $0x8] ss:$12 sps:$4 sm:$0xff]   ;;  %v950_v29 = vld [vmem:[%s1283_s0 + $0x20] ss:$12 sps:$4 sm:$0xff]   ;;  %v953_v31 = vld [vmem:[%s1283_s0 + $0x38] ss:$12 sps:$4 sm:$0xff]  }
   0xc   :  { %812 = vmatprep.subr.bf16.mxu0 %v922_v6  ;;  %903 = vmatprep.subr.bf16.mxu1 %v922_v6  ;;  %v954_v32 = vld [vmem:[%s1283_s0 + $0x48] ss:$12 sps:$4 sm:$0xff]   ;;  %v956_v34 = vld [vmem:[%s1283_s0 + $0x64] ss:$12 sps:$4 sm:$0xff]   ;;  %v959_v36 = vld [vmem:[%s1283_s0 + $0x60] ss:$12 sps:$4 sm:$0xff]  }
   0xd   :  { %v958_v35 = vld [vmem:[%s1283_s0 + $0x68] ss:$12 sps:$4 sm:$0xff]   ;;  %v960_v37 = vld [vmem:[%s1283_s0 + $0x80] ss:$12 sps:$4 sm:$0xff]   ;;  %v963_v39 = vld [vmem:[%s1283_s0 + $0x98] ss:$12 sps:$4 sm:$0xff]  }
   0xe   :  { %v961_v38 = vld [vmem:[%s1283_s0 + $0x7c] ss:$12 sps:$4 sm:$0xff]   ;;  %v964_v40 = vld [vmem:[%s1283_s0 + $0x78] ss:$12 sps:$4 sm:$0xff]   ;;  %v1144_v60 = vld [vmem:[%s1284_s2] ss:$0 sm:$0xff] }
   0xf   :  { %813 = vmatpush3.bf16.msra.mxu0 %v923_v7  ;;  %911 = vmatpush3.bf16.msra.mxu1 %v923_v7  ;;  %v965_v41 = vld [vmem:[%s1283_s0 + $0xb0] ss:$12 sps:$4 sm:$0xff]  }
  0x10   :  { %814 = vmatprep.subr.bf16.mxu0 %v924_v8  ;;  %904 = vmatprep.subr.bf16.mxu1 %v924_v8 }
  0x13   :  { %815 = vmatpush3.bf16.msra.mxu0 %v925_v9  ;;  %912 = vmatpush3.bf16.msra.mxu1 %v925_v9 }
  0x14   :  { %816 = vmatprep.subr.bf16.mxu0 %v926_v10  ;;  %905 = vmatprep.subr.bf16.mxu1 %v926_v10 }
  0x17   :  { %817 = vmatpush3.bf16.msra.mxu0 %v927_v13  ;;  %913 = vmatpush3.bf16.msra.mxu1 %v927_v13 }
  0x18   :  { %818 = vmatprep.subr.bf16.mxu0 %v928_v14  ;;  %906 = vmatprep.subr.bf16.mxu1 %v928_v14 }
  0x1b   :  { %819 = vmatpush3.bf16.msra.mxu0 %v929_v15  ;;  %914 = vmatpush3.bf16.msra.mxu1 %v929_v15 }
  0x1c   :  { %820 = vmatprep.subr.bf16.mxu0 %v930_v16  ;;  %907 = vmatprep.subr.bf16.mxu1 %v930_v16 }
  0x1f   :  { %821 = vmatpush3.bf16.msra.mxu0 %v931_v17  ;;  %915 = vmatpush3.bf16.msra.mxu1 %v931_v17 }
  0x20   :  { %880 = vmatprep.subr.bf16.mxu1 %v942_v19 }
  0x22   :  { %378 = vmatmul.mubr.bf16.vlgmr.msra.gmra.mxu0 %v932_v18  ;;  %426 = vmatmul.mubr.bf16.vlgmr.msra.gmra.mxu1 %v935_v20 }
  0x23   :  { %385 = vmatprep.mubr.bf16.mxu0 %v938_v21  ;;  %433 = vmatprep.mubr.bf16.mxu1 %v940_v22 }
  0x24   :  { %881 = vmatpush3.bf16.msra.mxu1 %v942_v19 }
  0x25   :  { %882 = vmatprep.subr.bf16.mxu1 %v945_v23 }
  0x28   :  { %883 = vmatpush3.bf16.msra.mxu1 %v945_v23 }
  0x2a   :  { %386 = vmatmul.mubr.bf16.gmra.mxu0 %v943_v24  ;;  %434 = vmatmul.mubr.bf16.gmra.mxu1 %v944_v25 }
  0x2b   :  { %393 = vmatprep.mubr.bf16.mxu0 %v946_v26  ;;  %884 = vmatprep.mubr.msk.bf16.mxu1 %vm320_vm0, %v948_v27 }
  0x32   :  { %394 = vmatmul.mubr.bf16.gmra.mxu0 %v949_v28  ;;  %885 = vmatmul.mubr.msk.bf16.vlgmr.msra.gmra.mxu1 %vm320_vm0, %v950_v29 }
  0x33   :  { %401 = vmatprep.mubr.bf16.mxu0 %v951_v30  ;;  %888 = vmatprep.mubr.msk.bf16.mxu1 %vm320_vm0, %v953_v31 }
  0x3a   :  { %402 = vmatmul.mubr.bf16.gmra.mxu0 %v954_v32  ;;  %889 = vmatmul.mubr.msk.bf16.gmra.mxu1 %vm320_vm0, %v955_v33 }
  0x3b   :  { %409 = vmatprep.mubr.bf16.mxu0 %v956_v34  ;;  %892 = vmatprep.mubr.msk.bf16.mxu1 %vm320_vm0, %v958_v35 }
  0x42   :  { %410 = vmatmul.mubr.bf16.gmra.mxu0 %v959_v36  ;;  %893 = vmatmul.mubr.msk.bf16.gmra.mxu1 %vm320_vm0, %v960_v37 }
  0x43   :  { %417 = vmatprep.mubr.bf16.mxu0 %v961_v38  ;;  %896 = vmatprep.mubr.msk.bf16.mxu1 %vm320_vm0, %v963_v39 }
  0x4a   :  { %418 = vmatmul.mubr.bf16.gmra.mxu0 %v964_v40  ;;  %897 = vmatmul.mubr.msk.bf16.gmra.mxu1 %vm320_vm0, %v965_v41 }
  0xe2   :  { %v822_v42 = vpop.f32.mrf.mxu0  ;;  %v1125_v43 = vpop.f32.mrf.mxu1 }
  0xe4   :  { %v823_v44 = vpop.f32.mrf.mxu0  ;;  %v1127_v45 = vpop.f32.mrf.mxu1 }
  0xe5   :  { %v824_v57 = vadd.f32 %v823_v44, %v822_v42 }
  0xe6   :  { %v825_v46 = vpop.f32.mrf.mxu0  ;;  %v1129_v47 = vpop.f32.mrf.mxu1 }
  0xe7   :  { %v380_v4 = vadd.f32 %v824_v57, %v1144_v60 }
  0xe8   :  { %v826_v48 = vpop.f32.mrf.mxu0  ;;  %v1131_v49 = vpop.f32.mrf.mxu1 }
  0xe9   :  { %v827_v2 = vadd.f32 %v826_v48, %v825_v46 }
  0xea   :  { %v828_v50 = vpop.f32.mrf.mxu0  ;;  %v1133_v51 = vpop.f32.mrf.mxu1 }
  0xeb   :  { %v383_v15 = vadd.f32 %v827_v2, %v1144_v60 }
  0xec   :  { %v829_v52 = vpop.f32.mrf.mxu0  ;;  %v1135_v53 = vpop.f32.mrf.mxu1 }
  0xed   :  { %v830_v54 = vadd.f32 %v829_v52, %v828_v50 }
  0xee   :  { %v831_v55 = vpop.f32.mrf.mxu0  ;;  %v1137_v56 = vpop.f32.mrf.mxu1 }
  0xef   :  { %v388_v62 = vadd.f32 %v830_v54, %v1144_v60 }
  0xf0   :  { %v832_v58 = vpop.f32.mrf.mxu0  ;;  %v1139_v59 = vpop.f32.mrf.mxu1 }
  0xf1   :  { %v833_v61 = vadd.f32 %v832_v58, %v831_v55 }
  0xf2   :  { %v834_v63 = vpop.f32.mrf.mxu0  ;;  %v886_v0 = vpop.f32.mrf.mxu1 }
  0xf3   :  { %v485_v1 = vadd.f32 %v886_v0, %v388_v62  ;;  %v391_v7 = vadd.f32 %v833_v61, %v1144_v60 }
  0xf4   :  { %v835_v3 = vpop.f32.mrf.mxu0  ;;  %v476_v5 = vpop.f32.mrf.mxu1 }
  0xf5   :  { %v792_v6 = vpack.c.bf16 %v485_v1, %v485_v1  ;;  %v477_v8 = vadd.f32 %v476_v5, %v380_v4  ;;  %v836_v11 = vadd.f32 %v835_v3, %v834_v63  ;;  %v660_v22 = vmul.f32 %v485_v1, %v485_v1 }
  0xf6   :  { %v837_v9 = vpop.f32.mrf.mxu0  ;;  %v887_v10 = vpop.f32.mrf.mxu1  ;;  %v624_v34 = vsel %vm620_vm2, %v485_v1, 0.0 }
  0xf7   :  { %606 = vst.msk [vmem:[%s1285_s3 + $0x8] sm:$0xf] %vm603_vm1, %v792_v6  ;;  %v488_v12 = vadd.f32 %v887_v10, %v391_v7  ;;  %v790_v13 = vpack.c.bf16 %v477_v8, %v477_v8  ;;  %v658_v18 = vmul.f32 %v477_v8, %v477_v8  ;;  %v621_v23 = vsel %vm620_vm2, %v477_v8, 0.0 }
  0xf8   :  { %v838_v14 = vpop.f32.mrf.mxu0  ;;  %v479_v16 = vpop.f32.mrf.mxu1  ;;  %v396_v24 = vadd.f32 %v836_v11, %v1144_v60  ;;  %v677_v46 = vsel %vm620_vm2, %v660_v22, 0.0  ;;  %v860_v10 = vadd.f32 %v1127_v45, %v1125_v43  ;;  %v866_v11 = vadd.f32 %v1135_v53, %v1133_v51 }
  0xf9   :  { %v793_v17 = vpack.c.bf16 %v488_v12, %v488_v12  ;;  %604 = vst.msk [vmem:[%s1285_s3] sm:$0xf] %vm603_vm1, %v790_v13  ;;  %v480_v19 = vadd.f32 %v479_v16, %v383_v15  ;;  %v839_v25 = vadd.f32 %v838_v14, %v837_v9  ;;  %v674_v35 = vsel %vm620_vm2, %v658_v18, 0.0 }
  0xfa   :  { %v840_v20 = vpop.f32.mrf.mxu0  ;;  %v890_v21 = vpop.f32.mrf.mxu1  ;;  %v661_v36 = vmul.f32 %v488_v12, %v488_v12  ;;  %v626_v48 = vsel %vm620_vm2, %v488_v12, 0.0 }
  0xfb   :  { %607 = vst.msk [vmem:[%s1285_s3 + $0xc] sm:$0xf] %vm603_vm1, %v793_v17  ;;  %v791_v26 = vpack.c.bf16 %v480_v19, %v480_v19  ;;  %v622_v27 = vsel %vm620_vm2, %v480_v19, 0.0  ;;  %v659_v28 = vmul.f32 %v480_v19, %v480_v19  ;;  %v399_v52 = vadd.f32 %v839_v25, %v1144_v60 }
  0xfc   :  { %v841_v29 = vpop.f32.mrf.mxu0  ;;  %v492_v30 = vpop.f32.mrf.mxu1  ;;  %v623_v31 = vadd.f32 %v622_v27, %v621_v23  ;;  %v679_v62 = vsel %vm620_vm2, %v661_v36, 0.0  ;;  %v863_v17 = vadd.f32 %v1131_v49, %v1129_v47  ;;  %v436_v25 = vadd.f32 %v866_v11, %v1144_v60 }
  0xfd   :  { %v842_v32 = vadd.f32 %v841_v29, %v840_v20  ;;  %v493_v33 = vadd.f32 %v492_v30, %v396_v24  ;;  %605 = vst.msk [vmem:[%s1285_s3 + $0x4] sm:$0xf] %vm603_vm1, %v791_v26  ;;  %v675_v37 = vsel %vm620_vm2, %v659_v28, 0.0  ;;  %v428_v49 = vadd.f32 %v860_v10, %v1144_v60 }
  0xfe   :  { %v843_v38 = vpop.f32.mrf.mxu0  ;;  %v891_v39 = vpop.f32.mrf.mxu1  ;;  %v625_v40 = vadd.f32 %v624_v34, %v623_v31  ;;  %v676_v41 = vadd.f32 %v675_v37, %v674_v35  ;;  %v869_v29 = vadd.f32 %v1139_v59, %v1137_v56 }
  0xff   :  { %v404_v42 = vadd.f32 %v842_v32, %v1144_v60  ;;  %v794_v44 = vpack.c.bf16 %v493_v33, %v493_v33  ;;  %v662_v63 = vmul.f32 %v493_v33, %v493_v33  ;;  %v628_v5 = vsel %vm620_vm2, %v493_v33, 0.0 }
 0x100   :  { %v844_v50 = vpop.f32.mrf.mxu0  ;;  %v495_v54 = vpop.f32.mrf.mxu1  ;;  %v678_v55 = vadd.f32 %v677_v46, %v676_v41  ;;  %v627_v58 = vadd.f32 %v626_v48, %v625_v40 }
 0x101   :  { %v501_v57 = vadd.f32 %v890_v21, %v404_v42  ;;  %608 = vst.msk [vmem:[%s1285_s3 + $0x10] sm:$0xf] %vm603_vm1, %v794_v44  ;;  %v845_v61 = vadd.f32 %v844_v50, %v843_v38  ;;  %v496_v0 = vadd.f32 %v495_v54, %v399_v52  ;;  %v681_v14 = vsel %vm620_vm2, %v662_v63, 0.0 }
 0x102   :  { %v846_v1 = vpop.f32.mrf.mxu0  ;;  %v1181_v2 = vpop.f32.mrf.mxu1  ;;  %v680_v4 = vadd.f32 %v679_v62, %v678_v55  ;;  %v629_v12 = vadd.f32 %v628_v5, %v627_v58  ;;  %v431_v38 = vadd.f32 %v863_v17, %v1144_v60 }
 0x103   :  { %v796_v3 = vpack.c.bf16 %v501_v57, %v501_v57  ;;  %v407_v6 = vadd.f32 %v845_v61, %v1144_v60  ;;  %v795_v7 = vpack.c.bf16 %v496_v0, %v496_v0  ;;  %v663_v13 = vmul.f32 %v496_v0, %v496_v0 }
 0x104   :  { %v847_v8 = vpop.f32.mrf.mxu0  ;;  %v508_v9 = vpop.f32.mrf.mxu1  ;;  %v630_v43 = vsel %vm620_vm2, %v496_v0, 0.0  ;;  %v682_v53 = vadd.f32 %v681_v14, %v680_v4  ;;  %v664_v26 = vmul.f32 %v501_v57, %v501_v57  ;;  %v632_v34 = vsel %vm620_vm2, %v501_v57, 0.0 }
 0x105   :  { %610 = vst.msk [vmem:[%s1285_s3 + $0x18] sm:$0xf] %vm603_vm1, %v796_v3  ;;  %v504_v15 = vadd.f32 %v891_v39, %v407_v6  ;;  %609 = vst.msk [vmem:[%s1285_s3 + $0x14] sm:$0xf] %vm603_vm1, %v795_v7  ;;  %v848_v45 = vadd.f32 %v847_v8, %v846_v1  ;;  %v683_v19 = vsel %vm620_vm2, %v663_v13, 0.0  ;;  %v631_v23 = vadd.f32 %v630_v43, %v629_v12 }
 0x106   :  { %v849_v16 = vpop.f32.mrf.mxu0  ;;  %v1199_v51 = vpop.f32.mrf.mxu1  ;;  %v684_v30 = vadd.f32 %v683_v19, %v682_v53  ;;  %v685_v56 = vsel %vm620_vm2, %v664_v26, 0.0  ;;  %v439_v57 = vadd.f32 %v869_v29, %v1144_v60 }
 0x107   :  { %v797_v18 = vpack.c.bf16 %v504_v15, %v504_v15  ;;  %v412_v20 = vadd.f32 %v848_v45, %v1144_v60  ;;  %v665_v33 = vmul.f32 %v504_v15, %v504_v15  ;;  %v633_v39 = vadd.f32 %v632_v34, %v631_v23 }
 0x108   :  { %v850_v21 = vpop.f32.mrf.mxu0  ;;  %v511_v22 = vpop.f32.mrf.mxu1  ;;  %v634_v59 = vsel %vm620_vm2, %v504_v15, 0.0  ;;  %v686_v52 = vadd.f32 %v685_v56, %v684_v30 }
 0x109   :  { %v851_v24 = vadd.f32 %v850_v21, %v849_v16  ;;  %611 = vst.msk [vmem:[%s1285_s3 + $0x1c] sm:$0xf] %vm603_vm1, %v797_v18  ;;  %v509_v27 = vadd.f32 %v508_v9, %v412_v20  ;;  %v687_v61 = vsel %vm620_vm2, %v665_v33, 0.0  ;;  %v635_v3 = vadd.f32 %v634_v59, %v633_v39 }
 0x10a   :  { %v852_v28 = vpop.f32.mrf.mxu0  ;;  %v898_v47 = vpop.f32.mrf.mxu1  ;;  %v688_v11 = vadd.f32 %v687_v61, %v686_v52 }
 0x10b   :  { %v415_v31 = vadd.f32 %v851_v24, %v1144_v60  ;;  %v1214_v32 = vadd.f32 %v898_v47, %v436_v25  ;;  %v798_v35 = vpack.c.bf16 %v509_v27, %v509_v27  ;;  %v666_v40 = vmul.f32 %v509_v27, %v509_v27 }
 0x10c   :  { %v853_v36 = vpop.f32.mrf.mxu0  ;;  %v524_v37 = vpop.f32.mrf.mxu1  ;;  %v636_v58 = vsel %vm620_vm2, %v509_v27, 0.0 }
 0x10d   :  { %v512_v41 = vadd.f32 %v511_v22, %v415_v31  ;;  %v804_v42 = vpack.c.bf16 %v1214_v32, %v1214_v32  ;;  %612 = vst.msk [vmem:[%s1285_s3 + $0x20] sm:$0xf] %vm603_vm1, %v798_v35  ;;  %v854_v44 = vadd.f32 %v853_v36, %v852_v28  ;;  %v525_v46 = vadd.f32 %v524_v37, %v428_v49 }
 0x10e   :  { %v855_v48 = vpop.f32.mrf.mxu0  ;;  %v899_v50 = vpop.f32.mrf.mxu1  ;;  %v689_v4 = vsel %vm620_vm2, %v666_v40, 0.0  ;;  %v637_v10 = vadd.f32 %v636_v58, %v635_v3  ;;  %v672_v49 = vmul.f32 %v1214_v32, %v1214_v32  ;;  %v648_v34 = vsel %vm620_vm2, %v1214_v32, 0.0 }
 0x10f   :  { %v799_v54 = vpack.c.bf16 %v512_v41, %v512_v41  ;;  %v667_v55 = vmul.f32 %v512_v41, %v512_v41  ;;  %618 = vst.msk [vmem:[%s1285_s3 + $0x38] sm:$0xf] %vm603_vm1, %v804_v42  ;;  %v420_v62 = vadd.f32 %v854_v44, %v1144_v60  ;;  %v802_v63 = vpack.c.bf16 %v525_v46, %v525_v46 }
 0x110   :  { %v856_v0 = vpop.f32.mrf.mxu0  ;;  %v527_v1 = vpop.f32.mrf.mxu1  ;;  %v536_v5 = vadd.f32 %v899_v50, %v439_v57  ;;  %v638_v6 = vsel %vm620_vm2, %v512_v41, 0.0  ;;  %v690_v16 = vadd.f32 %v689_v4, %v688_v11  ;;  %v644_v26 = vsel %vm620_vm2, %v525_v46, 0.0 }
 0x111   :  { %613 = vst.msk [vmem:[%s1285_s3 + $0x24] sm:$0xf] %vm603_vm1, %v799_v54  ;;  %v517_v7 = vadd.f32 %v1181_v2, %v420_v62  ;;  %616 = vst.msk [vmem:[%s1285_s3 + $0x30] sm:$0xf] %vm603_vm1, %v802_v63  ;;  %v857_v8 = vadd.f32 %v856_v0, %v855_v48  ;;  %v528_v9 = vadd.f32 %v527_v1, %v431_v38  ;;  %v691_v12 = vsel %vm620_vm2, %v667_v55, 0.0 }
 0x112   :  { %v805_v13 = vpack.c.bf16 %v536_v5, %v536_v5  ;;  %v639_v2 = vadd.f32 %v638_v6, %v637_v10  ;;  %v692_v19 = vadd.f32 %v691_v12, %v690_v16  ;;  %v673_v35 = vmul.f32 %v536_v5, %v536_v5 }
 0x113   :  { %v800_v14 = vpack.c.bf16 %v517_v7, %v517_v7  ;;  %v640_v15 = vsel %vm620_vm2, %v517_v7, 0.0  ;;  %v668_v43 = vmul.f32 %v517_v7, %v517_v7  ;;  %v423_v45 = vadd.f32 %v857_v8, %v1144_v60 }
 0x114   :  { %619 = vst.msk [vmem:[%s1285_s3 + $0x3c] sm:$0xf] %vm603_vm1, %v805_v13  ;;  %v803_v53 = vpack.c.bf16 %v528_v9, %v528_v9  ;;  %v641_v20 = vadd.f32 %v640_v15, %v639_v2  ;;  %v670_v60 = vmul.f32 %v525_v46, %v525_v46  ;;  %v671_v27 = vmul.f32 %v528_v9, %v528_v9 }
 0x115   :  { %614 = vst.msk [vmem:[%s1285_s3 + $0x28] sm:$0xf] %vm603_vm1, %v800_v14  ;;  %v693_v17 = vsel %vm620_vm2, %v668_v43, 0.0  ;;  %v520_v18 = vadd.f32 %v1199_v51, %v423_v45  ;;  %v646_v30 = vsel %vm620_vm2, %v528_v9, 0.0  ;;  %v701_v39 = vsel %vm620_vm2, %v672_v49, 0.0 }
 0x116   :  { %617 = vst.msk [vmem:[%s1285_s3 + $0x34] sm:$0xf] %vm603_vm1, %v803_v53  ;;  %v694_v24 = vadd.f32 %v693_v17, %v692_v19  ;;  %v697_v29 = vsel %vm620_vm2, %v670_v60, 0.0  ;;  %v699_v36 = vsel %vm620_vm2, %v671_v27, 0.0  ;;  %v650_v40 = vsel %vm620_vm2, %v536_v5, 0.0 }
 0x117   :  { %v801_v21 = vpack.c.bf16 %v520_v18, %v520_v18  ;;  %v642_v22 = vsel %vm620_vm2, %v520_v18, 0.0  ;;  %v669_v23 = vmul.f32 %v520_v18, %v520_v18  ;;  %v703_v56 = vsel %vm620_vm2, %v673_v35, 0.0 }
 0x118   :  { %v643_v25 = vadd.f32 %v642_v22, %v641_v20 }
 0x119   :  { %615 = vst.msk [vmem:[%s1285_s3 + $0x2c] sm:$0xf] %vm603_vm1, %v801_v21  ;;  %v695_v51 = vsel %vm620_vm2, %v669_v23, 0.0 }
 0x11a   :  { %v645_v28 = vadd.f32 %v644_v26, %v643_v25  ;;  %v696_v47 = vadd.f32 %v695_v51, %v694_v24 }
 0x11c   :  { %v647_v31 = vadd.f32 %v646_v30, %v645_v28  ;;  %v698_v33 = vadd.f32 %v697_v29, %v696_v47 }
 0x11e   :  { %v649_v37 = vadd.f32 %v648_v34, %v647_v31  ;;  %v700_v38 = vadd.f32 %v699_v36, %v698_v33 }
 0x120   :  { %v651_v41 = vadd.f32 %v650_v40, %v649_v37  ;;  %v702_v42 = vadd.f32 %v701_v39, %v700_v38 }
 0x122   :  { %v652_v59 = vrot.slane %v651_v41, 4  ;;  %v704_v44 = vadd.f32 %v703_v56, %v702_v42 }
 0x124   :  { %v653_v46 = vadd.f32 %v652_v59, %v651_v41  ;;  %v705_v48 = vrot.slane %v704_v44, 4 }
 0x126   :  { %v654_v50 = vrot.slane %v653_v46, 2  ;;  %v706_v52 = vadd.f32 %v705_v48, %v704_v44 }
 0x128   :  { %v655_v32 = vadd.f32 %v654_v50, %v653_v46  ;;  %v707_v54 = vrot.slane %v706_v52, 2 }
 0x12a   :  { %v656_v55 = vrot.slane %v655_v32, 1  ;;  %v708_v57 = vadd.f32 %v707_v54, %v706_v52 }
 0x12c   :  { %v709_v58 = vrot.slane %v708_v57, 1  ;;  %v657_v61 = vadd.f32 %v656_v55, %v655_v32 }
 0x12e   :  { %v710_v62 = vadd.f32 %v709_v58, %v708_v57 }
 0x130   :  { %v712_v63 = vsel %vm711_vm3, %v657_v61, %v710_v62 }
 0x131   :  { %714 = vst.msk [vmem:[%s1286_s4] sm:$0x3] %vm713_vm4, %v712_v63 }

// kernel: decoder_forward.12
= control target key start
LH: loop header
LB: loop body
LE: loop exit
PB: predicated region body
PF: predicated region fallthrough
CT: control target
= control target key end

     0   :  { %s384_s17 = smov 112   ;;  %s385_s18 = smov 80   ;;  %v387_v13 = vmov 1966171168   ;;  %v45_v15 = vlaneseq  ;;  %vm76_vm0 = vcmask 130048   ;;  %vm78_vm1 = vcmask 261120   ;;  %s541_s1 = inlined_call_operand.vmem [shape: f32[1,2,64], index: 1, kind: input, shape index: {}]   ;;  %s542_s2 = inlined_call_operand.vmem [shape: f32[1,16], index: 2, kind: input, shape index: {}]   ;;  %s543_s3 = inlined_call_operand.vmem [shape: f32[1,16], index: 3, kind: input, shape index: {}]   ;;  %s544_s0 = inlined_call_operand.vmem [shape: bf16[128,64], index: 0, kind: input, shape index: {}]   ;;  %s545_s4 = inlined_call_operand.vmem [shape: bf16[128,64], index: 4, kind: output, shape index: {}]  }
   0x1   :  { %v17_v0 = vld [vmem:[%s541_s1] sm:$0x3]  ;;  %s386_s19 = smov 96   ;;  %v43_v14 = vunpack.c.l.s4 %v387_v13  ;;  %s388_s23 = smov 32   ;;  %vm80_vm2 = vcmask 392192   ;;  %v368_v37 = vld [vmem:[%s544_s0 + $0x8] sm:$0xff]  }
   0x2   :  { %19 = vrot.lane.b32.xlu0 %v17_v0, %s384_s17  ;;  %27 = vrot.lane.b32.xlu1 %v17_v0, %s385_s18  ;;  %v46_v17 = vshrl.u32 %v45_v15, 7  ;;  %v38_v22 = vld [vmem:[%s542_s2] sm:$0x1]  ;;  %s389_s24 = smov 16   ;;  %s390_s25 = smov 48   ;;  %v369_v40 = vld [vmem:[%s544_s0 + $0x10] sm:$0xff]   ;;  %v342_v46 = vunpack.c.l.bf16 %v368_v37  ;;  %v343_v47 = vunpack.c.h.bf16 %v368_v37 }
   0x3   :  { %v44_v16 = vunpack.c.0.s8 %v43_v14  ;;  %v59_v26 = vld [vmem:[%s543_s3] sm:$0x1]  ;;  %v370_v41 = vld [vmem:[%s544_s0 + $0x18] sm:$0xff]   ;;  %v372_v44 = vld [vmem:[%s544_s0 + $0x28] sm:$0xff]   ;;  %v346_v51 = vunpack.c.l.bf16 %v369_v40  ;;  %v347_v52 = vunpack.c.h.bf16 %v369_v40 }
   0x4   :  { %v422_v24 = vsub.s32 0, %v46_v17  ;;  %v337_v34 = vld [vmem:[%s544_s0] sm:$0xff]   ;;  %v373_v48 = vld [vmem:[%s544_s0 + $0x30] sm:$0xff]   ;;  %v374_v49 = vld [vmem:[%s544_s0 + $0x38] sm:$0xff]   ;;  %v350_v53 = vunpack.c.l.bf16 %v370_v41  ;;  %v351_v54 = vunpack.c.h.bf16 %v370_v41  ;;  %v358_v57 = vunpack.c.l.bf16 %v372_v44 }
   0x5   :  { %v47_v18 = vsub.s32 %v44_v16, %v46_v17  ;;  %v338_v42 = vunpack.c.l.bf16 %v337_v34  ;;  %v371_v43 = vld [vmem:[%s544_s0 + $0x20] sm:$0xff]   ;;  %v339_v45 = vunpack.c.h.bf16 %v337_v34  ;;  %v359_v58 = vunpack.c.h.bf16 %v372_v44 }
   0x6   :  { %23 = vrot.lane.b32.xlu0 %v17_v0, %s386_s19  ;;  %v354_v55 = vunpack.c.l.bf16 %v371_v43  ;;  %v355_v56 = vunpack.c.h.bf16 %v371_v43  ;;  %v362_v60 = vunpack.c.l.bf16 %v373_v48  ;;  %v363_v61 = vunpack.c.h.bf16 %v373_v48 }
   0x7   :  { %v366_v62 = vunpack.c.l.bf16 %v374_v49  ;;  %v367_v63 = vunpack.c.h.bf16 %v374_v49 }
  0x74   :  { %v20_v1 = vpop.permute.xlu0 %19  ;;  %v28_v4 = vpop.permute.xlu1 %27 }
  0x75   :  { %v22_v2 = vadd.f32 %v20_v1, %v17_v0 }
  0x78   :  { %v24_v3 = vpop.permute.xlu0 %23 }
  0x79   :  { %v26_v5 = vadd.f32 %v24_v3, %v22_v2 }
  0x7b   :  { %v30_v6 = vadd.f32 %v28_v4, %v26_v5 }
  0x7d   :  { %v31_v7 = vmul.f32 0.001953125, %v30_v6 }
  0x7f   :  { %v32_v8 = vmul.f32 %v31_v7, %v31_v7 }
  0x81   :  { %v34_v9 = vrot.slane %v32_v8, 7 }
  0x83   :  { %v36_v10 = vsub.f32 %v31_v7, %v34_v9 }
  0x85   :  { %v37_v11 = vmax.f32 %v36_v10, 0.0 }
  0x87   :  { %v39_v12 = vadd.f32 1e-05, %v37_v11 }
  0x89   :  { %382 = vrsqrt.f32 %v39_v12 }
  0x96   :  { %v383_v19 = vpop.eup %382 }
  0x97   :  { %v48_v20 = vrot.slane %v383_v19, %v47_v18 }
  0x99   :  { %v49_v21 = vcombine.high %v48_v20, %v48_v20 }
  0x9b   :  { %v56_v23 = vrot.slane %v49_v21, %v47_v18 }
  0x9d   :  { %v58_v25 = vmul.f32 %v56_v23, %v38_v22 }
  0x9f   :  { %v60_v27 = vmul.f32 %v58_v25, %v31_v7  ;;  %v66_v28 = vrot.slane %v58_v25, %v422_v24 }
  0xa1   :  { %70 = vrot.lane.b32.xlu0 %v66_v28, %s388_s23  ;;  %67 = vrot.lane.b32.xlu1 %v66_v28, %s389_s24  ;;  %v61_v29 = vsub.f32 %v59_v26, %v60_v27 }
  0xa3   :  { %v86_v30 = vrot.slane %v61_v29, %v422_v24 }
  0xa5   :  { %73 = vrot.lane.b32.xlu1 %v66_v28, %s390_s25  ;;  %87 = vrot.lane.b32.xlu0 %v86_v30, %s389_s24 }
  0xa9   :  { %90 = vrot.lane.b32.xlu1 %v86_v30, %s388_s23  ;;  %93 = vrot.lane.b32.xlu0 %v86_v30, %s390_s25 }
 0x113   :  { %v71_v31 = vpop.permute.xlu0 %70  ;;  %v68_v32 = vpop.permute.xlu1 %67 }
 0x114   :  { %v77_v33 = vsel %vm76_vm0, %v58_v25, %v68_v32 }
 0x115   :  { %v79_v35 = vsel %vm78_vm1, %v77_v33, %v71_v31 }
 0x117   :  { %v74_v36 = vpop.permute.xlu1 %73  ;;  %v88_v38 = vpop.permute.xlu0 %87 }
 0x118   :  { %v81_v39 = vsel %vm80_vm2, %v79_v35, %v74_v36  ;;  %v96_v4 = vsel %vm76_vm0, %v61_v29, %v88_v38 }
 0x119   :  { %v134_v50 = vrot.slane %v81_v39, %v422_v24 }
 0x11b   :  { %v91_v59 = vpop.permute.xlu1 %90  ;;  %v94_v0 = vpop.permute.xlu0 %93  ;;  %v135_v1 = vmul.f32 %v338_v42, %v134_v50  ;;  %v136_v2 = vmul.f32 %v339_v45, %v134_v50  ;;  %v137_v3 = vmul.f32 %v342_v46, %v134_v50  ;;  %v138_v5 = vmul.f32 %v343_v47, %v134_v50 }
 0x11c   :  { %v139_v6 = vmul.f32 %v346_v51, %v134_v50  ;;  %v140_v7 = vmul.f32 %v347_v52, %v134_v50  ;;  %v97_v8 = vsel %vm78_vm1, %v96_v4, %v91_v59  ;;  %v141_v9 = vmul.f32 %v350_v53, %v134_v50 }
 0x11d   :  { %v142_v10 = vmul.f32 %v351_v54, %v134_v50  ;;  %v143_v11 = vmul.f32 %v354_v55, %v134_v50  ;;  %v98_v12 = vsel %vm80_vm2, %v97_v8, %v94_v0  ;;  %v144_v13 = vmul.f32 %v355_v56, %v134_v50 }
 0x11e   :  { %v145_v14 = vmul.f32 %v358_v57, %v134_v50  ;;  %v146_v15 = vmul.f32 %v359_v58, %v134_v50  ;;  %v154_v16 = vrot.slane %v98_v12, %v422_v24  ;;  %v147_v17 = vmul.f32 %v362_v60, %v134_v50 }
 0x11f   :  { %v148_v18 = vmul.f32 %v363_v61, %v134_v50  ;;  %v149_v19 = vmul.f32 %v366_v62, %v134_v50  ;;  %v150_v20 = vmul.f32 %v367_v63, %v134_v50 }
 0x120   :  { %v155_v21 = vadd.f32 %v154_v16, %v135_v1  ;;  %v156_v22 = vadd.f32 %v154_v16, %v136_v2  ;;  %v157_v23 = vadd.f32 %v154_v16, %v137_v3  ;;  %v158_v25 = vadd.f32 %v154_v16, %v138_v5 }
 0x121   :  { %v159_v26 = vadd.f32 %v154_v16, %v139_v6  ;;  %v160_v27 = vadd.f32 %v154_v16, %v140_v7  ;;  %v161_v28 = vadd.f32 %v154_v16, %v141_v9  ;;  %v162_v29 = vadd.f32 %v154_v16, %v142_v10 }
 0x122   :  { %v163_v30 = vadd.f32 %v154_v16, %v143_v11  ;;  %v164_v31 = vadd.f32 %v154_v16, %v144_v13  ;;  %v165_v32 = vadd.f32 %v154_v16, %v145_v14  ;;  %v166_v33 = vadd.f32 %v154_v16, %v146_v15 }
 0x123   :  { %v167_v34 = vadd.f32 %v154_v16, %v147_v17  ;;  %v168_v35 = vadd.f32 %v154_v16, %v148_v18  ;;  %v169_v36 = vadd.f32 %v154_v16, %v149_v19  ;;  %v170_v24 = vadd.f32 %v154_v16, %v150_v20 }
 0x124   :  { %vm172_vm4 = vcmp.gt.f32.partialorder %v156_v22, 0.0  ;;  %vm173_vm5 = vcmp.gt.f32.partialorder %v157_v23, 0.0  ;;  %vm174_vm6 = vcmp.gt.f32.partialorder %v158_v25, 0.0  ;;  %vm175_vm7 = vcmp.gt.f32.partialorder %v159_v26, 0.0 }
 0x125   :  { %vm176_vm8 = vcmp.gt.f32.partialorder %v160_v27, 0.0  ;;  %vm178_vm10 = vcmp.gt.f32.partialorder %v162_v29, 0.0  ;;  %vm179_vm11 = vcmp.gt.f32.partialorder %v163_v30, 0.0  ;;  %vm180_vm12 = vcmp.gt.f32.partialorder %v164_v31, 0.0 }
 0x126   :  { %vm181_vm13 = vcmp.gt.f32.partialorder %v165_v32, 0.0  ;;  %vm182_vm14 = vcmp.gt.f32.partialorder %v166_v33, 0.0  ;;  %vm183_vm0 = vcmp.gt.f32.partialorder %v167_v34, 0.0  ;;  %vm184_vm1 = vcmp.gt.f32.partialorder %v168_v35, 0.0 }
 0x127   :  { %vm185_vm2 = vcmp.gt.f32.partialorder %v169_v36, 0.0  ;;  %vm186_vm3 = vcmp.gt.f32.partialorder %v170_v24, 0.0  ;;  %v187_v37 = vmul.f32 0.01, %v155_v21  ;;  %v188_v38 = vmul.f32 0.01, %v156_v22 }
 0x128   :  { %v189_v39 = vmul.f32 0.01, %v157_v23  ;;  %v190_v40 = vmul.f32 0.01, %v158_v25  ;;  %v191_v41 = vmul.f32 0.01, %v159_v26 }
 0x129   :  { %v192_v42 = vmul.f32 0.01, %v160_v27  ;;  %v193_v43 = vmul.f32 0.01, %v161_v28  ;;  %v194_v44 = vmul.f32 0.01, %v162_v29  ;;  %v204_v50 = vsel %vm172_vm4, %v156_v22, %v188_v38 }
 0x12a   :  { %v195_v45 = vmul.f32 0.01, %v163_v30  ;;  %vm546_vm9 = vcmp.gt.f32.partialorder %v155_v21, 0.0  ;;  %v196_v47 = vmul.f32 0.01, %v164_v31  ;;  %v205_v54 = vsel %vm173_vm5, %v157_v23, %v189_v39 }
 0x12b   :  { %v203_v46 = vsel %vm546_vm9, %v155_v21, %v187_v37  ;;  %v197_v48 = vmul.f32 0.01, %v165_v32  ;;  %v198_v49 = vmul.f32 0.01, %v166_v33  ;;  %v199_v51 = vmul.f32 0.01, %v167_v34 }
 0x12c   :  { %v200_v52 = vmul.f32 0.01, %v168_v35  ;;  %v201_v53 = vmul.f32 0.01, %v169_v36  ;;  %v202_v55 = vmul.f32 0.01, %v170_v24  ;;  %v206_v56 = vsel %vm174_vm6, %v158_v25, %v190_v40 }
 0x12d   :  { %v207_v57 = vsel %vm175_vm7, %v159_v26, %v191_v41  ;;  %v208_v58 = vsel %vm176_vm8, %v160_v27, %v192_v42  ;;  %vm547_vm15 = vcmp.gt.f32.partialorder %v161_v28, 0.0  ;;  %v210_v60 = vsel %vm178_vm10, %v162_v29, %v194_v44 }
 0x12e   :  { %v209_v59 = vsel %vm547_vm15, %v161_v28, %v193_v43  ;;  %v211_v61 = vsel %vm179_vm11, %v163_v30, %v195_v45  ;;  %v212_v62 = vsel %vm180_vm12, %v164_v31, %v196_v47  ;;  %v213_v63 = vsel %vm181_vm13, %v165_v32, %v197_v48 }
 0x12f   :  { %v214_v0 = vsel %vm182_vm14, %v166_v33, %v198_v49  ;;  %v215_v1 = vsel %vm183_vm0, %v167_v34, %v199_v51  ;;  %v216_v2 = vsel %vm184_vm1, %v168_v35, %v200_v52  ;;  %v217_v3 = vsel %vm185_vm2, %v169_v36, %v201_v53 }
 0x130   :  { %v218_v4 = vsel %vm186_vm3, %v170_v24, %v202_v55  ;;  %v320_v5 = vpack.c.bf16 %v203_v46, %v203_v46  ;;  %v321_v6 = vpack.c.bf16 %v204_v50, %v204_v50  ;;  %v322_v7 = vpack.c.bf16 %v205_v54, %v205_v54 }
 0x131   :  { %v323_v8 = vpack.c.bf16 %v206_v56, %v206_v56  ;;  %v324_v9 = vpack.c.bf16 %v207_v57, %v207_v57  ;;  %v325_v10 = vpack.c.bf16 %v208_v58, %v208_v58  ;;  %v326_v11 = vpack.c.bf16 %v209_v59, %v209_v59 }
 0x132   :  { %v327_v12 = vpack.c.bf16 %v210_v60, %v210_v60  ;;  %v328_v13 = vpack.c.bf16 %v211_v61, %v211_v61  ;;  %v329_v14 = vpack.c.bf16 %v212_v62, %v212_v62  ;;  %vm548_vm4 = vcmask 519168  }
 0x133   :  { %284 = vst.msk [vmem:[%s545_s4] sm:$0xf] %vm548_vm4, %v320_v5  ;;  %vm549_vm5 = vmmov %vm548_vm4  ;;  %v330_v15 = vpack.c.bf16 %v213_v63, %v213_v63  ;;  %v331_v16 = vpack.c.bf16 %v214_v0, %v214_v0  ;;  %v332_v17 = vpack.c.bf16 %v215_v1, %v215_v1  ;;  %v333_v18 = vpack.c.bf16 %v216_v2, %v216_v2 }
 0x134   :  { %285 = vst.msk [vmem:[%s545_s4 + $0x4] sm:$0xf] %vm549_vm5, %v321_v6  ;;  %vm550_vm3 = vmmov %vm548_vm4  ;;  %v334_v19 = vpack.c.bf16 %v217_v3, %v217_v3  ;;  %v335_v20 = vpack.c.bf16 %v218_v4, %v218_v4 }
 0x135   :  { %286 = vst.msk [vmem:[%s545_s4 + $0x8] sm:$0xf] %vm550_vm3, %v322_v7  ;;  %vm551_vm6 = vmmov %vm550_vm3 }
 0x136   :  { %287 = vst.msk [vmem:[%s545_s4 + $0xc] sm:$0xf] %vm551_vm6, %v323_v8  ;;  %vm552_vm7 = vmmov %vm550_vm3 }
 0x137   :  { %288 = vst.msk [vmem:[%s545_s4 + $0x10] sm:$0xf] %vm552_vm7, %v324_v9  ;;  %vm553_vm8 = vmmov %vm550_vm3 }
 0x138   :  { %289 = vst.msk [vmem:[%s545_s4 + $0x14] sm:$0xf] %vm553_vm8, %v325_v10  ;;  %vm554_vm9 = vmmov %vm550_vm3 }
 0x139   :  { %290 = vst.msk [vmem:[%s545_s4 + $0x18] sm:$0xf] %vm554_vm9, %v326_v11  ;;  %vm555_vm10 = vmmov %vm550_vm3 }
 0x13a   :  { %291 = vst.msk [vmem:[%s545_s4 + $0x1c] sm:$0xf] %vm555_vm10, %v327_v12  ;;  %vm556_vm11 = vmmov %vm550_vm3 }
 0x13b   :  { %292 = vst.msk [vmem:[%s545_s4 + $0x20] sm:$0xf] %vm556_vm11, %v328_v13  ;;  %vm557_vm12 = vmmov %vm550_vm3 }
 0x13c   :  { %293 = vst.msk [vmem:[%s545_s4 + $0x24] sm:$0xf] %vm557_vm12, %v329_v14  ;;  %vm558_vm13 = vmmov %vm550_vm3 }
 0x13d   :  { %294 = vst.msk [vmem:[%s545_s4 + $0x28] sm:$0xf] %vm558_vm13, %v330_v15  ;;  %vm559_vm14 = vmmov %vm550_vm3 }
 0x13e   :  { %295 = vst.msk [vmem:[%s545_s4 + $0x2c] sm:$0xf] %vm559_vm14, %v331_v16  ;;  %vm560_vm15 = vmmov %vm550_vm3 }
 0x13f   :  { %296 = vst.msk [vmem:[%s545_s4 + $0x30] sm:$0xf] %vm560_vm15, %v332_v17  ;;  %vm561_vm0 = vmmov %vm550_vm3 }
 0x140   :  { %297 = vst.msk [vmem:[%s545_s4 + $0x34] sm:$0xf] %vm561_vm0, %v333_v18  ;;  %vm562_vm1 = vmmov %vm561_vm0 }
 0x141   :  { %298 = vst.msk [vmem:[%s545_s4 + $0x38] sm:$0xf] %vm562_vm1, %v334_v19  ;;  %vm563_vm2 = vmmov %vm561_vm0 }
 0x142   :  { %299 = vst.msk [vmem:[%s545_s4 + $0x3c] sm:$0xf] %vm563_vm2, %v335_v20 }

// kernel: decoder_forward.14
= control target key start
LH: loop header
LB: loop body
LE: loop exit
PB: predicated region body
PF: predicated region fallthrough
CT: control target
= control target key end

     0   :  { %s1176_s17 = smov 120   ;;  %s1177_s18 = smov 104   ;;  %v1179_v13 = vmov 1966171168   ;;  %v45_v15 = vlaneseq  ;;  %vm76_vm0 = vcmask 64512   ;;  %vm78_vm1 = vcmask 130048   ;;  %s2998_s1 = inlined_call_operand.vmem [shape: f32[1,2,32], index: 1, kind: input, shape index: {}]   ;;  %s2999_s2 = inlined_call_operand.vmem [shape: f32[1,8], index: 2, kind: input, shape index: {}]   ;;  %s3000_s3 = inlined_call_operand.vmem [shape: f32[1,8], index: 3, kind: input, shape index: {}]   ;;  %s3001_s0 = inlined_call_operand.vmem [shape: bf16[512,32], index: 0, kind: input, shape index: {}]   ;;  %s3002_s4 = inlined_call_operand.vmem [shape: bf16[512,32], index: 4, kind: output, shape index: {}]  }
   0x1   :  { %v17_v0 = vld [vmem:[%s2998_s1] sm:$0x3]  ;;  %s1178_s19 = smov 112   ;;  %v43_v14 = vunpack.c.l.s4 %v1179_v13  ;;  %s1180_s23 = smov 16   ;;  %v1232_v32 = vld [vmem:[%s3001_s0 + $0x8] sm:$0xff]   ;;  %v1237_v33 = vld [vmem:[%s3001_s0 + $0x10] sm:$0xff]  }
   0x2   :  { %19 = vrot.lane.b32.xlu0 %v17_v0, %s1176_s17  ;;  %27 = vrot.lane.b32.xlu1 %v17_v0, %s1177_s18  ;;  %v46_v17 = vshrl.u32 %v45_v15, 7  ;;  %v38_v22 = vld [vmem:[%s2999_s2] sm:$0x1]  ;;  %s1181_s24 = smov 8   ;;  %s1182_s2 = smov 24   ;;  %v1242_v34 = vld [vmem:[%s3001_s0 + $0x18] sm:$0xff]   ;;  %v1014_v39 = vunpack.c.l.bf16 %v1232_v32  ;;  %v1015_v43 = vunpack.c.h.bf16 %v1232_v32  ;;  %v1018_v44 = vunpack.c.l.bf16 %v1237_v33 }
   0x3   :  { %v44_v16 = vunpack.c.0.s8 %v43_v14  ;;  %v59_v26 = vld [vmem:[%s3000_s3] sm:$0x1]  ;;  %v1252_v36 = vld [vmem:[%s3001_s0 + $0x28] sm:$0xff]   ;;  %vm80_vm2 = vcmask 195584   ;;  %v1260_v40 = vld [vmem:[%s3001_s0 + $0x30] sm:$0xff]   ;;  %v1019_v45 = vunpack.c.h.bf16 %v1237_v33  ;;  %v1022_v46 = vunpack.c.l.bf16 %v1242_v34 }
   0x4   :  { %v1214_v24 = vsub.s32 0, %v46_v17  ;;  %v1227_v31 = vld [vmem:[%s3001_s0] sm:$0xff]   ;;  %v1265_v41 = vld [vmem:[%s3001_s0 + $0x38] sm:$0xff]   ;;  %v1279_v48 = vld [vmem:[%s3001_s0 + $0x48] sm:$0xff]   ;;  %v1023_v49 = vunpack.c.h.bf16 %v1242_v34  ;;  %v1030_v52 = vunpack.c.l.bf16 %v1252_v36  ;;  %v1031_v55 = vunpack.c.h.bf16 %v1252_v36 }
   0x5   :  { %v47_v18 = vsub.s32 %v44_v16, %v46_v17  ;;  %v1247_v35 = vld [vmem:[%s3001_s0 + $0x20] sm:$0xff]   ;;  %v1010_v37 = vunpack.c.l.bf16 %v1227_v31  ;;  %v1011_v38 = vunpack.c.h.bf16 %v1227_v31  ;;  %v1288_v53 = vld [vmem:[%s3001_s0 + $0x50] sm:$0xff]   ;;  %v1293_v54 = vld [vmem:[%s3001_s0 + $0x58] sm:$0xff]   ;;  %v1034_v56 = vunpack.c.l.bf16 %v1260_v40 }
   0x6   :  { %23 = vrot.lane.b32.xlu0 %v17_v0, %s1178_s19  ;;  %v1274_v47 = vld [vmem:[%s3001_s0 + $0x40] sm:$0xff]   ;;  %v1026_v50 = vunpack.c.l.bf16 %v1247_v35  ;;  %v1027_v51 = vunpack.c.h.bf16 %v1247_v35  ;;  %v1035_v57 = vunpack.c.h.bf16 %v1260_v40  ;;  %v1038_v58 = vunpack.c.l.bf16 %v1265_v41  ;;  %v1339_v13 = vld [vmem:[%s3001_s0 + $0x88] sm:$0xff]   ;;  %v1344_v14 = vld [vmem:[%s3001_s0 + $0x90] sm:$0xff]  }
   0x7   :  { %v1302_v59 = vld [vmem:[%s3001_s0 + $0x60] sm:$0xff]   ;;  %v1039_v60 = vunpack.c.h.bf16 %v1265_v41  ;;  %v1042_v61 = vunpack.c.l.bf16 %v1274_v47  ;;  %v1043_v62 = vunpack.c.h.bf16 %v1274_v47  ;;  %v1423_v17 = vld [vmem:[%s3001_s0 + $0xe8] sm:$0xff]   ;;  %v3036_v41 = vunpack.c.h.bf16 %v1279_v48 }
   0x8   :  { %v3038_v47 = vunpack.c.h.bf16 %v1288_v53  ;;  %v3053_v63 = vunpack.c.l.bf16 %v1344_v14 }
  0x74   :  { %v20_v1 = vpop.permute.xlu0 %19  ;;  %v28_v4 = vpop.permute.xlu1 %27 }
  0x75   :  { %v22_v2 = vadd.f32 %v20_v1, %v17_v0  ;;  %v1311_v0 = vld [vmem:[%s3001_s0 + $0x68] sm:$0xff]   ;;  %v1316_v1 = vld [vmem:[%s3001_s0 + $0x70] sm:$0xff]  }
  0x78   :  { %v24_v3 = vpop.permute.xlu0 %23 }
  0x79   :  { %v26_v5 = vadd.f32 %v24_v3, %v22_v2 }
  0x7b   :  { %v30_v6 = vadd.f32 %v28_v4, %v26_v5 }
  0x7d   :  { %v31_v7 = vmul.f32 0.00048828125, %v30_v6  ;;  %v1325_v6 = vld [vmem:[%s3001_s0 + $0x78] sm:$0xff]  }
  0x7f   :  { %v32_v8 = vmul.f32 %v31_v7, %v31_v7 }
  0x81   :  { %v34_v9 = vrot.slane %v32_v8, 7 }
  0x83   :  { %v36_v10 = vsub.f32 %v31_v7, %v34_v9 }
  0x85   :  { %v37_v11 = vmax.f32 %v36_v10, 0.0 }
  0x87   :  { %v39_v12 = vadd.f32 1e-05, %v37_v11 }
  0x89   :  { %1174 = vrsqrt.f32 %v39_v12 }
  0x96   :  { %v1175_v19 = vpop.eup %1174 }
  0x97   :  { %v48_v20 = vrot.slane %v1175_v19, %v47_v18 }
  0x99   :  { %v49_v21 = vcombine.high %v48_v20, %v48_v20  ;;  %v1353_v20 = vld [vmem:[%s3001_s0 + $0x98] sm:$0xff]  }
  0x9a   :  { %v3055_v2 = vunpack.c.l.bf16 %v1353_v20 }
  0x9b   :  { %v56_v23 = vrot.slane %v49_v21, %v47_v18 }
  0x9d   :  { %v58_v25 = vmul.f32 %v56_v23, %v38_v22  ;;  %v1381_v22 = vld [vmem:[%s3001_s0 + $0xb8] sm:$0xff]   ;;  %v1390_v23 = vld [vmem:[%s3001_s0 + $0xc0] sm:$0xff]  }
  0x9f   :  { %v60_v27 = vmul.f32 %v58_v25, %v31_v7  ;;  %v66_v28 = vrot.slane %v58_v25, %v1214_v24  ;;  %v1330_v7 = vld [vmem:[%s3001_s0 + $0x80] sm:$0xff]  }
  0xa1   :  { %70 = vrot.lane.b32.xlu0 %v66_v28, %s1180_s23  ;;  %67 = vrot.lane.b32.xlu1 %v66_v28, %s1181_s24  ;;  %v1220_v29 = vsub.f32 %v59_v26, %v60_v27  ;;  %v1362_v26 = vld [vmem:[%s3001_s0 + $0xa0] sm:$0xff]   ;;  %v1367_v27 = vld [vmem:[%s3001_s0 + $0xa8] sm:$0xff]  }
  0xa3   :  { %v86_v30 = vrot.slane %v1220_v29, %v1214_v24 }
  0xa5   :  { %73 = vrot.lane.b32.xlu1 %v66_v28, %s1182_s2  ;;  %87 = vrot.lane.b32.xlu0 %v86_v30, %s1181_s24 }
  0xa9   :  { %90 = vrot.lane.b32.xlu1 %v86_v30, %s1180_s23  ;;  %93 = vrot.lane.b32.xlu0 %v86_v30, %s1182_s2  ;;  %v1395_v30 = vld [vmem:[%s3001_s0 + $0xc8] sm:$0xff]  }
 0x113   :  { %v68_v42 = vpop.permute.xlu1 %67  ;;  %v71_v8 = vpop.permute.xlu0 %70 }
 0x114   :  { %v77_v9 = vsel %vm76_vm0, %v58_v25, %v68_v42  ;;  %v1376_v25 = vld [vmem:[%s3001_s0 + $0xb0] sm:$0xff]  }
 0x115   :  { %v79_v28 = vsel %vm78_vm1, %v77_v9, %v71_v8  ;;  %v1404_v42 = vld [vmem:[%s3001_s0 + $0xd0] sm:$0xff]   ;;  %v1409_v8 = vld [vmem:[%s3001_s0 + $0xd8] sm:$0xff]   ;;  %v1418_v9 = vld [vmem:[%s3001_s0 + $0xe0] sm:$0xff]  }
 0x117   :  { %v74_v15 = vpop.permute.xlu1 %73  ;;  %v88_v10 = vpop.permute.xlu0 %87 }
 0x118   :  { %v81_v21 = vsel %vm80_vm2, %v79_v28, %v74_v15  ;;  %v1431_v28 = vld [vmem:[%s3001_s0 + $0xf0] sm:$0xff]   ;;  %v1436_v15 = vld [vmem:[%s3001_s0 + $0xf8] sm:$0xff]  }
 0x119   :  { %v1439_v12 = vrot.slane %v81_v21, %v1214_v24  ;;  %v96_v21 = vsel %vm76_vm0, %v1220_v29, %v88_v10 }
 0x11b   :  { %v1457_v5 = vmul.f32 %v1010_v37, %v1439_v12  ;;  %v1462_v3 = vmul.f32 %v1011_v38, %v1439_v12  ;;  %v1469_v11 = vmul.f32 %v1014_v39, %v1439_v12  ;;  %v1474_v18 = vmul.f32 %v1015_v43, %v1439_v12 }
 0x11c   :  { %v1479_v37 = vmul.f32 %v1018_v44, %v1439_v12  ;;  %v1484_v31 = vmul.f32 %v1019_v45, %v1439_v12  ;;  %v1489_v29 = vmul.f32 %v1022_v46, %v1439_v12  ;;  %v1494_v32 = vmul.f32 %v1023_v49, %v1439_v12  ;;  %v91_v46 = vpop.permute.xlu1 %90 }
 0x11d   :  { %v1499_v38 = vmul.f32 %v1026_v50, %v1439_v12  ;;  %v1504_v33 = vmul.f32 %v1027_v51, %v1439_v12  ;;  %v1509_v39 = vmul.f32 %v1030_v52, %v1439_v12  ;;  %v1514_v34 = vmul.f32 %v1031_v55, %v1439_v12 }
 0x11e   :  { %v1519_v43 = vmul.f32 %v1034_v56, %v1439_v12  ;;  %v1524_v35 = vmul.f32 %v1035_v57, %v1439_v12  ;;  %v1529_v44 = vmul.f32 %v1038_v58, %v1439_v12  ;;  %v1534_v36 = vmul.f32 %v1039_v60, %v1439_v12 }
 0x11f   :  { %v1539_v45 = vmul.f32 %v1042_v61, %v1439_v12  ;;  %v1544_v40 = vmul.f32 %v1043_v62, %v1439_v12  ;;  %v3035_v49 = vunpack.c.l.bf16 %v1279_v48  ;;  %v1554_v51 = vmul.f32 %v3036_v41, %v1439_v12 }
 0x120   :  { %v3037_v52 = vunpack.c.l.bf16 %v1288_v53  ;;  %v1564_v56 = vmul.f32 %v3038_v47, %v1439_v12  ;;  %v3039_v57 = vunpack.c.l.bf16 %v1293_v54  ;;  %v3040_v48 = vunpack.c.h.bf16 %v1293_v54 }
 0x121   :  { %v1549_v50 = vmul.f32 %v3035_v49, %v1439_v12  ;;  %v3041_v61 = vunpack.c.l.bf16 %v1302_v59  ;;  %v3042_v53 = vunpack.c.h.bf16 %v1302_v59  ;;  %v3043_v49 = vunpack.c.l.bf16 %v1311_v0  ;;  %v94_v59 = vpop.permute.xlu0 %93 }
 0x122   :  { %v1559_v55 = vmul.f32 %v3037_v52, %v1439_v12  ;;  %v1569_v58 = vmul.f32 %v3039_v57, %v1439_v12  ;;  %v1574_v60 = vmul.f32 %v3040_v48, %v1439_v12  ;;  %v3044_v54 = vunpack.c.h.bf16 %v1311_v0 }
 0x123   :  { %v1579_v62 = vmul.f32 %v3041_v61, %v1439_v12  ;;  %v1584_v10 = vmul.f32 %v3042_v53, %v1439_v12  ;;  %v1589_v41 = vmul.f32 %v3043_v49, %v1439_v12  ;;  %v3045_v47 = vunpack.c.l.bf16 %v1316_v1 }
 0x124   :  { %v1594_v52 = vmul.f32 %v3044_v54, %v1439_v12  ;;  %v97_v48 = vsel %vm78_vm1, %v96_v21, %v91_v46  ;;  %v3046_v61 = vunpack.c.h.bf16 %v1316_v1  ;;  %v3047_v49 = vunpack.c.l.bf16 %v1325_v6 }
 0x125   :  { %v1599_v57 = vmul.f32 %v3045_v47, %v1439_v12  ;;  %v3048_v0 = vunpack.c.h.bf16 %v1325_v6  ;;  %v3049_v47 = vunpack.c.l.bf16 %v1330_v7  ;;  %v3050_v1 = vunpack.c.h.bf16 %v1330_v7 }
 0x126   :  { %v1605_v53 = vmul.f32 %v3046_v61, %v1439_v12  ;;  %v1610_v16 = vmul.f32 %v3047_v49, %v1439_v12  ;;  %v3051_v61 = vunpack.c.l.bf16 %v1339_v13  ;;  %v3052_v6 = vunpack.c.h.bf16 %v1339_v13 }
 0x127   :  { %v1615_v54 = vmul.f32 %v3048_v0, %v1439_v12  ;;  %v1620_v21 = vmul.f32 %v3049_v47, %v1439_v12  ;;  %v1625_v46 = vmul.f32 %v3050_v1, %v1439_v12  ;;  %v1640_v47 = vmul.f32 %v3053_v63, %v1439_v12 }
 0x128   :  { %v1630_v49 = vmul.f32 %v3051_v61, %v1439_v12  ;;  %v1635_v0 = vmul.f32 %v3052_v6, %v1439_v12  ;;  %v3054_v7 = vunpack.c.h.bf16 %v1344_v14  ;;  %v1650_v61 = vmul.f32 %v3055_v2, %v1439_v12 }
 0x129   :  { %v3057_v13 = vunpack.c.h.bf16 %v1353_v20  ;;  %v98_v4 = vsel %vm80_vm2, %v97_v48, %v94_v59  ;;  %v3058_v63 = vunpack.c.l.bf16 %v1362_v26  ;;  %v3059_v14 = vunpack.c.h.bf16 %v1362_v26 }
 0x12a   :  { %v1645_v1 = vmul.f32 %v3054_v7, %v1439_v12  ;;  %3056 = vst [vmem:[#allocation2_spill] sm:$0xff] %v1650_v61  ;;  %v3060_v2 = vunpack.c.l.bf16 %v1367_v27  ;;  %v3061_v20 = vunpack.c.h.bf16 %v1367_v27  ;;  %v3063_v48 = vunpack.c.l.bf16 %v1376_v25 }
 0x12b   :  { %v1655_v6 = vmul.f32 %v3057_v13, %v1439_v12  ;;  %v1661_v19 = vmul.f32 %v3058_v63, %v1439_v12  ;;  %v1666_v7 = vmul.f32 %v3059_v14, %v1439_v12  ;;  %v3064_v26 = vunpack.c.h.bf16 %v1376_v25 }
 0x12c   :  { %v1671_v61 = vmul.f32 %v3060_v2, %v1439_v12  ;;  %v1676_v13 = vmul.f32 %v3061_v20, %v1439_v12  ;;  %v1681_v59 = vmul.f32 %v3063_v48, %v1439_v12  ;;  %v3066_v14 = vunpack.c.l.bf16 %v1381_v22 }
 0x12d   :  { %v1686_v63 = vmul.f32 %v3064_v26, %v1439_v12  ;;  %v3068_v27 = vunpack.c.h.bf16 %v1381_v22  ;;  %v3071_v25 = vunpack.c.h.bf16 %v1390_v23  ;;  %v3073_v22 = vunpack.c.h.bf16 %v1395_v30 }
 0x12e   :  { %3062 = vst [vmem:[#allocation3_spill] sm:$0xff] %v1676_v13  ;;  %v1691_v2 = vmul.f32 %v3066_v14, %v1439_v12  ;;  %v3069_v13 = vunpack.c.l.bf16 %v1390_v23  ;;  %v3075_v23 = vunpack.c.h.bf16 %v1404_v42 }
 0x12f   :  { %3065 = vst [vmem:[#allocation4_spill] sm:$0xff] %v1686_v63  ;;  %v1696_v20 = vmul.f32 %v3068_v27, %v1439_v12  ;;  %v1706_v26 = vmul.f32 %v3071_v25, %v1439_v12  ;;  %v3072_v63 = vunpack.c.l.bf16 %v1395_v30  ;;  %v1719_v27 = vmul.f32 %v3073_v22, %v1439_v12 }
 0x130   :  { %3067 = vst [vmem:[#allocation5_spill] sm:$0xff] %v1691_v2  ;;  %v1701_v48 = vmul.f32 %v3069_v13, %v1439_v12  ;;  %v1714_v2 = vrot.slane %v98_v4, %v1214_v24  ;;  %v3074_v13 = vunpack.c.l.bf16 %v1404_v42  ;;  %v1729_v25 = vmul.f32 %v3075_v23, %v1439_v12 }
 0x131   :  { %v1711_v14 = vmul.f32 %v3072_v63, %v1439_v12  ;;  %v3077_v63 = vunpack.c.l.bf16 %v1409_v8  ;;  %v3078_v4 = vunpack.c.h.bf16 %v1409_v8  ;;  %v3080_v22 = vunpack.c.l.bf16 %v1418_v9 }
 0x132   :  { %3070 = vst [vmem:[#allocation6_spill] sm:$0xff] %v1701_v48  ;;  %v1724_v48 = vmul.f32 %v3074_v13, %v1439_v12  ;;  %3076 = vst [vmem:[#allocation7_spill] sm:$0xff] %v1729_v25  ;;  %v3081_v42 = vunpack.c.h.bf16 %v1418_v9  ;;  %v3083_v25 = vunpack.c.l.bf16 %v1423_v17  ;;  %v3084_v8 = vunpack.c.h.bf16 %v1423_v17 }
 0x133   :  { %v1734_v24 = vmul.f32 %v3077_v63, %v1439_v12  ;;  %v1739_v30 = vmul.f32 %v3078_v4, %v1439_v12  ;;  %v1744_v13 = vmul.f32 %v3080_v22, %v1439_v12  ;;  %v3087_v9 = vunpack.c.h.bf16 %v1431_v28 }
 0x134   :  { %v1749_v23 = vmul.f32 %v3081_v42, %v1439_v12  ;;  %v1754_v63 = vmul.f32 %v3083_v25, %v1439_v12  ;;  %v1759_v4 = vmul.f32 %v3084_v8, %v1439_v12  ;;  %v3089_v17 = vunpack.c.h.bf16 %v1436_v15 }
 0x135   :  { %3079 = vst [vmem:[#allocation8_spill] sm:$0xff] %v1739_v30  ;;  %v3086_v30 = vunpack.c.l.bf16 %v1431_v28  ;;  %v1769_v42 = vmul.f32 %v3087_v9, %v1439_v12  ;;  %v1791_v28 = vadd.f32 %v1714_v2, %v1469_v11  ;;  %v1811_v11 = vadd.f32 %v1714_v2, %v1494_v32  ;;  %v3093_v9 = vld [vmem:[#allocation3_spill] sm:$0xff] }
 0x136   :  { %3082 = vst [vmem:[#allocation9_spill] sm:$0xff] %v1749_v23  ;;  %3085 = vst [vmem:[#allocation10_spill] sm:$0xff] %v1759_v4  ;;  %v3088_v23 = vunpack.c.l.bf16 %v1436_v15  ;;  %v1779_v8 = vmul.f32 %v3089_v17, %v1439_v12  ;;  %v1783_v4 = vadd.f32 %v1714_v2, %v1457_v5  ;;  %v1803_v5 = vadd.f32 %v1714_v2, %v1484_v31 }
 0x137   :  { %v1764_v22 = vmul.f32 %v3086_v30, %v1439_v12  ;;  %v1787_v30 = vadd.f32 %v1714_v2, %v1462_v3  ;;  %v1807_v3 = vadd.f32 %v1714_v2, %v1489_v29  ;;  %v1819_v15 = vadd.f32 %v1714_v2, %v1504_v33 }
 0x138   :  { %v1774_v25 = vmul.f32 %v3088_v23, %v1439_v12  ;;  %v1795_v23 = vadd.f32 %v1714_v2, %v1474_v18  ;;  %v1799_v12 = vadd.f32 %v1714_v2, %v1479_v37  ;;  %v1815_v18 = vadd.f32 %v1714_v2, %v1499_v38 }
 0x139   :  { %v1823_v37 = vadd.f32 %v1714_v2, %v1509_v39  ;;  %v1827_v31 = vadd.f32 %v1714_v2, %v1514_v34  ;;  %v1831_v29 = vadd.f32 %v1714_v2, %v1519_v43  ;;  %v1835_v32 = vadd.f32 %v1714_v2, %v1524_v35 }
 0x13a   :  { %v1839_v38 = vadd.f32 %v1714_v2, %v1529_v44  ;;  %v1843_v33 = vadd.f32 %v1714_v2, %v1534_v36  ;;  %v1847_v39 = vadd.f32 %v1714_v2, %v1539_v45  ;;  %v1851_v34 = vadd.f32 %v1714_v2, %v1544_v40 }
 0x13b   :  { %v1855_v43 = vadd.f32 %v1714_v2, %v1549_v50  ;;  %v1859_v35 = vadd.f32 %v1714_v2, %v1554_v51  ;;  %v1863_v44 = vadd.f32 %v1714_v2, %v1559_v55  ;;  %v1867_v36 = vadd.f32 %v1714_v2, %v1564_v56 }
 0x13c   :  { %v1871_v45 = vadd.f32 %v1714_v2, %v1569_v58  ;;  %v1875_v40 = vadd.f32 %v1714_v2, %v1574_v60  ;;  %v1879_v50 = vadd.f32 %v1714_v2, %v1579_v62  ;;  %v1883_v51 = vadd.f32 %v1714_v2, %v1584_v10 }
 0x13d   :  { %v1887_v55 = vadd.f32 %v1714_v2, %v1589_v41  ;;  %v1891_v56 = vadd.f32 %v1714_v2, %v1594_v52  ;;  %v1895_v58 = vadd.f32 %v1714_v2, %v1599_v57  ;;  %v1899_v60 = vadd.f32 %v1714_v2, %v1605_v53 }
 0x13e   :  { %v1903_v62 = vadd.f32 %v1714_v2, %v1610_v16  ;;  %v1907_v10 = vadd.f32 %v1714_v2, %v1615_v54  ;;  %v1911_v41 = vadd.f32 %v1714_v2, %v1620_v21  ;;  %v1915_v52 = vadd.f32 %v1714_v2, %v1625_v46  ;;  %v3090_v21 = vld [vmem:[#allocation2_spill] sm:$0xff] }
 0x13f   :  { %v1919_v57 = vadd.f32 %v1714_v2, %v1630_v49  ;;  %v1923_v16 = vadd.f32 %v1714_v2, %v1635_v0  ;;  %v1927_v53 = vadd.f32 %v1714_v2, %v1640_v47  ;;  %v1931_v54 = vadd.f32 %v1714_v2, %v1645_v1 }
 0x140   :  { %v1935_v46 = vadd.f32 %v1714_v2, %v3090_v21  ;;  %v1939_v49 = vadd.f32 %v1714_v2, %v1655_v6  ;;  %v1943_v0 = vadd.f32 %v1714_v2, %v1661_v19  ;;  %v1947_v47 = vadd.f32 %v1714_v2, %v1666_v7  ;;  %v3094_v21 = vld [vmem:[#allocation4_spill] sm:$0xff] }
 0x141   :  { %v1951_v1 = vadd.f32 %v1714_v2, %v1671_v61  ;;  %v1955_v17 = vadd.f32 %v1714_v2, %v3093_v9  ;;  %v1959_v6 = vadd.f32 %v1714_v2, %v1681_v59  ;;  %v1963_v19 = vadd.f32 %v1714_v2, %v3094_v21 }
 0x142   :  { %3091 = vst [vmem:[#allocation2_spill] sm:$0xff] %v1943_v0  ;;  %v3095_v0 = vld [vmem:[#allocation5_spill] sm:$0xff]  ;;  %v1971_v61 = vadd.f32 %v1714_v2, %v1696_v20  ;;  %v1979_v59 = vadd.f32 %v1714_v2, %v1706_v26  ;;  %v1983_v21 = vadd.f32 %v1714_v2, %v1711_v14  ;;  %v1991_v20 = vadd.f32 %v1714_v2, %v1724_v48 }
 0x143   :  { %3092 = vst [vmem:[#allocation11_spill] sm:$0xff] %v1951_v1  ;;  %v1967_v7 = vadd.f32 %v1714_v2, %v3095_v0  ;;  %v3097_v1 = vld [vmem:[#allocation6_spill] sm:$0xff]  ;;  %v1987_v0 = vadd.f32 %v1714_v2, %v1719_v27  ;;  %v1999_v26 = vadd.f32 %v1714_v2, %v1734_v24  ;;  %v2007_v27 = vadd.f32 %v1714_v2, %v1744_v13 }
 0x144   :  { %3096 = vst [vmem:[#allocation3_spill] sm:$0xff] %v1971_v61  ;;  %v1975_v9 = vadd.f32 %v1714_v2, %v3097_v1  ;;  %3099 = vst [vmem:[#allocation5_spill] sm:$0xff] %v1979_v59  ;;  %v3103_v61 = vld [vmem:[#allocation7_spill] sm:$0xff]  ;;  %v3106_v59 = vld [vmem:[#allocation8_spill] sm:$0xff]  ;;  %v2027_v13 = vadd.f32 %v1714_v2, %v1769_v42  ;;  %vm363_vm3 = vcmp.gt.f32.partialorder %v1783_v4, 0.0  ;;  %vm364_vm4 = vcmp.gt.f32.partialorder %v1787_v30, 0.0 }
 0x145   :  { %3100 = vst [vmem:[#allocation6_spill] sm:$0xff] %v1983_v21  ;;  %3101 = vst [vmem:[#allocation12_spill] sm:$0xff] %v1987_v0  ;;  %v1995_v1 = vadd.f32 %v1714_v2, %v3103_v61  ;;  %v2003_v14 = vadd.f32 %v1714_v2, %v3106_v59  ;;  %v3109_v0 = vld [vmem:[#allocation9_spill] sm:$0xff]  ;;  %v2015_v61 = vadd.f32 %v1714_v2, %v1754_v63  ;;  %vm365_vm5 = vcmp.gt.f32.partialorder %v1791_v28, 0.0 }
 0x146   :  { %3098 = vst [vmem:[#allocation4_spill] sm:$0xff] %v1975_v9  ;;  %3102 = vst [vmem:[#allocation13_spill] sm:$0xff] %v1991_v20  ;;  %v2011_v48 = vadd.f32 %v1714_v2, %v3109_v0  ;;  %v2023_v59 = vadd.f32 %v1714_v2, %v1764_v22  ;;  %vm366_vm6 = vcmp.gt.f32.partialorder %v1795_v23, 0.0  ;;  %vm367_vm7 = vcmp.gt.f32.partialorder %v1799_v12, 0.0 }
 0x147   :  { %3104 = vst [vmem:[#allocation7_spill] sm:$0xff] %v1995_v1  ;;  %3105 = vst [vmem:[#allocation14_spill] sm:$0xff] %v1999_v26  ;;  %v3112_v1 = vld [vmem:[#allocation10_spill] sm:$0xff]  ;;  %vm368_vm8 = vcmp.gt.f32.partialorder %v1803_v5, 0.0  ;;  %vm369_vm9 = vcmp.gt.f32.partialorder %v1807_v3, 0.0  ;;  %vm370_vm10 = vcmp.gt.f32.partialorder %v1811_v11, 0.0  ;;  %v2040_v63 = vadd.f32 %v1714_v2, %v1774_v25 }
 0x148   :  { %3107 = vst [vmem:[#allocation8_spill] sm:$0xff] %v2003_v14  ;;  %3108 = vst [vmem:[#allocation15_spill] sm:$0xff] %v2007_v27  ;;  %v2019_v24 = vadd.f32 %v1714_v2, %v3112_v1  ;;  %vm371_vm11 = vcmp.gt.f32.partialorder %v1815_v18, 0.0  ;;  %vm372_vm12 = vcmp.gt.f32.partialorder %v1819_v15, 0.0  ;;  %v427_v22 = vmul.f32 0.01, %v1783_v4 }
 0x149   :  { %3110 = vst [vmem:[#allocation9_spill] sm:$0xff] %v2011_v48  ;;  %3111 = vst [vmem:[#allocation16_spill] sm:$0xff] %v2015_v61  ;;  %v428_v42 = vmul.f32 0.01, %v1787_v30  ;;  %v429_v0 = vmul.f32 0.01, %v1791_v28  ;;  %v2048_v1 = vadd.f32 %v1714_v2, %v1779_v8 }
 0x14a   :  { %3113 = vst [vmem:[#allocation10_spill] sm:$0xff] %v2019_v24  ;;  %3114 = vst [vmem:[#allocation17_spill] sm:$0xff] %v2023_v59  ;;  %vm373_vm13 = vcmp.gt.f32.partialorder %v1823_v37, 0.0  ;;  %v431_v59 = vmul.f32 0.01, %v1799_v12  ;;  %vm374_vm14 = vcmp.gt.f32.partialorder %v1827_v31, 0.0  ;;  %v2061_v2 = vsel %vm363_vm3, %v1783_v4, %v427_v22 }
 0x14b   :  { %3115 = vst [vmem:[#allocation18_spill] sm:$0xff] %v2027_v13  ;;  %3116 = vst [vmem:[#allocation19_spill] sm:$0xff] %v2040_v63  ;;  %v430_v13 = vmul.f32 0.01, %v1795_v23  ;;  %v432_v25 = vmul.f32 0.01, %v1803_v5  ;;  %v2072_v27 = vsel %vm364_vm4, %v1787_v30, %v428_v42 }
 0x14c   :  { %3117 = vst [vmem:[#allocation20_spill] sm:$0xff] %v2048_v1  ;;  %v433_v63 = vmul.f32 0.01, %v1807_v3  ;;  %v434_v24 = vmul.f32 0.01, %v1811_v11  ;;  %3118 = vst [vmem:[#allocation21_spill] sm:$0xff] %v2061_v2  ;;  %v2087_v2 = vsel %vm365_vm5, %v1791_v28, %v429_v0 }
 0x14d   :  { %v435_v61 = vmul.f32 0.01, %v1815_v18  ;;  %vm375_vm15 = vcmp.gt.f32.partialorder %v1831_v29, 0.0  ;;  %v436_v8 = vmul.f32 0.01, %v1819_v15  ;;  %3119 = vst [vmem:[#allocation22_spill] sm:$0xff] %v2072_v27  ;;  %v2102_v26 = vsel %vm366_vm6, %v1795_v23, %v430_v13 }
 0x14e   :  { %v437_v1 = vmul.f32 0.01, %v1823_v37  ;;  %v2067_v48 = vmul.f32 0.01, %v1827_v31  ;;  %vm376_vm0 = vcmp.gt.f32.partialorder %v1835_v32, 0.0  ;;  %3120 = vst [vmem:[#allocation23_spill] sm:$0xff] %v2087_v2 }
 0x14f   :  { %v2076_v14 = vmul.f32 0.01, %v1831_v29  ;;  %v2079_v4 = vmul.f32 0.01, %v1835_v32  ;;  %v2082_v22 = vmul.f32 0.01, %v1839_v38 }
 0x150   :  { %vm377_vm1 = vcmp.gt.f32.partialorder %v1839_v38, 0.0  ;;  %v2091_v30 = vmul.f32 0.01, %v1843_v33  ;;  %v2094_v42 = vmul.f32 0.01, %v1847_v39  ;;  %3122 = vst [vmem:[#allocation25_spill] sm:$0xff] %v2102_v26 }
 0x151   :  { %v2097_v27 = vmul.f32 0.01, %v1851_v34  ;;  %vm378_vm2 = vcmp.gt.f32.partialorder %v1843_v33, 0.0  ;;  %v2106_v28 = vmul.f32 0.01, %v1855_v43  ;;  %vm379_vm3 = vcmp.gt.f32.partialorder %v1847_v39, 0.0 }
 0x152   :  { %v2109_v0 = vmul.f32 0.01, %v1859_v35  ;;  %v2112_v2 = vmul.f32 0.01, %v1863_v44  ;;  %v2121_v23 = vmul.f32 0.01, %v1867_v36 }
 0x153   :  { %3121 = vst [vmem:[#allocation24_spill] sm:$0xff] %v2097_v27  ;;  %v2117_v27 = vsel %vm367_vm7, %v1799_v12, %v431_v59  ;;  %v2124_v13 = vmul.f32 0.01, %v1871_v45  ;;  %v2127_v26 = vmul.f32 0.01, %v1875_v40  ;;  %vm380_vm4 = vcmp.gt.f32.partialorder %v1851_v34, 0.0 }
 0x154   :  { %3123 = vst [vmem:[#allocation26_spill] sm:$0xff] %v2112_v2  ;;  %3124 = vst [vmem:[#allocation27_spill] sm:$0xff] %v2117_v27  ;;  %v2132_v2 = vsel %vm368_vm8, %v1803_v5, %v432_v25  ;;  %v2136_v12 = vmul.f32 0.01, %v1879_v50  ;;  %v2139_v59 = vmul.f32 0.01, %v1883_v51 }
 0x155   :  { %3125 = vst [vmem:[#allocation28_spill] sm:$0xff] %v2127_v26  ;;  %3126 = vst [vmem:[#allocation29_spill] sm:$0xff] %v2132_v2  ;;  %v2142_v27 = vmul.f32 0.01, %v1887_v55  ;;  %v2147_v26 = vsel %vm369_vm9, %v1807_v3, %v433_v63  ;;  %vm381_vm5 = vcmp.gt.f32.partialorder %v1855_v43, 0.0  ;;  %vm382_vm6 = vcmp.gt.f32.partialorder %v1859_v35, 0.0 }
 0x156   :  { %3128 = vst [vmem:[#allocation31_spill] sm:$0xff] %v2147_v26  ;;  %v2151_v5 = vmul.f32 0.01, %v1891_v56  ;;  %v2154_v25 = vmul.f32 0.01, %v1895_v58  ;;  %vm385_vm9 = vcmp.gt.f32.partialorder %v1871_v45, 0.0 }
 0x157   :  { %3127 = vst [vmem:[#allocation30_spill] sm:$0xff] %v2142_v27  ;;  %v2157_v2 = vmul.f32 0.01, %v1899_v60  ;;  %v2162_v27 = vsel %vm370_vm10, %v1811_v11, %v434_v24  ;;  %v2168_v3 = vmul.f32 0.01, %v1903_v62  ;;  %v2179_v11 = vsel %vm371_vm11, %v1815_v18, %v435_v61 }
 0x158   :  { %3129 = vst [vmem:[#allocation32_spill] sm:$0xff] %v2162_v27  ;;  %v2171_v63 = vmul.f32 0.01, %v1907_v10  ;;  %v2174_v26 = vmul.f32 0.01, %v1911_v41  ;;  %3131 = vst [vmem:[#allocation34_spill] sm:$0xff] %v2179_v11  ;;  %v2197_v18 = vsel %vm372_vm12, %v1819_v15, %v436_v8  ;;  %v2215_v15 = vsel %vm373_vm13, %v1823_v37, %v437_v1 }
 0x159   :  { %v2186_v24 = vmul.f32 0.01, %v1915_v52  ;;  %v2189_v27 = vmul.f32 0.01, %v1919_v57  ;;  %3133 = vst [vmem:[#allocation36_spill] sm:$0xff] %v2197_v18  ;;  %vm389_vm11 = vcmp.gt.f32.partialorder %v1887_v55, 0.0  ;;  %v2234_v37 = vsel %vm374_vm14, %v1827_v31, %v2067_v48 }
 0x15a   :  { %3130 = vst [vmem:[#allocation33_spill] sm:$0xff] %v2174_v26  ;;  %v2192_v26 = vmul.f32 0.01, %v1923_v16  ;;  %v2204_v61 = vmul.f32 0.01, %v1927_v53  ;;  %3136 = vst [vmem:[#allocation39_spill] sm:$0xff] %v2215_v15  ;;  %v2253_v31 = vsel %vm375_vm15, %v1831_v29, %v2076_v14  ;;  %v2272_v29 = vsel %vm376_vm0, %v1835_v32, %v2079_v4 }
 0x15b   :  { %v2207_v11 = vmul.f32 0.01, %v1931_v54  ;;  %vm393_vm12 = vcmp.gt.f32.partialorder %v1903_v62, 0.0  ;;  %v2222_v8 = vmul.f32 0.01, %v1939_v49  ;;  %v3137_v18 = vld [vmem:[#allocation2_spill] sm:$0xff]  ;;  %v2291_v32 = vsel %vm377_vm1, %v1839_v38, %v2082_v22 }
 0x15c   :  { %3132 = vst [vmem:[#allocation35_spill] sm:$0xff] %v2192_v26  ;;  %v2210_v26 = vmul.f32 0.01, %v1935_v46  ;;  %3140 = vst [vmem:[#allocation41_spill] sm:$0xff] %v2234_v37  ;;  %vm397_vm13 = vcmp.gt.f32.partialorder %v1919_v57, 0.0  ;;  %v3141_v1 = vld [vmem:[#allocation11_spill] sm:$0xff]  ;;  %v2310_v38 = vsel %vm378_vm2, %v1843_v33, %v2091_v30  ;;  %v2323_v33 = vsel %vm379_vm3, %v1847_v39, %v2094_v42 }
 0x15d   :  { %3134 = vst [vmem:[#allocation37_spill] sm:$0xff] %v2207_v11  ;;  %v2225_v11 = vmul.f32 0.01, %v3137_v18  ;;  %v2241_v15 = vmul.f32 0.01, %v3141_v1  ;;  %3144 = vst [vmem:[#allocation43_spill] sm:$0xff] %v2253_v31 }
 0x15e   :  { %3135 = vst [vmem:[#allocation38_spill] sm:$0xff] %v2210_v26  ;;  %v2228_v26 = vmul.f32 0.01, %v1947_v47  ;;  %vm401_vm14 = vcmp.gt.f32.partialorder %v1935_v46, 0.0  ;;  %v2260_v48 = vmul.f32 0.01, %v1963_v19 }
 0x15f   :  { %3138 = vst [vmem:[#allocation2_spill] sm:$0xff] %v2225_v11  ;;  %v2244_v11 = vmul.f32 0.01, %v1955_v17  ;;  %v2263_v37 = vmul.f32 0.01, %v1967_v7  ;;  %3148 = vst [vmem:[#allocation45_spill] sm:$0xff] %v2272_v29 }
 0x160   :  { %3139 = vst [vmem:[#allocation40_spill] sm:$0xff] %v2228_v26  ;;  %v2247_v26 = vmul.f32 0.01, %v1959_v6  ;;  %vm405_vm15 = vcmp.gt.f32.partialorder %v3141_v1, 0.0  ;;  %v2279_v14 = vmul.f32 0.01, %v1975_v9 }
 0x161   :  { %3142 = vst [vmem:[#allocation11_spill] sm:$0xff] %v2244_v11  ;;  %3145 = vst [vmem:[#allocation44_spill] sm:$0xff] %v2263_v37  ;;  %v3150_v31 = vld [vmem:[#allocation5_spill] sm:$0xff]  ;;  %vm409_vm0 = vcmp.gt.f32.partialorder %v1967_v7, 0.0  ;;  %v3154_v4 = vld [vmem:[#allocation12_spill] sm:$0xff]  ;;  %vm413_vm1 = vcmp.gt.f32.partialorder %v1983_v21, 0.0 }
 0x162   :  { %3143 = vst [vmem:[#allocation42_spill] sm:$0xff] %v2247_v26  ;;  %v3146_v26 = vld [vmem:[#allocation3_spill] sm:$0xff]  ;;  %3149 = vst [vmem:[#allocation46_spill] sm:$0xff] %v2279_v14  ;;  %v2282_v37 = vmul.f32 0.01, %v3150_v31  ;;  %v3160_v22 = vld [vmem:[#allocation14_spill] sm:$0xff] }
 0x163   :  { %v2266_v11 = vmul.f32 0.01, %v3146_v26  ;;  %3153 = vst [vmem:[#allocation49_spill] sm:$0xff] %v2291_v32  ;;  %v2298_v29 = vmul.f32 0.01, %v3154_v4  ;;  %3159 = vst [vmem:[#allocation53_spill] sm:$0xff] %v2310_v38 }
 0x164   :  { %3151 = vst [vmem:[#allocation47_spill] sm:$0xff] %v2282_v37  ;;  %v2301_v37 = vmul.f32 0.01, %v1991_v20  ;;  %v481_v32 = vmul.f32 0.01, %v3160_v22  ;;  %v3162_v31 = vld [vmem:[#allocation15_spill] sm:$0xff] }
 0x165   :  { %3147 = vst [vmem:[#allocation3_spill] sm:$0xff] %v2266_v11  ;;  %v2285_v11 = vmul.f32 0.01, %v1983_v21  ;;  %3155 = vst [vmem:[#allocation50_spill] sm:$0xff] %v2298_v29  ;;  %vm417_vm2 = vcmp.gt.f32.partialorder %v3160_v22, 0.0  ;;  %v3164_v30 = vld [vmem:[#allocation9_spill] sm:$0xff] }
 0x166   :  { %3156 = vst [vmem:[#allocation51_spill] sm:$0xff] %v2301_v37  ;;  %v3161_v37 = vld [vmem:[#allocation8_spill] sm:$0xff]  ;;  %3163 = vst [vmem:[#allocation54_spill] sm:$0xff] %v2323_v33  ;;  %v484_v38 = vmul.f32 0.01, %v3164_v30  ;;  %v3166_v4 = vld [vmem:[#allocation10_spill] sm:$0xff] }
 0x167   :  { %3152 = vst [vmem:[#allocation48_spill] sm:$0xff] %v2285_v11  ;;  %v3157_v11 = vld [vmem:[#allocation7_spill] sm:$0xff]  ;;  %v482_v29 = vmul.f32 0.01, %v3161_v37  ;;  %v486_v21 = vmul.f32 0.01, %v3166_v4 }
 0x168   :  { %v2304_v14 = vmul.f32 0.01, %v3157_v11  ;;  %v3165_v11 = vld [vmem:[#allocation16_spill] sm:$0xff]  ;;  %v3169_v42 = vld [vmem:[#allocation17_spill] sm:$0xff]  ;;  %v3170_v33 = vld [vmem:[#allocation18_spill] sm:$0xff]  ;;  %vm3174_vm10 = vcmp.gt.f32.partialorder %v1863_v44, 0.0 }
 0x169   :  { %v485_v20 = vmul.f32 0.01, %v3165_v11  ;;  %v3167_v9 = vld [vmem:[#allocation24_spill] sm:$0xff]  ;;  %vm421_vm3 = vcmp.gt.f32.partialorder %v3165_v11, 0.0  ;;  %vm423_vm7 = vcmp.gt.f32.partialorder %v3169_v42, 0.0  ;;  %v3171_v37 = vld [vmem:[#allocation19_spill] sm:$0xff] }
 0x16a   :  { %3158 = vst [vmem:[#allocation52_spill] sm:$0xff] %v2304_v14  ;;  %v483_v14 = vmul.f32 0.01, %v3162_v31  ;;  %v2336_v39 = vsel %vm380_vm4, %v1851_v34, %v3167_v9  ;;  %v487_v30 = vmul.f32 0.01, %v3169_v42  ;;  %v2349_v34 = vsel %vm381_vm5, %v1855_v43, %v2106_v28  ;;  %v3172_v9 = vld [vmem:[#allocation20_spill] sm:$0xff] }
 0x16b   :  { %3168 = vst [vmem:[#allocation16_spill] sm:$0xff] %v2336_v39  ;;  %v488_v31 = vmul.f32 0.01, %v3170_v33  ;;  %v489_v22 = vmul.f32 0.01, %v3171_v37  ;;  %vm425_vm4 = vcmp.gt.f32.partialorder %v3171_v37, 0.0  ;;  %v2358_v42 = vsel %vm382_vm6, %v1859_v35, %v2109_v0 }
 0x16c   :  { %vm426_vm8 = vcmp.gt.f32.partialorder %v3172_v9, 0.0  ;;  %v490_v39 = vmul.f32 0.01, %v3172_v9  ;;  %v3173_v33 = vld [vmem:[#allocation26_spill] sm:$0xff]  ;;  %vm3175_vm5 = vcmp.gt.f32.partialorder %v1867_v36, 0.0  ;;  %v2376_v28 = vsel %vm385_vm9, %v1871_v45, %v2124_v13  ;;  %v3176_v35 = vld [vmem:[#allocation28_spill] sm:$0xff] }
 0x16d   :  { %v2364_v4 = vsel %vm3174_vm10, %v1863_v44, %v3173_v33  ;;  %v2370_v43 = vsel %vm3175_vm5, %v1867_v36, %v2121_v23  ;;  %vm3177_vm6 = vcmp.gt.f32.partialorder %v1875_v40, 0.0  ;;  %vm3178_vm10 = vcmp.gt.f32.partialorder %v1879_v50, 0.0  ;;  %v3180_v45 = vld [vmem:[#allocation30_spill] sm:$0xff] }
 0x16e   :  { %v2382_v0 = vsel %vm3177_vm6, %v1875_v40, %v3176_v35  ;;  %v2388_v44 = vsel %vm3178_vm10, %v1879_v50, %v2136_v12  ;;  %vm3179_vm5 = vcmp.gt.f32.partialorder %v1883_v51, 0.0  ;;  %vm811_vm9 = vcmask 257024   ;;  %v3214_v33 = vld [vmem:[#allocation6_spill] sm:$0xff] }
 0x16f   :  { %v2394_v36 = vsel %vm3179_vm5, %v1883_v51, %v2139_v59  ;;  %v2400_v23 = vsel %vm389_vm11, %v1887_v55, %v3180_v45  ;;  %vm3181_vm6 = vcmp.gt.f32.partialorder %v1891_v56, 0.0  ;;  %vm3182_vm10 = vcmp.gt.f32.partialorder %v1895_v58, 0.0  ;;  %v3216_v45 = vld [vmem:[#allocation12_spill] sm:$0xff] }
 0x170   :  { %v2406_v40 = vsel %vm3181_vm6, %v1891_v56, %v2151_v5  ;;  %v2412_v50 = vsel %vm3182_vm10, %v1895_v58, %v2154_v25  ;;  %vm3183_vm5 = vcmp.gt.f32.partialorder %v1899_v60, 0.0  ;;  %v2424_v55 = vsel %vm393_vm12, %v1903_v62, %v2168_v3  ;;  %v3185_v58 = vld [vmem:[#allocation33_spill] sm:$0xff]  ;;  %v3201_v3 = vld [vmem:[#allocation42_spill] sm:$0xff] }
 0x171   :  { %v2418_v51 = vsel %vm3183_vm5, %v1899_v60, %v2157_v2  ;;  %vm3184_vm11 = vcmp.gt.f32.partialorder %v1907_v10, 0.0  ;;  %vm3186_vm6 = vcmp.gt.f32.partialorder %v1911_v41, 0.0  ;;  %vm3187_vm10 = vcmp.gt.f32.partialorder %v1915_v52, 0.0 }
 0x172   :  { %v2430_v56 = vsel %vm3184_vm11, %v1907_v10, %v2171_v63  ;;  %v2436_v13 = vsel %vm3186_vm6, %v1911_v41, %v3185_v58  ;;  %v2442_v60 = vsel %vm3187_vm10, %v1915_v52, %v2186_v24  ;;  %v2448_v62 = vsel %vm397_vm13, %v1919_v57, %v2189_v27  ;;  %v3188_v10 = vld [vmem:[#allocation35_spill] sm:$0xff]  ;;  %v3191_v52 = vld [vmem:[#allocation37_spill] sm:$0xff]  ;;  %v3193_v57 = vld [vmem:[#allocation38_spill] sm:$0xff] }
 0x173   :  { %vm3189_vm12 = vcmp.gt.f32.partialorder %v1923_v16, 0.0  ;;  %vm3190_vm5 = vcmp.gt.f32.partialorder %v1927_v53, 0.0  ;;  %vm3192_vm11 = vcmp.gt.f32.partialorder %v1931_v54, 0.0  ;;  %v2472_v27 = vsel %vm401_vm14, %v1935_v46, %v3193_v57  ;;  %v3204_v24 = vld [vmem:[#allocation44_spill] sm:$0xff] }
 0x174   :  { %v2454_v2 = vsel %vm3189_vm12, %v1923_v16, %v3188_v10  ;;  %v2460_v41 = vsel %vm3190_vm5, %v1927_v53, %v2204_v61  ;;  %v2466_v12 = vsel %vm3192_vm11, %v1931_v54, %v3191_v52  ;;  %vm3194_vm13 = vcmp.gt.f32.partialorder %v1939_v49, 0.0  ;;  %v3195_v53 = vld [vmem:[#allocation2_spill] sm:$0xff]  ;;  %v3197_v54 = vld [vmem:[#allocation40_spill] sm:$0xff]  ;;  %v3218_v10 = vld [vmem:[#allocation51_spill] sm:$0xff] }
 0x175   :  { %v2478_v16 = vsel %vm3194_vm13, %v1939_v49, %v2222_v8  ;;  %vm3196_vm6 = vcmp.gt.f32.partialorder %v3137_v18, 0.0  ;;  %vm3198_vm10 = vcmp.gt.f32.partialorder %v1947_v47, 0.0  ;;  %v2496_v46 = vsel %vm405_vm15, %v3141_v1, %v2241_v15  ;;  %v3199_v49 = vld [vmem:[#allocation11_spill] sm:$0xff]  ;;  %v3208_v15 = vld [vmem:[#allocation4_spill] sm:$0xff]  ;;  %v3211_v1 = vld [vmem:[#allocation5_spill] sm:$0xff] }
 0x176   :  { %v2484_v59 = vsel %vm3196_vm6, %v3137_v18, %v3195_v53  ;;  %v2490_v5 = vsel %vm3198_vm10, %v1947_v47, %v3197_v54  ;;  %vm3200_vm14 = vcmp.gt.f32.partialorder %v1955_v17, 0.0  ;;  %vm3202_vm12 = vcmp.gt.f32.partialorder %v1959_v6, 0.0  ;;  %v3219_v52 = vld [vmem:[#allocation13_spill] sm:$0xff]  ;;  %v3221_v53 = vld [vmem:[#allocation52_spill] sm:$0xff]  ;;  %v3222_v54 = vld [vmem:[#allocation7_spill] sm:$0xff] }
 0x177   :  { %v2502_v25 = vsel %vm3200_vm14, %v1955_v17, %v3199_v49  ;;  %v2508_v63 = vsel %vm3202_vm12, %v1959_v6, %v3201_v3  ;;  %vm3203_vm5 = vcmp.gt.f32.partialorder %v1963_v19, 0.0  ;;  %v2520_v18 = vsel %vm409_vm0, %v1967_v7, %v3204_v24  ;;  %v3205_v17 = vld [vmem:[#allocation3_spill] sm:$0xff]  ;;  %v3207_v6 = vld [vmem:[#allocation46_spill] sm:$0xff]  ;;  %v3213_v7 = vld [vmem:[#allocation48_spill] sm:$0xff] }
 0x178   :  { %v2514_v47 = vsel %vm3203_vm5, %v1963_v19, %v2260_v48  ;;  %vm3206_vm15 = vcmp.gt.f32.partialorder %v3146_v26, 0.0  ;;  %vm3209_vm11 = vcmp.gt.f32.partialorder %v3208_v15, 0.0  ;;  %v3210_v19 = vld [vmem:[#allocation47_spill] sm:$0xff]  ;;  %vm3212_vm13 = vcmp.gt.f32.partialorder %v3211_v1, 0.0  ;;  %v3224_v3 = vld [vmem:[#allocation14_spill] sm:$0xff] }
 0x179   :  { %v2526_v61 = vsel %vm3206_vm15, %v3146_v26, %v3205_v17  ;;  %v2532_v8 = vsel %vm3209_vm11, %v3208_v15, %v3207_v6  ;;  %v2538_v48 = vsel %vm3212_vm13, %v3211_v1, %v3210_v19  ;;  %v2544_v35 = vsel %vm413_vm1, %v3214_v33, %v3213_v7  ;;  %v3215_v26 = vld [vmem:[#allocation50_spill] sm:$0xff]  ;;  %v3225_v17 = vld [vmem:[#allocation8_spill] sm:$0xff]  ;;  %v3227_v15 = vld [vmem:[#allocation15_spill] sm:$0xff] }
 0x17a   :  { %vm3217_vm0 = vcmp.gt.f32.partialorder %v3216_v45, 0.0  ;;  %vm3220_vm6 = vcmp.gt.f32.partialorder %v3219_v52, 0.0  ;;  %vm3223_vm10 = vcmp.gt.f32.partialorder %v3222_v54, 0.0  ;;  %v2567_v24 = vsel %vm417_vm2, %v3224_v3, %v481_v32  ;;  %v3229_v1 = vld [vmem:[#allocation9_spill] sm:$0xff]  ;;  %v3231_v33 = vld [vmem:[#allocation10_spill] sm:$0xff] }
 0x17b   :  { %v2550_v58 = vsel %vm3217_vm0, %v3216_v45, %v3215_v26  ;;  %v2556_v57 = vsel %vm3220_vm6, %v3219_v52, %v3218_v10  ;;  %v2562_v49 = vsel %vm3223_vm10, %v3222_v54, %v3221_v53  ;;  %vm3226_vm1 = vcmp.gt.f32.partialorder %v3225_v17, 0.0  ;;  %v3233_v26 = vld [vmem:[#allocation17_spill] sm:$0xff]  ;;  %v3234_v45 = vld [vmem:[#allocation18_spill] sm:$0xff]  ;;  %v3238_v53 = vld [vmem:[#allocation23_spill] sm:$0xff] }
 0x17c   :  { %v2572_v6 = vsel %vm3226_vm1, %v3225_v17, %v482_v29  ;;  %vm3228_vm14 = vcmp.gt.f32.partialorder %v3227_v15, 0.0  ;;  %vm3230_vm12 = vcmp.gt.f32.partialorder %v3229_v1, 0.0  ;;  %v2587_v32 = vsel %vm421_vm3, %v3165_v11, %v485_v20  ;;  %v3236_v11 = vld [vmem:[#allocation21_spill] sm:$0xff]  ;;  %v3240_v17 = vld [vmem:[#allocation27_spill] sm:$0xff] }
 0x17d   :  { %v2577_v19 = vsel %vm3228_vm14, %v3227_v15, %v483_v14  ;;  %v2582_v7 = vsel %vm3230_vm12, %v3229_v1, %v484_v38  ;;  %vm3232_vm2 = vcmp.gt.f32.partialorder %v3231_v33, 0.0  ;;  %v2597_v14 = vsel %vm423_vm7, %v3233_v26, %v487_v30  ;;  %v3237_v30 = vld [vmem:[#allocation22_spill] sm:$0xff]  ;;  %v3239_v54 = vld [vmem:[#allocation25_spill] sm:$0xff]  ;;  %v3243_v1 = vld [vmem:[#allocation32_spill] sm:$0xff] }
 0x17e   :  { %v2592_v29 = vsel %vm3232_vm2, %v3231_v33, %v486_v21  ;;  %vm3235_vm5 = vcmp.gt.f32.partialorder %v3234_v45, 0.0  ;;  %v2607_v20 = vsel %vm425_vm4, %v3171_v37, %v489_v22  ;;  %v2612_v21 = vsel %vm426_vm8, %v3172_v9, %v490_v39  ;;  %v3241_v22 = vld [vmem:[#allocation29_spill] sm:$0xff]  ;;  %v3242_v39 = vld [vmem:[#allocation31_spill] sm:$0xff]  ;;  %v3244_v26 = vld [vmem:[#allocation34_spill] sm:$0xff] }
 0x17f   :  { %v2602_v38 = vsel %vm3235_vm5, %v3234_v45, %v488_v31  ;;  %v944_v10 = vpack.c.bf16 %v3236_v11, %v3236_v11  ;;  %v945_v52 = vpack.c.bf16 %v3237_v30, %v3237_v30  ;;  %v946_v31 = vpack.c.bf16 %v3238_v53, %v3238_v53  ;;  %v3245_v11 = vld [vmem:[#allocation36_spill] sm:$0xff]  ;;  %v3246_v53 = vld [vmem:[#allocation39_spill] sm:$0xff] }
 0x180   :  { %v947_v3 = vpack.c.bf16 %v3239_v54, %v3239_v54  ;;  %v948_v37 = vpack.c.bf16 %v3240_v17, %v3240_v17  ;;  %v949_v15 = vpack.c.bf16 %v3241_v22, %v3241_v22  ;;  %v950_v9 = vpack.c.bf16 %v3242_v39, %v3242_v39  ;;  %v3247_v17 = vld [vmem:[#allocation41_spill] sm:$0xff]  ;;  %v3248_v39 = vld [vmem:[#allocation43_spill] sm:$0xff] }
 0x181   :  { %v951_v33 = vpack.c.bf16 %v3243_v1, %v3243_v1  ;;  %v952_v45 = vpack.c.bf16 %v3244_v26, %v3244_v26  ;;  %v953_v30 = vpack.c.bf16 %v3245_v11, %v3245_v11  ;;  %812 = vst.msk [vmem:[%s3002_s4] sm:$0xf] %vm811_vm9, %v944_v10  ;;  %813 = vst.msk [vmem:[%s3002_s4 + $0x4] sm:$0xf] %vm811_vm9, %v945_v52  ;;  %v3249_v26 = vld [vmem:[#allocation45_spill] sm:$0xff] }
 0x182   :  { %v954_v54 = vpack.c.bf16 %v3246_v53, %v3246_v53  ;;  %v955_v22 = vpack.c.bf16 %v3247_v17, %v3247_v17  ;;  %v956_v1 = vpack.c.bf16 %v3248_v39, %v3248_v39  ;;  %v957_v11 = vpack.c.bf16 %v3249_v26, %v3249_v26  ;;  %814 = vst.msk [vmem:[%s3002_s4 + $0x8] sm:$0xf] %vm811_vm9, %v946_v31  ;;  %v3250_v10 = vld [vmem:[#allocation49_spill] sm:$0xff]  ;;  %v3252_v17 = vld [vmem:[#allocation54_spill] sm:$0xff] }
 0x183   :  { %815 = vst.msk [vmem:[%s3002_s4 + $0xc] sm:$0xf] %vm811_vm9, %v947_v3  ;;  %816 = vst.msk [vmem:[%s3002_s4 + $0x10] sm:$0xf] %vm811_vm9, %v948_v37  ;;  %v958_v52 = vpack.c.bf16 %v3250_v10, %v3250_v10  ;;  %v3251_v53 = vld [vmem:[#allocation53_spill] sm:$0xff]  ;;  %v960_v39 = vpack.c.bf16 %v3252_v17, %v3252_v17  ;;  %v3253_v3 = vld [vmem:[#allocation16_spill] sm:$0xff]  ;;  %v962_v37 = vpack.c.bf16 %v2349_v34, %v2349_v34 }
 0x184   :  { %817 = vst.msk [vmem:[%s3002_s4 + $0x14] sm:$0xf] %vm811_vm9, %v949_v15  ;;  %v959_v31 = vpack.c.bf16 %v3251_v53, %v3251_v53  ;;  %v961_v26 = vpack.c.bf16 %v3253_v3, %v3253_v3  ;;  %818 = vst.msk [vmem:[%s3002_s4 + $0x18] sm:$0xf] %vm811_vm9, %v950_v9  ;;  %v963_v15 = vpack.c.bf16 %v2358_v42, %v2358_v42 }
 0x185   :  { %819 = vst.msk [vmem:[%s3002_s4 + $0x1c] sm:$0xf] %vm811_vm9, %v951_v33  ;;  %820 = vst.msk [vmem:[%s3002_s4 + $0x20] sm:$0xf] %vm811_vm9, %v952_v45  ;;  %v964_v9 = vpack.c.bf16 %v2364_v4, %v2364_v4  ;;  %v965_v33 = vpack.c.bf16 %v2370_v43, %v2370_v43  ;;  %v966_v4 = vpack.c.bf16 %v2376_v28, %v2376_v28 }
 0x186   :  { %821 = vst.msk [vmem:[%s3002_s4 + $0x24] sm:$0xf] %vm811_vm9, %v953_v30  ;;  %822 = vst.msk [vmem:[%s3002_s4 + $0x28] sm:$0xf] %vm811_vm9, %v954_v54  ;;  %v967_v42 = vpack.c.bf16 %v2382_v0, %v2382_v0  ;;  %v968_v34 = vpack.c.bf16 %v2388_v44, %v2388_v44  ;;  %v969_v43 = vpack.c.bf16 %v2394_v36, %v2394_v36 }
 0x187   :  { %823 = vst.msk [vmem:[%s3002_s4 + $0x2c] sm:$0xf] %vm811_vm9, %v955_v22  ;;  %824 = vst.msk [vmem:[%s3002_s4 + $0x30] sm:$0xf] %vm811_vm9, %v956_v1  ;;  %v970_v28 = vpack.c.bf16 %v2400_v23, %v2400_v23  ;;  %v971_v0 = vpack.c.bf16 %v2406_v40, %v2406_v40  ;;  %v972_v44 = vpack.c.bf16 %v2412_v50, %v2412_v50 }
 0x188   :  { %825 = vst.msk [vmem:[%s3002_s4 + $0x34] sm:$0xf] %vm811_vm9, %v957_v11  ;;  %826 = vst.msk [vmem:[%s3002_s4 + $0x38] sm:$0xf] %vm811_vm9, %v958_v52  ;;  %v973_v36 = vpack.c.bf16 %v2418_v51, %v2418_v51  ;;  %v974_v23 = vpack.c.bf16 %v2424_v55, %v2424_v55  ;;  %v975_v40 = vpack.c.bf16 %v2430_v56, %v2430_v56 }
 0x189   :  { %827 = vst.msk [vmem:[%s3002_s4 + $0x3c] sm:$0xf] %vm811_vm9, %v959_v31  ;;  %828 = vst.msk [vmem:[%s3002_s4 + $0x40] sm:$0xf] %vm811_vm9, %v960_v39  ;;  %v976_v50 = vpack.c.bf16 %v2436_v13, %v2436_v13  ;;  %v977_v51 = vpack.c.bf16 %v2442_v60, %v2442_v60  ;;  %v978_v55 = vpack.c.bf16 %v2448_v62, %v2448_v62 }
 0x18a   :  { %829 = vst.msk [vmem:[%s3002_s4 + $0x44] sm:$0xf] %vm811_vm9, %v961_v26  ;;  %830 = vst.msk [vmem:[%s3002_s4 + $0x48] sm:$0xf] %vm811_vm9, %v962_v37  ;;  %v979_v56 = vpack.c.bf16 %v2454_v2, %v2454_v2  ;;  %v980_v13 = vpack.c.bf16 %v2460_v41, %v2460_v41  ;;  %v981_v60 = vpack.c.bf16 %v2466_v12, %v2466_v12 }
 0x18b   :  { %831 = vst.msk [vmem:[%s3002_s4 + $0x4c] sm:$0xf] %vm811_vm9, %v963_v15  ;;  %832 = vst.msk [vmem:[%s3002_s4 + $0x50] sm:$0xf] %vm811_vm9, %v964_v9  ;;  %v982_v62 = vpack.c.bf16 %v2472_v27, %v2472_v27  ;;  %v983_v2 = vpack.c.bf16 %v2478_v16, %v2478_v16  ;;  %v984_v41 = vpack.c.bf16 %v2484_v59, %v2484_v59 }
 0x18c   :  { %833 = vst.msk [vmem:[%s3002_s4 + $0x54] sm:$0xf] %vm811_vm9, %v965_v33  ;;  %834 = vst.msk [vmem:[%s3002_s4 + $0x58] sm:$0xf] %vm811_vm9, %v966_v4  ;;  %v985_v12 = vpack.c.bf16 %v2490_v5, %v2490_v5  ;;  %v986_v27 = vpack.c.bf16 %v2496_v46, %v2496_v46  ;;  %v987_v16 = vpack.c.bf16 %v2502_v25, %v2502_v25 }
 0x18d   :  { %835 = vst.msk [vmem:[%s3002_s4 + $0x5c] sm:$0xf] %vm811_vm9, %v967_v42  ;;  %836 = vst.msk [vmem:[%s3002_s4 + $0x60] sm:$0xf] %vm811_vm9, %v968_v34  ;;  %v988_v59 = vpack.c.bf16 %v2508_v63, %v2508_v63  ;;  %v989_v5 = vpack.c.bf16 %v2514_v47, %v2514_v47  ;;  %v990_v46 = vpack.c.bf16 %v2520_v18, %v2520_v18 }
 0x18e   :  { %837 = vst.msk [vmem:[%s3002_s4 + $0x64] sm:$0xf] %vm811_vm9, %v969_v43  ;;  %838 = vst.msk [vmem:[%s3002_s4 + $0x68] sm:$0xf] %vm811_vm9, %v970_v28  ;;  %v991_v25 = vpack.c.bf16 %v2526_v61, %v2526_v61  ;;  %v992_v63 = vpack.c.bf16 %v2532_v8, %v2532_v8  ;;  %v993_v47 = vpack.c.bf16 %v2538_v48, %v2538_v48 }
 0x18f   :  { %839 = vst.msk [vmem:[%s3002_s4 + $0x6c] sm:$0xf] %vm811_vm9, %v971_v0  ;;  %840 = vst.msk [vmem:[%s3002_s4 + $0x70] sm:$0xf] %vm811_vm9, %v972_v44  ;;  %v994_v18 = vpack.c.bf16 %v2544_v35, %v2544_v35  ;;  %v995_v61 = vpack.c.bf16 %v2550_v58, %v2550_v58  ;;  %v996_v8 = vpack.c.bf16 %v2556_v57, %v2556_v57 }
 0x190   :  { %841 = vst.msk [vmem:[%s3002_s4 + $0x74] sm:$0xf] %vm811_vm9, %v973_v36  ;;  %842 = vst.msk [vmem:[%s3002_s4 + $0x78] sm:$0xf] %vm811_vm9, %v974_v23  ;;  %v997_v48 = vpack.c.bf16 %v2562_v49, %v2562_v49  ;;  %v998_v35 = vpack.c.bf16 %v2567_v24, %v2567_v24  ;;  %v999_v58 = vpack.c.bf16 %v2572_v6, %v2572_v6 }
 0x191   :  { %843 = vst.msk [vmem:[%s3002_s4 + $0x7c] sm:$0xf] %vm811_vm9, %v975_v40  ;;  %844 = vst.msk [vmem:[%s3002_s4 + $0x80] sm:$0xf] %vm811_vm9, %v976_v50  ;;  %v1000_v57 = vpack.c.bf16 %v2577_v19, %v2577_v19  ;;  %v1001_v49 = vpack.c.bf16 %v2582_v7, %v2582_v7  ;;  %v1002_v24 = vpack.c.bf16 %v2587_v32, %v2587_v32 }
 0x192   :  { %845 = vst.msk [vmem:[%s3002_s4 + $0x84] sm:$0xf] %vm811_vm9, %v977_v51  ;;  %846 = vst.msk [vmem:[%s3002_s4 + $0x88] sm:$0xf] %vm811_vm9, %v978_v55  ;;  %v1003_v6 = vpack.c.bf16 %v2592_v29, %v2592_v29  ;;  %v1004_v19 = vpack.c.bf16 %v2597_v14, %v2597_v14  ;;  %v1005_v7 = vpack.c.bf16 %v2602_v38, %v2602_v38 }
 0x193   :  { %847 = vst.msk [vmem:[%s3002_s4 + $0x8c] sm:$0xf] %vm811_vm9, %v979_v56  ;;  %848 = vst.msk [vmem:[%s3002_s4 + $0x90] sm:$0xf] %vm811_vm9, %v980_v13  ;;  %v1006_v32 = vpack.c.bf16 %v2607_v20, %v2607_v20  ;;  %v1007_v29 = vpack.c.bf16 %v2612_v21, %v2612_v21 }
 0x194   :  { %849 = vst.msk [vmem:[%s3002_s4 + $0x94] sm:$0xf] %vm811_vm9, %v981_v60  ;;  %850 = vst.msk [vmem:[%s3002_s4 + $0x98] sm:$0xf] %vm811_vm9, %v982_v62 }
 0x195   :  { %851 = vst.msk [vmem:[%s3002_s4 + $0x9c] sm:$0xf] %vm811_vm9, %v983_v2  ;;  %852 = vst.msk [vmem:[%s3002_s4 + $0xa0] sm:$0xf] %vm811_vm9, %v984_v41 }
 0x196   :  { %853 = vst.msk [vmem:[%s3002_s4 + $0xa4] sm:$0xf] %vm811_vm9, %v985_v12  ;;  %854 = vst.msk [vmem:[%s3002_s4 + $0xa8] sm:$0xf] %vm811_vm9, %v986_v27 }
 0x197   :  { %855 = vst.msk [vmem:[%s3002_s4 + $0xac] sm:$0xf] %vm811_vm9, %v987_v16  ;;  %856 = vst.msk [vmem:[%s3002_s4 + $0xb0] sm:$0xf] %vm811_vm9, %v988_v59 }
 0x198   :  { %857 = vst.msk [vmem:[%s3002_s4 + $0xb4] sm:$0xf] %vm811_vm9, %v989_v5  ;;  %858 = vst.msk [vmem:[%s3002_s4 + $0xb8] sm:$0xf] %vm811_vm9, %v990_v46 }
 0x199   :  { %859 = vst.msk [vmem:[%s3002_s4 + $0xbc] sm:$0xf] %vm811_vm9, %v991_v25  ;;  %860 = vst.msk [vmem:[%s3002_s4 + $0xc0] sm:$0xf] %vm811_vm9, %v992_v63 }
 0x19a   :  { %861 = vst.msk [vmem:[%s3002_s4 + $0xc4] sm:$0xf] %vm811_vm9, %v993_v47  ;;  %862 = vst.msk [vmem:[%s3002_s4 + $0xc8] sm:$0xf] %vm811_vm9, %v994_v18 }
 0x19b   :  { %863 = vst.msk [vmem:[%s3002_s4 + $0xcc] sm:$0xf] %vm811_vm9, %v995_v61  ;;  %864 = vst.msk [vmem:[%s3002_s4 + $0xd0] sm:$0xf] %vm811_vm9, %v996_v8 }
 0x19c   :  { %865 = vst.msk [vmem:[%s3002_s4 + $0xd4] sm:$0xf] %vm811_vm9, %v997_v48  ;;  %866 = vst.msk [vmem:[%s3002_s4 + $0xd8] sm:$0xf] %vm811_vm9, %v998_v35 }
 0x19d   :  { %867 = vst.msk [vmem:[%s3002_s4 + $0xdc] sm:$0xf] %vm811_vm9, %v999_v58  ;;  %868 = vst.msk [vmem:[%s3002_s4 + $0xe0] sm:$0xf] %vm811_vm9, %v1000_v57 }
 0x19e   :  { %869 = vst.msk [vmem:[%s3002_s4 + $0xe4] sm:$0xf] %vm811_vm9, %v1001_v49  ;;  %870 = vst.msk [vmem:[%s3002_s4 + $0xe8] sm:$0xf] %vm811_vm9, %v1002_v24 }
 0x19f   :  { %871 = vst.msk [vmem:[%s3002_s4 + $0xec] sm:$0xf] %vm811_vm9, %v1003_v6  ;;  %872 = vst.msk [vmem:[%s3002_s4 + $0xf0] sm:$0xf] %vm811_vm9, %v1004_v19 }
 0x1a0   :  { %873 = vst.msk [vmem:[%s3002_s4 + $0xf4] sm:$0xf] %vm811_vm9, %v1005_v7  ;;  %874 = vst.msk [vmem:[%s3002_s4 + $0xf8] sm:$0xf] %vm811_vm9, %v1006_v32 }
 0x1a1   :  { %875 = vst.msk [vmem:[%s3002_s4 + $0xfc] sm:$0xf] %vm811_vm9, %v1007_v29 }

// kernel: decoder_forward.13
= control target key start
LH: loop header
LB: loop body
LE: loop exit
PB: predicated region body
PF: predicated region fallthrough
CT: control target
= control target key end

     0   :  { %v1856_v0 = vmov 0   ;;  %vm448_vm0 = vcmask 130048   ;;  %vm1090_vm1 = vcmask 257024   ;;  %vm1155_vm2 = vcmask 261120   ;;  %s2988_s1 = inlined_call_operand.vmem [shape: bf16[144,32], index: 1, kind: input, shape index: {}]   ;;  %s2989_s0 = inlined_call_operand.vmem [shape: bf16[512,144], index: 0, kind: input, shape index: {}]   ;;  %s2990_s2 = inlined_call_operand.vmem [shape: f32[1,32], index: 2, kind: input, shape index: {}]   ;;  %s2991_s3 = inlined_call_operand.vmem [shape: bf16[512,32], index: 3, kind: output, shape index: {0}]   ;;  %s2992_s4 = inlined_call_operand.vmem [shape: f32[1,2,32], index: 4, kind: output, shape index: {1}]  }
   0x1   :  { %545 = vmatprep.subr.bf16.mxu0 %v1856_v0  ;;  %v1751_v1 = vld [vmem:[%s2988_s1 + $0x38] sm:$0xff]   ;;  %1732 = vmatprep.subr.bf16.mxu1 %v1856_v0  ;;  %v1752_v2 = vld [vmem:[%s2988_s1 + $0x30] sm:$0xff]   ;;  %v1753_v3 = vld [vmem:[%s2988_s1 + $0x28] sm:$0xff]   ;;  %vm1486_vm3 = vcmask 1040384   ;;  %vm1488_vm4 = vcmask 254976  }
   0x2   :  { %546 = vmatpush1.bf16.msra.mxu0 %v1751_v1  ;;  %1741 = vmatpush1.bf16.msra.mxu1 %v1751_v1  ;;  %v1754_v4 = vld [vmem:[%s2988_s1 + $0x20] sm:$0xff]   ;;  %v1755_v6 = vld [vmem:[%s2988_s1 + $0x18] sm:$0xff]   ;;  %v1756_v7 = vld [vmem:[%s2988_s1 + $0x10] sm:$0xff]  }
   0x3   :  { %547 = vmatprep.subr.bf16.mxu0 %v1856_v0  ;;  %1733 = vmatprep.subr.bf16.mxu1 %v1856_v0  ;;  %v1762_v5 = vld [vmem:[%s2989_s0 + $0x4] ss:$8 sps:$4 sm:$0xff]   ;;  %v1760_v12 = vld [vmem:[%s2989_s0] ss:$8 sps:$4 sm:$0xff]   ;;  %v1763_v13 = vld [vmem:[%s2989_s0 + $0x14] ss:$8 sps:$4 sm:$0xff]  }
   0x4   :  { %1572 = vmatprep.mubr.msk.bf16.mxu0 %vm448_vm0, %v1762_v5  ;;  %v1786_v8 = vld [vmem:[%s2989_s0 + $0x104] ss:$8 sps:$4 sm:$0xff]   ;;  %v1784_v14 = vld [vmem:[%s2989_s0 + $0x100] ss:$8 sps:$4 sm:$0xff]   ;;  %v1790_v15 = vld [vmem:[%s2989_s0 + $0x114] ss:$8 sps:$4 sm:$0xff]  }
   0x5   :  { %v1757_v9 = vld [vmem:[%s2988_s1 + $0x8] sm:$0xff]   ;;  %1588 = vmatprep.mubr.msk.bf16.mxu1 %vm448_vm0, %v1786_v8  ;;  %v1758_v10 = vld [vmem:[%s2988_s1] sm:$0xff]   ;;  %v1765_v16 = vld [vmem:[%s2989_s0 + $0x10] ss:$8 sps:$4 sm:$0xff]  }
   0x6   :  { %548 = vmatpush1.bf16.msra.mxu0 %v1752_v2  ;;  %1742 = vmatpush1.bf16.msra.mxu1 %v1752_v2  ;;  %v1759_v11 = vld [vmem:[%s2988_s1 + $0x40] sm:$0xff]   ;;  %v1792_v18 = vld [vmem:[%s2989_s0 + $0x110] ss:$8 sps:$4 sm:$0xff]   ;;  %v1769_v21 = vld [vmem:[%s2989_s0 + $0x34] ss:$8 sps:$4 sm:$0xff]  }
   0x7   :  { %549 = vmatprep.subr.bf16.mxu0 %v1856_v0  ;;  %1734 = vmatprep.subr.bf16.mxu1 %v1856_v0  ;;  %v1766_v17 = vld [vmem:[%s2989_s0 + $0x24] ss:$8 sps:$4 sm:$0xff]   ;;  %v1768_v20 = vld [vmem:[%s2989_s0 + $0x20] ss:$8 sps:$4 sm:$0xff]   ;;  %v1802_v23 = vld [vmem:[%s2989_s0 + $0x134] ss:$8 sps:$4 sm:$0xff]  }
   0x8   :  { %v1796_v19 = vld [vmem:[%s2989_s0 + $0x124] ss:$8 sps:$4 sm:$0xff]   ;;  %v1798_v22 = vld [vmem:[%s2989_s0 + $0x120] ss:$8 sps:$4 sm:$0xff]   ;;  %v1771_v24 = vld [vmem:[%s2989_s0 + $0x30] ss:$8 sps:$4 sm:$0xff]  }
   0x9   :  { %v1804_v25 = vld [vmem:[%s2989_s0 + $0x130] ss:$8 sps:$4 sm:$0xff]   ;;  %v1772_v26 = vld [vmem:[%s2989_s0 + $0x44] ss:$8 sps:$4 sm:$0xff]   ;;  %v1774_v28 = vld [vmem:[%s2989_s0 + $0x40] ss:$8 sps:$4 sm:$0xff]  }
   0xa   :  { %550 = vmatpush1.bf16.msra.mxu0 %v1753_v3  ;;  %1743 = vmatpush1.bf16.msra.mxu1 %v1753_v3  ;;  %v1808_v27 = vld [vmem:[%s2989_s0 + $0x144] ss:$8 sps:$4 sm:$0xff]   ;;  %v1810_v29 = vld [vmem:[%s2989_s0 + $0x140] ss:$8 sps:$4 sm:$0xff]   ;;  %v1775_v30 = vld [vmem:[%s2989_s0 + $0x54] ss:$8 sps:$4 sm:$0xff]  }
   0xb   :  { %551 = vmatprep.subr.bf16.mxu0 %v1856_v0  ;;  %1735 = vmatprep.subr.bf16.mxu1 %v1856_v0  ;;  %v1814_v31 = vld [vmem:[%s2989_s0 + $0x154] ss:$8 sps:$4 sm:$0xff]   ;;  %v1777_v32 = vld [vmem:[%s2989_s0 + $0x50] ss:$8 sps:$4 sm:$0xff]   ;;  %v1778_v34 = vld [vmem:[%s2989_s0 + $0x64] ss:$8 sps:$4 sm:$0xff]  }
   0xc   :  { %v1816_v33 = vld [vmem:[%s2989_s0 + $0x150] ss:$8 sps:$4 sm:$0xff]   ;;  %v1820_v35 = vld [vmem:[%s2989_s0 + $0x164] ss:$8 sps:$4 sm:$0xff]   ;;  %v1780_v36 = vld [vmem:[%s2989_s0 + $0x60] ss:$8 sps:$4 sm:$0xff]  }
   0xd   :  { %v1822_v37 = vld [vmem:[%s2989_s0 + $0x160] ss:$8 sps:$4 sm:$0xff]   ;;  %v1781_v38 = vld [vmem:[%s2989_s0 + $0x74] ss:$8 sps:$4 sm:$0xff]   ;;  %v1783_v40 = vld [vmem:[%s2989_s0 + $0x70] ss:$8 sps:$4 sm:$0xff]  }
   0xe   :  { %552 = vmatpush1.bf16.msra.mxu0 %v1754_v4  ;;  %1744 = vmatpush1.bf16.msra.mxu1 %v1754_v4  ;;  %v1826_v39 = vld [vmem:[%s2989_s0 + $0x174] ss:$8 sps:$4 sm:$0xff]   ;;  %v1828_v41 = vld [vmem:[%s2989_s0 + $0x170] ss:$8 sps:$4 sm:$0xff]   ;;  %v1787_v42 = vld [vmem:[%s2989_s0 + $0x84] ss:$8 sps:$4 sm:$0xff]  }
   0xf   :  { %553 = vmatprep.subr.bf16.mxu0 %v1856_v0  ;;  %1736 = vmatprep.subr.bf16.mxu1 %v1856_v0  ;;  %v1832_v43 = vld [vmem:[%s2989_s0 + $0x184] ss:$8 sps:$4 sm:$0xff]   ;;  %v1789_v44 = vld [vmem:[%s2989_s0 + $0x80] ss:$8 sps:$4 sm:$0xff]   ;;  %v1793_v46 = vld [vmem:[%s2989_s0 + $0x94] ss:$8 sps:$4 sm:$0xff]  }
  0x10   :  { %v1834_v45 = vld [vmem:[%s2989_s0 + $0x180] ss:$8 sps:$4 sm:$0xff]   ;;  %v1835_v47 = vld [vmem:[%s2989_s0 + $0x194] ss:$8 sps:$4 sm:$0xff]   ;;  %v1795_v48 = vld [vmem:[%s2989_s0 + $0x90] ss:$8 sps:$4 sm:$0xff]  }
  0x11   :  { %v1837_v49 = vld [vmem:[%s2989_s0 + $0x190] ss:$8 sps:$4 sm:$0xff]   ;;  %v1799_v50 = vld [vmem:[%s2989_s0 + $0xa4] ss:$8 sps:$4 sm:$0xff]   ;;  %v1801_v52 = vld [vmem:[%s2989_s0 + $0xa0] ss:$8 sps:$4 sm:$0xff]  }
  0x12   :  { %554 = vmatpush1.bf16.msra.mxu0 %v1755_v6  ;;  %1745 = vmatpush1.bf16.msra.mxu1 %v1755_v6  ;;  %v1838_v51 = vld [vmem:[%s2989_s0 + $0x1a4] ss:$8 sps:$4 sm:$0xff]   ;;  %v1840_v53 = vld [vmem:[%s2989_s0 + $0x1a0] ss:$8 sps:$4 sm:$0xff]   ;;  %v1805_v54 = vld [vmem:[%s2989_s0 + $0xb4] ss:$8 sps:$4 sm:$0xff]  }
  0x13   :  { %555 = vmatprep.subr.bf16.mxu0 %v1856_v0  ;;  %1737 = vmatprep.subr.bf16.mxu1 %v1856_v0  ;;  %v1841_v55 = vld [vmem:[%s2989_s0 + $0x1b4] ss:$8 sps:$4 sm:$0xff]   ;;  %v1807_v56 = vld [vmem:[%s2989_s0 + $0xb0] ss:$8 sps:$4 sm:$0xff]   ;;  %v1811_v58 = vld [vmem:[%s2989_s0 + $0xc4] ss:$8 sps:$4 sm:$0xff]  }
  0x14   :  { %v1843_v57 = vld [vmem:[%s2989_s0 + $0x1b0] ss:$8 sps:$4 sm:$0xff]   ;;  %v1844_v59 = vld [vmem:[%s2989_s0 + $0x1c4] ss:$8 sps:$4 sm:$0xff]   ;;  %v1813_v60 = vld [vmem:[%s2989_s0 + $0xc0] ss:$8 sps:$4 sm:$0xff]  }
  0x15   :  { %v1846_v61 = vld [vmem:[%s2989_s0 + $0x1c0] ss:$8 sps:$4 sm:$0xff]   ;;  %v1817_v62 = vld [vmem:[%s2989_s0 + $0xd4] ss:$8 sps:$4 sm:$0xff]   ;;  %v1849_v1 = vld [vmem:[%s2989_s0 + $0x1d0] ss:$8 sps:$4 sm:$0xff]  }
  0x16   :  { %556 = vmatpush1.bf16.msra.mxu0 %v1756_v7  ;;  %1746 = vmatpush1.bf16.msra.mxu1 %v1756_v7  ;;  %v1847_v63 = vld [vmem:[%s2989_s0 + $0x1d4] ss:$8 sps:$4 sm:$0xff]   ;;  %v1823_v2 = vld [vmem:[%s2989_s0 + $0xe4] ss:$8 sps:$4 sm:$0xff]   ;;  %v1825_v4 = vld [vmem:[%s2989_s0 + $0xe0] ss:$8 sps:$4 sm:$0xff]  }
  0x17   :  { %557 = vmatprep.subr.bf16.mxu0 %v1856_v0  ;;  %1738 = vmatprep.subr.bf16.mxu1 %v1856_v0  ;;  %v1850_v3 = vld [vmem:[%s2989_s0 + $0x1e4] ss:$8 sps:$4 sm:$0xff]   ;;  %v1852_v5 = vld [vmem:[%s2989_s0 + $0x1e0] ss:$8 sps:$4 sm:$0xff]   ;;  %v1829_v6 = vld [vmem:[%s2989_s0 + $0xf4] ss:$8 sps:$4 sm:$0xff]  }
  0x18   :  { %v1853_v7 = vld [vmem:[%s2989_s0 + $0x1f4] ss:$8 sps:$4 sm:$0xff]   ;;  %v1831_v8 = vld [vmem:[%s2989_s0 + $0xf0] ss:$8 sps:$4 sm:$0xff]  }
  0x1a   :  { %558 = vmatpush1.bf16.msra.mxu0 %v1757_v9  ;;  %1747 = vmatpush1.bf16.msra.mxu1 %v1757_v9  ;;  %v1855_v9 = vld [vmem:[%s2989_s0 + $0x1f0] ss:$8 sps:$4 sm:$0xff]  }
  0x1b   :  { %559 = vmatprep.subr.bf16.mxu0 %v1856_v0  ;;  %1739 = vmatprep.subr.bf16.mxu1 %v1856_v0 }
  0x1e   :  { %560 = vmatpush1.bf16.msra.mxu0 %v1758_v10  ;;  %1748 = vmatpush1.bf16.msra.mxu1 %v1758_v10  ;;  %v2136_v10 = vld [vmem:[%s2990_s2] ss:$0 sm:$0xff] }
  0x1f   :  { %575 = vmatprep.subr.bf16.mxu0 %v1856_v0  ;;  %1740 = vmatprep.subr.bf16.mxu1 %v1856_v0  ;;  %v1819_v0 = vld [vmem:[%s2989_s0 + $0xd0] ss:$8 sps:$4 sm:$0xff]  }
  0x22   :  { %576 = vmatpush2.bf16.msra.mxu0 %v1759_v11  ;;  %1749 = vmatpush2.bf16.msra.mxu1 %v1759_v11 }
  0x25   :  { %578 = vmatmul.mubr.bf16.vlgmr.msra.gmra.mxu0 %v1760_v12  ;;  %706 = vmatmul.mubr.bf16.vlgmr.msra.gmra.mxu1 %v1784_v14 }
  0x26   :  { %1573 = vmatprep.mubr.msk.bf16.mxu0 %vm448_vm0, %v1763_v13  ;;  %1589 = vmatprep.mubr.msk.bf16.mxu1 %vm448_vm0, %v1790_v15 }
  0x2d   :  { %586 = vmatmul.mubr.bf16.gmra.mxu0 %v1765_v16  ;;  %714 = vmatmul.mubr.bf16.gmra.mxu1 %v1792_v18 }
  0x2e   :  { %1574 = vmatprep.mubr.msk.bf16.mxu0 %vm448_vm0, %v1766_v17  ;;  %1590 = vmatprep.mubr.msk.bf16.mxu1 %vm448_vm0, %v1796_v19 }
  0x35   :  { %594 = vmatmul.mubr.bf16.gmra.mxu0 %v1768_v20  ;;  %722 = vmatmul.mubr.bf16.gmra.mxu1 %v1798_v22 }
  0x36   :  { %1575 = vmatprep.mubr.msk.bf16.mxu0 %vm448_vm0, %v1769_v21  ;;  %1591 = vmatprep.mubr.msk.bf16.mxu1 %vm448_vm0, %v1802_v23 }
  0x3d   :  { %602 = vmatmul.mubr.bf16.gmra.mxu0 %v1771_v24  ;;  %730 = vmatmul.mubr.bf16.gmra.mxu1 %v1804_v25 }
  0x3e   :  { %1576 = vmatprep.mubr.msk.bf16.mxu0 %vm448_vm0, %v1772_v26  ;;  %1592 = vmatprep.mubr.msk.bf16.mxu1 %vm448_vm0, %v1808_v27 }
  0x45   :  { %610 = vmatmul.mubr.bf16.gmra.mxu0 %v1774_v28  ;;  %738 = vmatmul.mubr.bf16.gmra.mxu1 %v1810_v29 }
  0x46   :  { %1577 = vmatprep.mubr.msk.bf16.mxu0 %vm448_vm0, %v1775_v30  ;;  %1593 = vmatprep.mubr.msk.bf16.mxu1 %vm448_vm0, %v1814_v31 }
  0x4d   :  { %618 = vmatmul.mubr.bf16.gmra.mxu0 %v1777_v32  ;;  %746 = vmatmul.mubr.bf16.gmra.mxu1 %v1816_v33 }
  0x4e   :  { %1578 = vmatprep.mubr.msk.bf16.mxu0 %vm448_vm0, %v1778_v34  ;;  %1594 = vmatprep.mubr.msk.bf16.mxu1 %vm448_vm0, %v1820_v35 }
  0x55   :  { %626 = vmatmul.mubr.bf16.gmra.mxu0 %v1780_v36  ;;  %754 = vmatmul.mubr.bf16.gmra.mxu1 %v1822_v37 }
  0x56   :  { %1579 = vmatprep.mubr.msk.bf16.mxu0 %vm448_vm0, %v1781_v38  ;;  %1595 = vmatprep.mubr.msk.bf16.mxu1 %vm448_vm0, %v1826_v39 }
  0x5d   :  { %634 = vmatmul.mubr.bf16.gmra.mxu0 %v1783_v40  ;;  %762 = vmatmul.mubr.bf16.gmra.mxu1 %v1828_v41 }
  0x5e   :  { %1580 = vmatprep.mubr.msk.bf16.mxu0 %vm448_vm0, %v1787_v42  ;;  %1596 = vmatprep.mubr.msk.bf16.mxu1 %vm448_vm0, %v1832_v43 }
  0x65   :  { %642 = vmatmul.mubr.bf16.gmra.mxu0 %v1789_v44  ;;  %770 = vmatmul.mubr.bf16.gmra.mxu1 %v1834_v45 }
  0x66   :  { %1581 = vmatprep.mubr.msk.bf16.mxu0 %vm448_vm0, %v1793_v46  ;;  %1597 = vmatprep.mubr.msk.bf16.mxu1 %vm448_vm0, %v1835_v47 }
  0x6d   :  { %650 = vmatmul.mubr.bf16.gmra.mxu0 %v1795_v48  ;;  %778 = vmatmul.mubr.bf16.gmra.mxu1 %v1837_v49 }
  0x6e   :  { %1582 = vmatprep.mubr.msk.bf16.mxu0 %vm448_vm0, %v1799_v50  ;;  %1598 = vmatprep.mubr.msk.bf16.mxu1 %vm448_vm0, %v1838_v51 }
  0x75   :  { %658 = vmatmul.mubr.bf16.gmra.mxu0 %v1801_v52  ;;  %786 = vmatmul.mubr.bf16.gmra.mxu1 %v1840_v53 }
  0x76   :  { %1583 = vmatprep.mubr.msk.bf16.mxu0 %vm448_vm0, %v1805_v54  ;;  %1599 = vmatprep.mubr.msk.bf16.mxu1 %vm448_vm0, %v1841_v55 }
  0x7d   :  { %666 = vmatmul.mubr.bf16.gmra.mxu0 %v1807_v56  ;;  %794 = vmatmul.mubr.bf16.gmra.mxu1 %v1843_v57 }
  0x7e   :  { %1584 = vmatprep.mubr.msk.bf16.mxu0 %vm448_vm0, %v1811_v58  ;;  %1600 = vmatprep.mubr.msk.bf16.mxu1 %vm448_vm0, %v1844_v59 }
  0x85   :  { %674 = vmatmul.mubr.bf16.gmra.mxu0 %v1813_v60  ;;  %802 = vmatmul.mubr.bf16.gmra.mxu1 %v1846_v61 }
  0x86   :  { %1585 = vmatprep.mubr.msk.bf16.mxu0 %vm448_vm0, %v1817_v62  ;;  %1601 = vmatprep.mubr.msk.bf16.mxu1 %vm448_vm0, %v1847_v63 }
  0x8d   :  { %682 = vmatmul.mubr.bf16.gmra.mxu0 %v1819_v0  ;;  %810 = vmatmul.mubr.bf16.gmra.mxu1 %v1849_v1 }
  0x8e   :  { %1586 = vmatprep.mubr.msk.bf16.mxu0 %vm448_vm0, %v1823_v2  ;;  %1602 = vmatprep.mubr.msk.bf16.mxu1 %vm448_vm0, %v1850_v3 }
  0x95   :  { %690 = vmatmul.mubr.bf16.gmra.mxu0 %v1825_v4  ;;  %818 = vmatmul.mubr.bf16.gmra.mxu1 %v1852_v5 }
  0x96   :  { %1587 = vmatprep.mubr.msk.bf16.mxu0 %vm448_vm0, %v1829_v6  ;;  %1603 = vmatprep.mubr.msk.bf16.mxu1 %vm448_vm0, %v1853_v7 }
  0x9d   :  { %698 = vmatmul.mubr.bf16.gmra.mxu0 %v1831_v8  ;;  %826 = vmatmul.mubr.bf16.gmra.mxu1 %v1855_v9 }
  0xe5   :  { %v579_v11 = vpop.f32.mrf.mxu0  ;;  %v707_v12 = vpop.f32.mrf.mxu1 }
  0xe6   :  { %v2139_v13 = vadd.f32 %v2136_v10, %v579_v11  ;;  %v2142_v14 = vadd.f32 %v2136_v10, %v707_v12 }
  0xe7   :  { %v581_v15 = vpop.f32.mrf.mxu0  ;;  %v709_v16 = vpop.f32.mrf.mxu1 }
  0xe8   :  { %v1668_v17 = vpack.c.bf16 %v2139_v13, %v2139_v13  ;;  %v1700_v18 = vpack.c.bf16 %v2142_v14, %v2142_v14 }
  0xe9   :  { %v582_v19 = vpop.f32.mrf.mxu0  ;;  %v710_v20 = vpop.f32.mrf.mxu1 }
  0xea   :  { %1091 = vst.msk [vmem:[%s2991_s3] sm:$0xf] %vm1090_vm1, %v1668_v17  ;;  %v2153_v21 = vadd.f32 %v2136_v10, %v582_v19  ;;  %1123 = vst.msk [vmem:[%s2991_s3 + $0x80] sm:$0xf] %vm1090_vm1, %v1700_v18  ;;  %v2160_v22 = vadd.f32 %v2136_v10, %v710_v20 }
  0xeb   :  { %v584_v23 = vpop.f32.mrf.mxu0  ;;  %v712_v24 = vpop.f32.mrf.mxu1 }
  0xec   :  { %v1669_v25 = vpack.c.bf16 %v2153_v21, %v2153_v21  ;;  %v1701_v26 = vpack.c.bf16 %v2160_v22, %v2160_v22 }
  0xed   :  { %v587_v27 = vpop.f32.mrf.mxu0  ;;  %v715_v28 = vpop.f32.mrf.mxu1 }
  0xee   :  { %1092 = vst.msk [vmem:[%s2991_s3 + $0x4] sm:$0xf] %vm1090_vm1, %v1669_v25  ;;  %v2171_v29 = vadd.f32 %v2136_v10, %v587_v27  ;;  %1124 = vst.msk [vmem:[%s2991_s3 + $0x84] sm:$0xf] %vm1090_vm1, %v1701_v26  ;;  %v2178_v30 = vadd.f32 %v2136_v10, %v715_v28 }
  0xef   :  { %v589_v31 = vpop.f32.mrf.mxu0  ;;  %v717_v32 = vpop.f32.mrf.mxu1 }
  0xf0   :  { %v1670_v33 = vpack.c.bf16 %v2171_v29, %v2171_v29  ;;  %v1702_v34 = vpack.c.bf16 %v2178_v30, %v2178_v30 }
  0xf1   :  { %v590_v35 = vpop.f32.mrf.mxu0  ;;  %v718_v36 = vpop.f32.mrf.mxu1 }
  0xf2   :  { %1093 = vst.msk [vmem:[%s2991_s3 + $0x8] sm:$0xf] %vm1090_vm1, %v1670_v33  ;;  %v2189_v37 = vadd.f32 %v2136_v10, %v590_v35  ;;  %1125 = vst.msk [vmem:[%s2991_s3 + $0x88] sm:$0xf] %vm1090_vm1, %v1702_v34  ;;  %v2196_v38 = vadd.f32 %v2136_v10, %v718_v36 }
  0xf3   :  { %v592_v39 = vpop.f32.mrf.mxu0  ;;  %v720_v40 = vpop.f32.mrf.mxu1 }
  0xf4   :  { %v1671_v41 = vpack.c.bf16 %v2189_v37, %v2189_v37  ;;  %v1703_v42 = vpack.c.bf16 %v2196_v38, %v2196_v38 }
  0xf5   :  { %v595_v43 = vpop.f32.mrf.mxu0  ;;  %v723_v44 = vpop.f32.mrf.mxu1 }
  0xf6   :  { %1094 = vst.msk [vmem:[%s2991_s3 + $0xc] sm:$0xf] %vm1090_vm1, %v1671_v41  ;;  %v2207_v45 = vadd.f32 %v2136_v10, %v595_v43  ;;  %1126 = vst.msk [vmem:[%s2991_s3 + $0x8c] sm:$0xf] %vm1090_vm1, %v1703_v42  ;;  %v2214_v46 = vadd.f32 %v2136_v10, %v723_v44 }
  0xf7   :  { %v597_v47 = vpop.f32.mrf.mxu0  ;;  %v725_v48 = vpop.f32.mrf.mxu1 }
  0xf8   :  { %v1672_v49 = vpack.c.bf16 %v2207_v45, %v2207_v45  ;;  %v1704_v50 = vpack.c.bf16 %v2214_v46, %v2214_v46 }
  0xf9   :  { %v598_v51 = vpop.f32.mrf.mxu0  ;;  %v726_v52 = vpop.f32.mrf.mxu1 }
  0xfa   :  { %1095 = vst.msk [vmem:[%s2991_s3 + $0x10] sm:$0xf] %vm1090_vm1, %v1672_v49  ;;  %v2225_v53 = vadd.f32 %v2136_v10, %v598_v51  ;;  %1127 = vst.msk [vmem:[%s2991_s3 + $0x90] sm:$0xf] %vm1090_vm1, %v1704_v50  ;;  %v2232_v54 = vadd.f32 %v2136_v10, %v726_v52 }
  0xfb   :  { %v600_v55 = vpop.f32.mrf.mxu0  ;;  %v728_v56 = vpop.f32.mrf.mxu1 }
  0xfc   :  { %v1673_v57 = vpack.c.bf16 %v2225_v53, %v2225_v53  ;;  %v1705_v58 = vpack.c.bf16 %v2232_v54, %v2232_v54 }
  0xfd   :  { %v603_v59 = vpop.f32.mrf.mxu0  ;;  %v731_v60 = vpop.f32.mrf.mxu1 }
  0xfe   :  { %1096 = vst.msk [vmem:[%s2991_s3 + $0x14] sm:$0xf] %vm1090_vm1, %v1673_v57  ;;  %v2243_v61 = vadd.f32 %v2136_v10, %v603_v59  ;;  %1128 = vst.msk [vmem:[%s2991_s3 + $0x94] sm:$0xf] %vm1090_vm1, %v1705_v58  ;;  %v2250_v62 = vadd.f32 %v2136_v10, %v731_v60 }
  0xff   :  { %v605_v63 = vpop.f32.mrf.mxu0  ;;  %v733_v0 = vpop.f32.mrf.mxu1 }
 0x100   :  { %v1674_v1 = vpack.c.bf16 %v2243_v61, %v2243_v61  ;;  %v1706_v2 = vpack.c.bf16 %v2250_v62, %v2250_v62 }
 0x101   :  { %v606_v3 = vpop.f32.mrf.mxu0  ;;  %v734_v4 = vpop.f32.mrf.mxu1 }
 0x102   :  { %1097 = vst.msk [vmem:[%s2991_s3 + $0x18] sm:$0xf] %vm1090_vm1, %v1674_v1  ;;  %v2261_v5 = vadd.f32 %v2136_v10, %v606_v3  ;;  %1129 = vst.msk [vmem:[%s2991_s3 + $0x98] sm:$0xf] %vm1090_vm1, %v1706_v2  ;;  %v2268_v6 = vadd.f32 %v2136_v10, %v734_v4 }
 0x103   :  { %v608_v7 = vpop.f32.mrf.mxu0  ;;  %v736_v8 = vpop.f32.mrf.mxu1 }
 0x104   :  { %v1675_v9 = vpack.c.bf16 %v2261_v5, %v2261_v5  ;;  %v1707_v11 = vpack.c.bf16 %v2268_v6, %v2268_v6 }
 0x105   :  { %v611_v12 = vpop.f32.mrf.mxu0  ;;  %v739_v15 = vpop.f32.mrf.mxu1 }
 0x106   :  { %1098 = vst.msk [vmem:[%s2991_s3 + $0x1c] sm:$0xf] %vm1090_vm1, %v1675_v9  ;;  %v2279_v16 = vadd.f32 %v2136_v10, %v611_v12  ;;  %1130 = vst.msk [vmem:[%s2991_s3 + $0x9c] sm:$0xf] %vm1090_vm1, %v1707_v11  ;;  %v2286_v17 = vadd.f32 %v2136_v10, %v739_v15 }
 0x107   :  { %v613_v18 = vpop.f32.mrf.mxu0  ;;  %v741_v19 = vpop.f32.mrf.mxu1 }
 0x108   :  { %v1676_v20 = vpack.c.bf16 %v2279_v16, %v2279_v16  ;;  %v1708_v23 = vpack.c.bf16 %v2286_v17, %v2286_v17 }
 0x109   :  { %v614_v24 = vpop.f32.mrf.mxu0  ;;  %v742_v25 = vpop.f32.mrf.mxu1 }
 0x10a   :  { %1099 = vst.msk [vmem:[%s2991_s3 + $0x20] sm:$0xf] %vm1090_vm1, %v1676_v20  ;;  %v2297_v26 = vadd.f32 %v2136_v10, %v614_v24  ;;  %1131 = vst.msk [vmem:[%s2991_s3 + $0xa0] sm:$0xf] %vm1090_vm1, %v1708_v23  ;;  %v2304_v27 = vadd.f32 %v2136_v10, %v742_v25 }
 0x10b   :  { %v616_v28 = vpop.f32.mrf.mxu0  ;;  %v744_v31 = vpop.f32.mrf.mxu1 }
 0x10c   :  { %v1677_v32 = vpack.c.bf16 %v2297_v26, %v2297_v26  ;;  %v1709_v33 = vpack.c.bf16 %v2304_v27, %v2304_v27 }
 0x10d   :  { %v619_v34 = vpop.f32.mrf.mxu0  ;;  %v747_v35 = vpop.f32.mrf.mxu1 }
 0x10e   :  { %1100 = vst.msk [vmem:[%s2991_s3 + $0x24] sm:$0xf] %vm1090_vm1, %v1677_v32  ;;  %v2315_v36 = vadd.f32 %v2136_v10, %v619_v34  ;;  %1132 = vst.msk [vmem:[%s2991_s3 + $0xa4] sm:$0xf] %vm1090_vm1, %v1709_v33  ;;  %v2322_v39 = vadd.f32 %v2136_v10, %v747_v35 }
 0x10f   :  { %v621_v40 = vpop.f32.mrf.mxu0  ;;  %v749_v41 = vpop.f32.mrf.mxu1 }
 0x110   :  { %v1678_v42 = vpack.c.bf16 %v2315_v36, %v2315_v36  ;;  %v1710_v43 = vpack.c.bf16 %v2322_v39, %v2322_v39  ;;  %v1290_v41 = vmul.f32 %v2153_v21, %v2153_v21 }
 0x111   :  { %v622_v44 = vpop.f32.mrf.mxu0  ;;  %v750_v47 = vpop.f32.mrf.mxu1 }
 0x112   :  { %1101 = vst.msk [vmem:[%s2991_s3 + $0x28] sm:$0xf] %vm1090_vm1, %v1678_v42  ;;  %v2333_v48 = vadd.f32 %v2136_v10, %v622_v44  ;;  %1133 = vst.msk [vmem:[%s2991_s3 + $0xa8] sm:$0xf] %vm1090_vm1, %v1710_v43  ;;  %v2340_v49 = vadd.f32 %v2136_v10, %v750_v47  ;;  %v1289_v44 = vmul.f32 %v2139_v13, %v2139_v13 }
 0x113   :  { %v624_v50 = vpop.f32.mrf.mxu0  ;;  %v752_v51 = vpop.f32.mrf.mxu1  ;;  %v1291_v47 = vmul.f32 %v2171_v29, %v2171_v29 }
 0x114   :  { %v1679_v52 = vpack.c.bf16 %v2333_v48, %v2333_v48  ;;  %v1711_v55 = vpack.c.bf16 %v2340_v49, %v2340_v49 }
 0x115   :  { %v627_v56 = vpop.f32.mrf.mxu0  ;;  %v755_v57 = vpop.f32.mrf.mxu1 }
 0x116   :  { %1102 = vst.msk [vmem:[%s2991_s3 + $0x2c] sm:$0xf] %vm1090_vm1, %v1679_v52  ;;  %v2351_v58 = vadd.f32 %v2136_v10, %v627_v56  ;;  %1134 = vst.msk [vmem:[%s2991_s3 + $0xac] sm:$0xf] %vm1090_vm1, %v1711_v55  ;;  %v2358_v59 = vadd.f32 %v2136_v10, %v755_v57  ;;  %v1157_v52 = vsel %vm1155_vm2, %v2153_v21, 0.0  ;;  %v1156_v57 = vsel %vm1155_vm2, %v2139_v13, 0.0 }
 0x117   :  { %v629_v60 = vpop.f32.mrf.mxu0  ;;  %v757_v63 = vpop.f32.mrf.mxu1  ;;  %v1292_v21 = vmul.f32 %v2189_v37, %v2189_v37  ;;  %v1356_v13 = vsel %vm1155_vm2, %v1291_v47, 0.0 }
 0x118   :  { %v1680_v0 = vpack.c.bf16 %v2351_v58, %v2351_v58  ;;  %v1712_v1 = vpack.c.bf16 %v2358_v59, %v2358_v59 }
 0x119   :  { %v630_v2 = vpop.f32.mrf.mxu0  ;;  %v758_v3 = vpop.f32.mrf.mxu1 }
 0x11a   :  { %1103 = vst.msk [vmem:[%s2991_s3 + $0x30] sm:$0xf] %vm1090_vm1, %v1680_v0  ;;  %v2369_v4 = vadd.f32 %v2136_v10, %v630_v2  ;;  %1135 = vst.msk [vmem:[%s2991_s3 + $0xb0] sm:$0xf] %vm1090_vm1, %v1712_v1  ;;  %v2376_v7 = vadd.f32 %v2136_v10, %v758_v3  ;;  %v1354_v0 = vsel %vm1155_vm2, %v1290_v41, 0.0  ;;  %v1159_v1 = vsel %vm1155_vm2, %v2171_v29, 0.0 }
 0x11b   :  { %v632_v8 = vpop.f32.mrf.mxu0  ;;  %v760_v9 = vpop.f32.mrf.mxu1 }
 0x11c   :  { %v1681_v11 = vpack.c.bf16 %v2369_v4, %v2369_v4  ;;  %v1713_v12 = vpack.c.bf16 %v2376_v7, %v2376_v7  ;;  %v1353_v8 = vsel %vm1155_vm2, %v1289_v44, 0.0  ;;  %v1158_v9 = vadd.f32 %v1157_v52, %v1156_v57 }
 0x11d   :  { %v635_v15 = vpop.f32.mrf.mxu0  ;;  %v763_v18 = vpop.f32.mrf.mxu1  ;;  %v1295_v44 = vmul.f32 %v2243_v61, %v2243_v61 }
 0x11e   :  { %1104 = vst.msk [vmem:[%s2991_s3 + $0x34] sm:$0xf] %vm1090_vm1, %v1681_v11  ;;  %v2387_v19 = vadd.f32 %v2136_v10, %v635_v15  ;;  %1136 = vst.msk [vmem:[%s2991_s3 + $0xb4] sm:$0xf] %vm1090_vm1, %v1713_v12  ;;  %v2394_v20 = vadd.f32 %v2136_v10, %v763_v18  ;;  %v1161_v15 = vsel %vm1155_vm2, %v2189_v37, 0.0  ;;  %v1293_v18 = vmul.f32 %v2207_v45, %v2207_v45 }
 0x11f   :  { %v637_v23 = vpop.f32.mrf.mxu0  ;;  %v765_v24 = vpop.f32.mrf.mxu1  ;;  %v1355_v37 = vadd.f32 %v1354_v0, %v1353_v8 }
 0x120   :  { %v1682_v25 = vpack.c.bf16 %v2387_v19, %v2387_v19  ;;  %v1714_v28 = vpack.c.bf16 %v2394_v20, %v2394_v20  ;;  %v1160_v24 = vadd.f32 %v1159_v1, %v1158_v9 }
 0x121   :  { %v638_v31 = vpop.f32.mrf.mxu0  ;;  %v766_v32 = vpop.f32.mrf.mxu1 }
 0x122   :  { %1105 = vst.msk [vmem:[%s2991_s3 + $0x38] sm:$0xf] %vm1090_vm1, %v1682_v25  ;;  %v2405_v33 = vadd.f32 %v2136_v10, %v638_v31  ;;  %1137 = vst.msk [vmem:[%s2991_s3 + $0xb8] sm:$0xf] %vm1090_vm1, %v1714_v28  ;;  %v2412_v34 = vadd.f32 %v2136_v10, %v766_v32  ;;  %v1358_v25 = vsel %vm1155_vm2, %v1292_v21, 0.0  ;;  %v1163_v32 = vsel %vm1155_vm2, %v2207_v45, 0.0 }
 0x123   :  { %v640_v35 = vpop.f32.mrf.mxu0  ;;  %v768_v40 = vpop.f32.mrf.mxu1  ;;  %v1165_v45 = vsel %vm1155_vm2, %v2225_v53, 0.0 }
 0x124   :  { %v1683_v42 = vpack.c.bf16 %v2405_v33, %v2405_v33  ;;  %v1715_v43 = vpack.c.bf16 %v2412_v34, %v2412_v34  ;;  %v1294_v35 = vmul.f32 %v2225_v53, %v2225_v53  ;;  %v1296_v53 = vmul.f32 %v2261_v5, %v2261_v5 }
 0x125   :  { %v643_v50 = vpop.f32.mrf.mxu0  ;;  %v771_v51 = vpop.f32.mrf.mxu1 }
 0x126   :  { %1106 = vst.msk [vmem:[%s2991_s3 + $0x3c] sm:$0xf] %vm1090_vm1, %v1683_v42  ;;  %v2431_v55 = vadd.f32 %v2136_v10, %v643_v50  ;;  %1138 = vst.msk [vmem:[%s2991_s3 + $0xbc] sm:$0xf] %vm1090_vm1, %v1715_v43  ;;  %v2438_v56 = vadd.f32 %v2136_v10, %v771_v51  ;;  %v1357_v42 = vadd.f32 %v1356_v13, %v1355_v37  ;;  %v1360_v51 = vsel %vm1155_vm2, %v1293_v18, 0.0 }
 0x127   :  { %v645_v60 = vpop.f32.mrf.mxu0  ;;  %v773_v63 = vpop.f32.mrf.mxu1  ;;  %v1162_v43 = vadd.f32 %v1161_v15, %v1160_v24  ;;  %v1362_v1 = vsel %vm1155_vm2, %v1294_v35, 0.0  ;;  %v1169_v18 = vsel %vm1155_vm2, %v2261_v5, 0.0  ;;  %v1297_v37 = vmul.f32 %v2279_v16, %v2279_v16 }
 0x128   :  { %v1684_v2 = vpack.c.bf16 %v2431_v55, %v2431_v55  ;;  %v1716_v3 = vpack.c.bf16 %v2438_v56, %v2438_v56  ;;  %v1359_v21 = vadd.f32 %v1358_v25, %v1357_v42  ;;  %v1171_v35 = vsel %vm1155_vm2, %v2279_v16, 0.0 }
 0x129   :  { %v646_v11 = vpop.f32.mrf.mxu0  ;;  %v774_v12 = vpop.f32.mrf.mxu1  ;;  %v1164_v60 = vadd.f32 %v1163_v32, %v1162_v43  ;;  %v1173_v16 = vsel %vm1155_vm2, %v2297_v26, 0.0 }
 0x12a   :  { %1107 = vst.msk [vmem:[%s2991_s3 + $0x40] sm:$0xf] %vm1090_vm1, %v1684_v2  ;;  %v2462_v29 = vadd.f32 %v2136_v10, %v646_v11  ;;  %1139 = vst.msk [vmem:[%s2991_s3 + $0xc0] sm:$0xf] %vm1090_vm1, %v1716_v3  ;;  %v2469_v23 = vadd.f32 %v2136_v10, %v774_v12  ;;  %v1167_v2 = vsel %vm1155_vm2, %v2243_v61, 0.0  ;;  %v1361_v9 = vadd.f32 %v1360_v51, %v1359_v21 }
 0x12b   :  { %v648_v28 = vpop.f32.mrf.mxu0  ;;  %v776_v31 = vpop.f32.mrf.mxu1  ;;  %v1166_v13 = vadd.f32 %v1165_v45, %v1164_v60  ;;  %v1364_v11 = vsel %vm1155_vm2, %v1295_v44, 0.0  ;;  %v1368_v45 = vsel %vm1155_vm2, %v1297_v37, 0.0  ;;  %v1177_v37 = vsel %vm1155_vm2, %v2333_v48, 0.0 }
 0x12c   :  { %v1685_v40 = vpack.c.bf16 %v2462_v29, %v2462_v29  ;;  %v1717_v41 = vpack.c.bf16 %v2469_v23, %v2469_v23  ;;  %v1363_v5 = vadd.f32 %v1362_v1, %v1361_v9  ;;  %v1366_v28 = vsel %vm1155_vm2, %v1296_v53, 0.0 }
 0x12d   :  { %v651_v47 = vpop.f32.mrf.mxu0  ;;  %v779_v50 = vpop.f32.mrf.mxu1  ;;  %v1168_v25 = vadd.f32 %v1167_v2, %v1166_v13 }
 0x12e   :  { %1108 = vst.msk [vmem:[%s2991_s3 + $0x44] sm:$0xf] %vm1090_vm1, %v1685_v40  ;;  %v2490_v52 = vadd.f32 %v2136_v10, %v651_v47  ;;  %1140 = vst.msk [vmem:[%s2991_s3 + $0xc4] sm:$0xf] %vm1090_vm1, %v1717_v41  ;;  %v2497_v57 = vadd.f32 %v2136_v10, %v779_v50  ;;  %v1298_v40 = vmul.f32 %v2297_v26, %v2297_v26 }
 0x12f   :  { %v653_v63 = vpop.f32.mrf.mxu0  ;;  %v781_v0 = vpop.f32.mrf.mxu1  ;;  %v1365_v43 = vadd.f32 %v1364_v11, %v1363_v5  ;;  %v1170_v44 = vadd.f32 %v1169_v18, %v1168_v25  ;;  %v1299_v47 = vmul.f32 %v2315_v36, %v2315_v36  ;;  %v1300_v26 = vmul.f32 %v2333_v48, %v2333_v48 }
 0x130   :  { %v1686_v3 = vpack.c.bf16 %v2490_v52, %v2490_v52  ;;  %v1718_v8 = vpack.c.bf16 %v2497_v57, %v2497_v57  ;;  %v1370_v2 = vsel %vm1155_vm2, %v1298_v40, 0.0  ;;  %v1301_v5 = vmul.f32 %v2351_v58, %v2351_v58 }
 0x131   :  { %v654_v12 = vpop.f32.mrf.mxu0  ;;  %v782_v15 = vpop.f32.mrf.mxu1  ;;  %v1367_v53 = vadd.f32 %v1366_v28, %v1365_v43  ;;  %v1172_v63 = vadd.f32 %v1171_v35, %v1170_v44  ;;  %v1179_v40 = vsel %vm1155_vm2, %v2351_v58, 0.0  ;;  %v1181_v58 = vsel %vm1155_vm2, %v2369_v4, 0.0 }
 0x132   :  { %1109 = vst.msk [vmem:[%s2991_s3 + $0x48] sm:$0xf] %vm1090_vm1, %v1686_v3  ;;  %v2518_v61 = vadd.f32 %v2136_v10, %v654_v12  ;;  %1141 = vst.msk [vmem:[%s2991_s3 + $0xc8] sm:$0xf] %vm1090_vm1, %v1718_v8  ;;  %v2525_v24 = vadd.f32 %v2136_v10, %v782_v15  ;;  %v1175_v3 = vsel %vm1155_vm2, %v2315_v36, 0.0  ;;  %v1372_v12 = vsel %vm1155_vm2, %v1299_v47, 0.0 }
 0x133   :  { %v656_v31 = vpop.f32.mrf.mxu0  ;;  %v784_v32 = vpop.f32.mrf.mxu1  ;;  %v1369_v13 = vadd.f32 %v1368_v45, %v1367_v53  ;;  %v1174_v11 = vadd.f32 %v1173_v16, %v1172_v63  ;;  %v1376_v16 = vsel %vm1155_vm2, %v1301_v5, 0.0  ;;  %v1185_v5 = vsel %vm1155_vm2, %v2405_v33, 0.0 }
 0x134   :  { %v1687_v41 = vpack.c.bf16 %v2518_v61, %v2518_v61  ;;  %v1719_v42 = vpack.c.bf16 %v2525_v24, %v2525_v24  ;;  %v1374_v31 = vsel %vm1155_vm2, %v1300_v26, 0.0 }
 0x135   :  { %v659_v50 = vpop.f32.mrf.mxu0  ;;  %v787_v51 = vpop.f32.mrf.mxu1  ;;  %v1371_v48 = vadd.f32 %v1370_v2, %v1369_v13  ;;  %v1176_v28 = vadd.f32 %v1175_v3, %v1174_v11 }
 0x136   :  { %1110 = vst.msk [vmem:[%s2991_s3 + $0x4c] sm:$0xf] %vm1090_vm1, %v1687_v41  ;;  %v2546_v21 = vadd.f32 %v2136_v10, %v659_v50  ;;  %1142 = vst.msk [vmem:[%s2991_s3 + $0xcc] sm:$0xf] %vm1090_vm1, %v1719_v42  ;;  %v2553_v60 = vadd.f32 %v2136_v10, %v787_v51  ;;  %v1302_v41 = vmul.f32 %v2369_v4, %v2369_v4 }
 0x137   :  { %v661_v0 = vpop.f32.mrf.mxu0  ;;  %v789_v1 = vpop.f32.mrf.mxu1  ;;  %v1373_v44 = vadd.f32 %v1372_v12, %v1371_v48  ;;  %v1178_v47 = vadd.f32 %v1177_v37, %v1176_v28  ;;  %v1303_v50 = vmul.f32 %v2387_v19, %v2387_v19  ;;  %v1304_v4 = vmul.f32 %v2405_v33, %v2405_v33 }
 0x138   :  { %v1688_v8 = vpack.c.bf16 %v2546_v21, %v2546_v21  ;;  %v1720_v9 = vpack.c.bf16 %v2553_v60, %v2553_v60  ;;  %v1378_v3 = vsel %vm1155_vm2, %v1302_v41, 0.0  ;;  %v1305_v48 = vmul.f32 %v2431_v55, %v2431_v55 }
 0x139   :  { %v662_v15 = vpop.f32.mrf.mxu0  ;;  %v790_v18 = vpop.f32.mrf.mxu1  ;;  %v1375_v26 = vadd.f32 %v1374_v31, %v1373_v44  ;;  %v1180_v0 = vadd.f32 %v1179_v40, %v1178_v47  ;;  %v1187_v41 = vsel %vm1155_vm2, %v2431_v55, 0.0  ;;  %v1189_v55 = vsel %vm1155_vm2, %v2462_v29, 0.0 }
 0x13a   :  { %1111 = vst.msk [vmem:[%s2991_s3 + $0x50] sm:$0xf] %vm1090_vm1, %v1688_v8  ;;  %v2574_v36 = vadd.f32 %v2136_v10, %v662_v15  ;;  %1143 = vst.msk [vmem:[%s2991_s3 + $0xd0] sm:$0xf] %vm1090_vm1, %v1720_v9  ;;  %v2581_v25 = vadd.f32 %v2136_v10, %v790_v18  ;;  %v1183_v8 = vsel %vm1155_vm2, %v2387_v19, 0.0  ;;  %v1380_v15 = vsel %vm1155_vm2, %v1303_v50, 0.0 }
 0x13b   :  { %v664_v32 = vpop.f32.mrf.mxu0  ;;  %v792_v35 = vpop.f32.mrf.mxu1  ;;  %v1377_v11 = vadd.f32 %v1376_v16, %v1375_v26  ;;  %v1182_v12 = vadd.f32 %v1181_v58, %v1180_v0  ;;  %v1384_v58 = vsel %vm1155_vm2, %v1305_v48, 0.0  ;;  %v1193_v48 = vsel %vm1155_vm2, %v2518_v61, 0.0 }
 0x13c   :  { %v1689_v42 = vpack.c.bf16 %v2574_v36, %v2574_v36  ;;  %v1721_v43 = vpack.c.bf16 %v2581_v25, %v2581_v25  ;;  %v1382_v32 = vsel %vm1155_vm2, %v1304_v4, 0.0 }
 0x13d   :  { %v667_v51 = vpop.f32.mrf.mxu0  ;;  %v795_v45 = vpop.f32.mrf.mxu1  ;;  %v1379_v33 = vadd.f32 %v1378_v3, %v1377_v11  ;;  %v1184_v31 = vadd.f32 %v1183_v8, %v1182_v12 }
 0x13e   :  { %1112 = vst.msk [vmem:[%s2991_s3 + $0x54] sm:$0xf] %vm1090_vm1, %v1689_v42  ;;  %v2602_v53 = vadd.f32 %v2136_v10, %v667_v51  ;;  %1144 = vst.msk [vmem:[%s2991_s3 + $0xd4] sm:$0xf] %vm1090_vm1, %v1721_v43  ;;  %v2609_v63 = vadd.f32 %v2136_v10, %v795_v45  ;;  %v1306_v42 = vmul.f32 %v2462_v29, %v2462_v29 }
 0x13f   :  { %v669_v1 = vpop.f32.mrf.mxu0  ;;  %v797_v2 = vpop.f32.mrf.mxu1  ;;  %v1381_v47 = vadd.f32 %v1380_v15, %v1379_v33  ;;  %v1186_v50 = vadd.f32 %v1185_v5, %v1184_v31  ;;  %v1307_v51 = vmul.f32 %v2490_v52, %v2490_v52  ;;  %v1308_v29 = vmul.f32 %v2518_v61, %v2518_v61 }
 0x140   :  { %v1690_v9 = vpack.c.bf16 %v2602_v53, %v2602_v53  ;;  %v1722_v13 = vpack.c.bf16 %v2609_v63, %v2609_v63  ;;  %v1386_v8 = vsel %vm1155_vm2, %v1306_v42, 0.0  ;;  %v1309_v33 = vmul.f32 %v2546_v21, %v2546_v21 }
 0x141   :  { %v670_v18 = vpop.f32.mrf.mxu0  ;;  %v798_v37 = vpop.f32.mrf.mxu1  ;;  %v1383_v4 = vadd.f32 %v1382_v32, %v1381_v47  ;;  %v1188_v1 = vadd.f32 %v1187_v41, %v1186_v50  ;;  %v1195_v42 = vsel %vm1155_vm2, %v2546_v21, 0.0 }
 0x142   :  { %1113 = vst.msk [vmem:[%s2991_s3 + $0x58] sm:$0xf] %vm1090_vm1, %v1690_v9  ;;  %v2630_v19 = vadd.f32 %v2136_v10, %v670_v18  ;;  %1145 = vst.msk [vmem:[%s2991_s3 + $0xd8] sm:$0xf] %vm1090_vm1, %v1722_v13  ;;  %v2637_v28 = vadd.f32 %v2136_v10, %v798_v37  ;;  %v1191_v9 = vsel %vm1155_vm2, %v2490_v52, 0.0  ;;  %v1388_v18 = vsel %vm1155_vm2, %v1307_v51, 0.0 }
 0x143   :  { %v672_v35 = vpop.f32.mrf.mxu0  ;;  %v800_v40 = vpop.f32.mrf.mxu1  ;;  %v1385_v12 = vadd.f32 %v1384_v58, %v1383_v4  ;;  %v1190_v15 = vadd.f32 %v1189_v55, %v1188_v1  ;;  %v1392_v55 = vsel %vm1155_vm2, %v1309_v33, 0.0  ;;  %v1197_v4 = vsel %vm1155_vm2, %v2574_v36, 0.0 }
 0x144   :  { %v1691_v43 = vpack.c.bf16 %v2630_v19, %v2630_v19  ;;  %v1723_v44 = vpack.c.bf16 %v2637_v28, %v2637_v28  ;;  %v1390_v35 = vsel %vm1155_vm2, %v1308_v29, 0.0  ;;  %v1201_v33 = vsel %vm1155_vm2, %v2630_v19, 0.0 }
 0x145   :  { %v675_v45 = vpop.f32.mrf.mxu0  ;;  %v803_v16 = vpop.f32.mrf.mxu1  ;;  %v1387_v32 = vadd.f32 %v1386_v8, %v1385_v12  ;;  %v1192_v61 = vadd.f32 %v1191_v9, %v1190_v15 }
 0x146   :  { %1114 = vst.msk [vmem:[%s2991_s3 + $0x5c] sm:$0xf] %vm1090_vm1, %v1691_v43  ;;  %v2658_v26 = vadd.f32 %v2136_v10, %v675_v45  ;;  %1146 = vst.msk [vmem:[%s2991_s3 + $0xdc] sm:$0xf] %vm1090_vm1, %v1723_v44  ;;  %v2665_v0 = vadd.f32 %v2136_v10, %v803_v16  ;;  %v1310_v43 = vmul.f32 %v2574_v36, %v2574_v36 }
 0x147   :  { %v677_v2 = vpop.f32.mrf.mxu0  ;;  %v805_v3 = vpop.f32.mrf.mxu1  ;;  %v1389_v50 = vadd.f32 %v1388_v18, %v1387_v32  ;;  %v1194_v51 = vadd.f32 %v1193_v48, %v1192_v61  ;;  %v1311_v45 = vmul.f32 %v2602_v53, %v2602_v53  ;;  %v1312_v36 = vmul.f32 %v2630_v19, %v2630_v19 }
 0x148   :  { %v1692_v13 = vpack.c.bf16 %v2658_v26, %v2658_v26  ;;  %v1724_v11 = vpack.c.bf16 %v2665_v0, %v2665_v0  ;;  %v1394_v9 = vsel %vm1155_vm2, %v1310_v43, 0.0  ;;  %v1313_v32 = vmul.f32 %v2658_v26, %v2658_v26 }
 0x149   :  { %v678_v37 = vpop.f32.mrf.mxu0  ;;  %v806_v5 = vpop.f32.mrf.mxu1  ;;  %v1391_v29 = vadd.f32 %v1390_v35, %v1389_v50  ;;  %v1196_v2 = vadd.f32 %v1195_v42, %v1194_v51  ;;  %v1203_v43 = vsel %vm1155_vm2, %v2658_v26, 0.0 }
 0x14a   :  { %1115 = vst.msk [vmem:[%s2991_s3 + $0x60] sm:$0xf] %vm1090_vm1, %v1692_v13  ;;  %v679_v52 = vadd.f32 %v2136_v10, %v678_v37  ;;  %1147 = vst.msk [vmem:[%s2991_s3 + $0xe0] sm:$0xf] %vm1090_vm1, %v1724_v11  ;;  %v2691_v31 = vadd.f32 %v2136_v10, %v806_v5  ;;  %v1199_v13 = vsel %vm1155_vm2, %v2602_v53, 0.0  ;;  %v1396_v37 = vsel %vm1155_vm2, %v1311_v45, 0.0 }
 0x14b   :  { %v680_v40 = vpop.f32.mrf.mxu0  ;;  %v808_v41 = vpop.f32.mrf.mxu1  ;;  %v1393_v15 = vadd.f32 %v1392_v55, %v1391_v29  ;;  %v1198_v18 = vadd.f32 %v1197_v4, %v1196_v2  ;;  %v1400_v4 = vsel %vm1155_vm2, %v1313_v32, 0.0 }
 0x14c   :  { %v1693_v44 = vpack.c.bf16 %v679_v52, %v679_v52  ;;  %v1725_v47 = vpack.c.bf16 %v2691_v31, %v2691_v31  ;;  %v1398_v40 = vsel %vm1155_vm2, %v1312_v36, 0.0  ;;  %v1205_v29 = vsel %vm1155_vm2, %v679_v52, 0.0 }
 0x14d   :  { %v683_v16 = vpop.f32.mrf.mxu0  ;;  %v811_v58 = vpop.f32.mrf.mxu1  ;;  %v1395_v35 = vadd.f32 %v1394_v9, %v1393_v15  ;;  %v1200_v19 = vadd.f32 %v1199_v13, %v1198_v18 }
 0x14e   :  { %1116 = vst.msk [vmem:[%s2991_s3 + $0x64] sm:$0xf] %vm1090_vm1, %v1693_v44  ;;  %v684_v21 = vadd.f32 %v2136_v10, %v683_v16  ;;  %1148 = vst.msk [vmem:[%s2991_s3 + $0xe4] sm:$0xf] %vm1090_vm1, %v1725_v47  ;;  %v2715_v1 = vadd.f32 %v2136_v10, %v811_v58  ;;  %v1314_v44 = vmul.f32 %v679_v52, %v679_v52 }
 0x14f   :  { %v685_v3 = vpop.f32.mrf.mxu0  ;;  %v813_v8 = vpop.f32.mrf.mxu1  ;;  %v1397_v51 = vadd.f32 %v1396_v37, %v1395_v35  ;;  %v1202_v45 = vadd.f32 %v1201_v33, %v1200_v19 }
 0x150   :  { %v1694_v11 = vpack.c.bf16 %v684_v21, %v684_v21  ;;  %v1726_v12 = vpack.c.bf16 %v2715_v1, %v2715_v1  ;;  %v1315_v16 = vmul.f32 %v684_v21, %v684_v21  ;;  %v1402_v13 = vsel %vm1155_vm2, %v1314_v44, 0.0 }
 0x151   :  { %v686_v5 = vpop.f32.mrf.mxu0  ;;  %v814_v48 = vpop.f32.mrf.mxu1  ;;  %v1399_v36 = vadd.f32 %v1398_v40, %v1397_v51  ;;  %v1204_v3 = vadd.f32 %v1203_v43, %v1202_v45 }
 0x152   :  { %1117 = vst.msk [vmem:[%s2991_s3 + $0x68] sm:$0xf] %vm1090_vm1, %v1694_v11  ;;  %v687_v53 = vadd.f32 %v2136_v10, %v686_v5  ;;  %1149 = vst.msk [vmem:[%s2991_s3 + $0xe8] sm:$0xf] %vm1090_vm1, %v1726_v12  ;;  %v2739_v61 = vadd.f32 %v2136_v10, %v814_v48  ;;  %v1207_v11 = vsel %vm1155_vm2, %v684_v21, 0.0  ;;  %v1404_v5 = vsel %vm1155_vm2, %v1315_v16, 0.0 }
 0x153   :  { %v688_v41 = vpop.f32.mrf.mxu0  ;;  %v816_v42 = vpop.f32.mrf.mxu1  ;;  %v1401_v18 = vadd.f32 %v1400_v4, %v1399_v36  ;;  %v1206_v37 = vadd.f32 %v1205_v29, %v1204_v3 }
 0x154   :  { %v1695_v47 = vpack.c.bf16 %v687_v53, %v687_v53  ;;  %v1727_v50 = vpack.c.bf16 %v2739_v61, %v2739_v61  ;;  %v1316_v8 = vmul.f32 %v687_v53, %v687_v53  ;;  %v1209_v32 = vsel %vm1155_vm2, %v687_v53, 0.0 }
 0x155   :  { %v691_v58 = vpop.f32.mrf.mxu0  ;;  %v819_v55 = vpop.f32.mrf.mxu1  ;;  %v1403_v40 = vadd.f32 %v1402_v13, %v1401_v18  ;;  %v1208_v41 = vadd.f32 %v1207_v11, %v1206_v37 }
 0x156   :  { %1118 = vst.msk [vmem:[%s2991_s3 + $0x6c] sm:$0xf] %vm1090_vm1, %v1695_v47  ;;  %v692_v26 = vadd.f32 %v2136_v10, %v691_v58  ;;  %1150 = vst.msk [vmem:[%s2991_s3 + $0xec] sm:$0xf] %vm1090_vm1, %v1727_v50  ;;  %v2758_v2 = vadd.f32 %v2136_v10, %v819_v55  ;;  %v1406_v53 = vsel %vm1155_vm2, %v1316_v8, 0.0 }
 0x157   :  { %v693_v9 = vpop.f32.mrf.mxu0  ;;  %v821_v52 = vpop.f32.mrf.mxu1  ;;  %v1405_v45 = vadd.f32 %v1404_v5, %v1403_v40  ;;  %v1210_v16 = vadd.f32 %v1209_v32, %v1208_v41  ;;  %v1321_v40 = vmul.f32 %v2142_v14, %v2142_v14 }
 0x158   :  { %v1696_v12 = vpack.c.bf16 %v692_v26, %v692_v26  ;;  %v1728_v15 = vpack.c.bf16 %v2758_v2, %v2758_v2  ;;  %v1317_v35 = vmul.f32 %v692_v26, %v692_v26  ;;  %v1211_v44 = vsel %vm1155_vm2, %v692_v26, 0.0 }
 0x159   :  { %v694_v48 = vpop.f32.mrf.mxu0  ;;  %v822_v33 = vpop.f32.mrf.mxu1  ;;  %v1407_v3 = vadd.f32 %v1406_v53, %v1405_v45  ;;  %v1212_v8 = vadd.f32 %v1211_v44, %v1210_v16 }
 0x15a   :  { %1119 = vst.msk [vmem:[%s2991_s3 + $0x70] sm:$0xf] %vm1090_vm1, %v1696_v12  ;;  %v695_v21 = vadd.f32 %v2136_v10, %v694_v48  ;;  %1151 = vst.msk [vmem:[%s2991_s3 + $0xf0] sm:$0xf] %vm1090_vm1, %v1728_v15  ;;  %v2776_v19 = vadd.f32 %v2136_v10, %v822_v33  ;;  %v1408_v4 = vsel %vm1155_vm2, %v1317_v35, 0.0 }
 0x15b   :  { %v696_v42 = vpop.f32.mrf.mxu0  ;;  %v824_v43 = vpop.f32.mrf.mxu1  ;;  %v1409_v37 = vadd.f32 %v1408_v4, %v1407_v3  ;;  %v1323_v3 = vmul.f32 %v2178_v30, %v2178_v30 }
 0x15c   :  { %v1697_v47 = vpack.c.bf16 %v695_v21, %v695_v21  ;;  %v1318_v50 = vmul.f32 %v695_v21, %v695_v21  ;;  %v1729_v51 = vpack.c.bf16 %v2776_v19, %v2776_v19  ;;  %v1213_v29 = vsel %vm1155_vm2, %v695_v21, 0.0 }
 0x15d   :  { %v699_v58 = vpop.f32.mrf.mxu0  ;;  %v827_v55 = vpop.f32.mrf.mxu1  ;;  %v1214_v5 = vadd.f32 %v1213_v29, %v1212_v8 }
 0x15e   :  { %1120 = vst.msk [vmem:[%s2991_s3 + $0x74] sm:$0xf] %vm1090_vm1, %v1697_v47  ;;  %v700_v26 = vadd.f32 %v2136_v10, %v699_v58  ;;  %1152 = vst.msk [vmem:[%s2991_s3 + $0xf4] sm:$0xf] %vm1090_vm1, %v1729_v51  ;;  %v2794_v36 = vadd.f32 %v2136_v10, %v827_v55  ;;  %v1410_v9 = vsel %vm1155_vm2, %v1318_v50, 0.0  ;;  %v1322_v58 = vmul.f32 %v2160_v22, %v2160_v22 }
 0x15f   :  { %v701_v52 = vpop.f32.mrf.mxu0  ;;  %v829_v13 = vpop.f32.mrf.mxu1  ;;  %v1411_v41 = vadd.f32 %v1410_v9, %v1409_v37  ;;  %v1325_v37 = vmul.f32 %v2214_v46, %v2214_v46 }
 0x160   :  { %v1698_v11 = vpack.c.bf16 %v700_v26, %v700_v26  ;;  %v1215_v12 = vsel %vm1155_vm2, %v700_v26, 0.0  ;;  %v1319_v15 = vmul.f32 %v700_v26, %v700_v26  ;;  %v1730_v18 = vpack.c.bf16 %v2794_v36, %v2794_v36 }
 0x161   :  { %v702_v48 = vpop.f32.mrf.mxu0  ;;  %v830_v33 = vpop.f32.mrf.mxu1  ;;  %v1216_v53 = vadd.f32 %v1215_v12, %v1214_v5  ;;  %v1416_v26 = vsel %vm1155_vm2, %v1321_v40, 0.0  ;;  %v1418_v52 = vsel %vm1155_vm2, %v1322_v58, 0.0  ;;  %v1223_v13 = vsel %vm1155_vm2, %v2178_v30, 0.0 }
 0x162   :  { %1121 = vst.msk [vmem:[%s2991_s3 + $0x78] sm:$0xf] %vm1090_vm1, %v1698_v11  ;;  %v1412_v32 = vsel %vm1155_vm2, %v1319_v15, 0.0  ;;  %v703_v35 = vadd.f32 %v2136_v10, %v702_v48  ;;  %1153 = vst.msk [vmem:[%s2991_s3 + $0xf8] sm:$0xf] %vm1090_vm1, %v1730_v18  ;;  %v2811_v21 = vadd.f32 %v2136_v10, %v830_v33  ;;  %v1219_v10 = vsel %vm1155_vm2, %v2142_v14, 0.0 }
 0x163   :  { %v704_v42 = vpop.f32.mrf.mxu0  ;;  %v832_v43 = vpop.f32.mrf.mxu1  ;;  %v1413_v45 = vadd.f32 %v1412_v32, %v1411_v41  ;;  %v1221_v14 = vsel %vm1155_vm2, %v2160_v22, 0.0  ;;  %v1324_v11 = vmul.f32 %v2196_v38, %v2196_v38  ;;  %v1420_v18 = vsel %vm1155_vm2, %v1323_v3, 0.0 }
 0x164   :  { %v1699_v44 = vpack.c.bf16 %v703_v35, %v703_v35  ;;  %v1217_v47 = vsel %vm1155_vm2, %v703_v35, 0.0  ;;  %v1320_v50 = vmul.f32 %v703_v35, %v703_v35  ;;  %v1731_v51 = vpack.c.bf16 %v2811_v21, %v2811_v21 }
 0x165   :  { %v1218_v16 = vadd.f32 %v1217_v47, %v1216_v53  ;;  %v1225_v22 = vsel %vm1155_vm2, %v2196_v38, 0.0  ;;  %v1422_v33 = vsel %vm1155_vm2, %v1324_v11, 0.0  ;;  %v1227_v30 = vsel %vm1155_vm2, %v2214_v46, 0.0 }
 0x166   :  { %1122 = vst.msk [vmem:[%s2991_s3 + $0x7c] sm:$0xf] %vm1090_vm1, %v1699_v44  ;;  %v1414_v55 = vsel %vm1155_vm2, %v1320_v50, 0.0  ;;  %1154 = vst.msk [vmem:[%s2991_s3 + $0xfc] sm:$0xf] %vm1090_vm1, %v1731_v51  ;;  %v1326_v32 = vmul.f32 %v2232_v54, %v2232_v54  ;;  %v1424_v41 = vsel %vm1155_vm2, %v1325_v37, 0.0  ;;  %v1327_v53 = vmul.f32 %v2250_v62, %v2250_v62 }
 0x167   :  { %v1220_v4 = vadd.f32 %v1219_v10, %v1218_v16  ;;  %v1415_v29 = vadd.f32 %v1414_v55, %v1413_v45  ;;  %v1229_v38 = vsel %vm1155_vm2, %v2232_v54, 0.0  ;;  %v1231_v46 = vsel %vm1155_vm2, %v2250_v62, 0.0 }
 0x168   :  { %v1426_v44 = vsel %vm1155_vm2, %v1326_v32, 0.0  ;;  %v1328_v47 = vmul.f32 %v2268_v6, %v2268_v6  ;;  %v1428_v45 = vsel %vm1155_vm2, %v1327_v53, 0.0  ;;  %v1233_v54 = vsel %vm1155_vm2, %v2268_v6, 0.0 }
 0x169   :  { %v1222_v8 = vadd.f32 %v1221_v14, %v1220_v4  ;;  %v1417_v9 = vadd.f32 %v1416_v26, %v1415_v29  ;;  %v1329_v16 = vmul.f32 %v2286_v17, %v2286_v17  ;;  %v1235_v62 = vsel %vm1155_vm2, %v2286_v17, 0.0 }
 0x16a   :  { %v1430_v55 = vsel %vm1155_vm2, %v1328_v47, 0.0  ;;  %v1330_v4 = vmul.f32 %v2304_v27, %v2304_v27  ;;  %v1237_v6 = vsel %vm1155_vm2, %v2304_v27, 0.0  ;;  %v1331_v3 = vmul.f32 %v2322_v39, %v2322_v39 }
 0x16b   :  { %v1224_v12 = vadd.f32 %v1223_v13, %v1222_v8  ;;  %v1419_v15 = vadd.f32 %v1418_v52, %v1417_v9  ;;  %v1432_v14 = vsel %vm1155_vm2, %v1329_v16, 0.0  ;;  %v1239_v17 = vsel %vm1155_vm2, %v2322_v39, 0.0 }
 0x16c   :  { %v1434_v52 = vsel %vm1155_vm2, %v1330_v4, 0.0  ;;  %v1332_v13 = vmul.f32 %v2340_v49, %v2340_v49  ;;  %v1241_v27 = vsel %vm1155_vm2, %v2340_v49, 0.0  ;;  %v1243_v39 = vsel %vm1155_vm2, %v2358_v59, 0.0 }
 0x16d   :  { %v1226_v5 = vadd.f32 %v1225_v22, %v1224_v12  ;;  %v1421_v48 = vadd.f32 %v1420_v18, %v1419_v15  ;;  %v1436_v15 = vsel %vm1155_vm2, %v1331_v3, 0.0  ;;  %v1333_v18 = vmul.f32 %v2358_v59, %v2358_v59 }
 0x16e   :  { %v1245_v49 = vsel %vm1155_vm2, %v2376_v7, 0.0  ;;  %v1247_v59 = vsel %vm1155_vm2, %v2394_v20, 0.0  ;;  %v1336_v53 = vmul.f32 %v2412_v34, %v2412_v34  ;;  %v1341_v3 = vmul.f32 %v2553_v60, %v2553_v60 }
 0x16f   :  { %v1228_v35 = vadd.f32 %v1227_v30, %v1226_v5  ;;  %v1423_v40 = vadd.f32 %v1422_v33, %v1421_v48  ;;  %v1438_v5 = vsel %vm1155_vm2, %v1332_v13, 0.0  ;;  %v1334_v48 = vmul.f32 %v2376_v7, %v2376_v7 }
 0x170   :  { %v1440_v32 = vsel %vm1155_vm2, %v1333_v18, 0.0  ;;  %v1249_v7 = vsel %vm1155_vm2, %v2412_v34, 0.0  ;;  %v1253_v34 = vsel %vm1155_vm2, %v2469_v23, 0.0 }
 0x171   :  { %v1230_v42 = vadd.f32 %v1229_v38, %v1228_v35  ;;  %v1425_v43 = vadd.f32 %v1424_v41, %v1423_v40  ;;  %v1335_v35 = vmul.f32 %v2394_v20, %v2394_v20  ;;  %v1442_v38 = vsel %vm1155_vm2, %v1334_v48, 0.0 }
 0x172   :  { %v1251_v20 = vsel %vm1155_vm2, %v2438_v56, 0.0 }
 0x173   :  { %v1232_v50 = vadd.f32 %v1231_v46, %v1230_v42  ;;  %v1427_v51 = vadd.f32 %v1426_v44, %v1425_v43  ;;  %v1444_v44 = vsel %vm1155_vm2, %v1335_v35, 0.0  ;;  %v1337_v46 = vmul.f32 %v2438_v56, %v2438_v56 }
 0x174   :  { %v1255_v56 = vsel %vm1155_vm2, %v2497_v57, 0.0  ;;  %v1346_v35 = vmul.f32 %v2691_v31, %v2691_v31 }
 0x175   :  { %v1234_v10 = vadd.f32 %v1233_v54, %v1232_v50  ;;  %v1429_v58 = vadd.f32 %v1428_v45, %v1427_v51  ;;  %v1446_v51 = vsel %vm1155_vm2, %v1336_v53, 0.0  ;;  %v1338_v45 = vmul.f32 %v2469_v23, %v2469_v23 }
 0x176   :  { %v1257_v23 = vsel %vm1155_vm2, %v2525_v24, 0.0 }
 0x177   :  { %v1431_v29 = vadd.f32 %v1430_v55, %v1429_v58  ;;  %v1236_v26 = vadd.f32 %v1235_v62, %v1234_v10  ;;  %v1448_v10 = vsel %vm1155_vm2, %v1337_v46, 0.0  ;;  %v1339_v58 = vmul.f32 %v2497_v57, %v2497_v57 }
 0x178   :  { %v1450_v4 = vsel %vm1155_vm2, %v1338_v45, 0.0  ;;  %v1259_v57 = vsel %vm1155_vm2, %v2553_v60, 0.0  ;;  %v1263_v60 = vsel %vm1155_vm2, %v2609_v63, 0.0 }
 0x179   :  { %v1238_v8 = vadd.f32 %v1237_v6, %v1236_v26  ;;  %v1433_v9 = vadd.f32 %v1432_v14, %v1431_v29  ;;  %v1340_v29 = vmul.f32 %v2525_v24, %v2525_v24  ;;  %v1452_v6 = vsel %vm1155_vm2, %v1339_v58, 0.0 }
 0x17a   :  { %v1261_v24 = vsel %vm1155_vm2, %v2581_v25, 0.0  ;;  %v1351_v58 = vmul.f32 %v2794_v36, %v2794_v36 }
 0x17b   :  { %v1240_v11 = vadd.f32 %v1239_v17, %v1238_v8  ;;  %v1435_v12 = vadd.f32 %v1434_v52, %v1433_v9  ;;  %v1454_v52 = vsel %vm1155_vm2, %v1340_v29, 0.0  ;;  %v1342_v17 = vmul.f32 %v2581_v25, %v2581_v25 }
 0x17c   :  { %v1265_v25 = vsel %vm1155_vm2, %v2637_v28, 0.0 }
 0x17d   :  { %v1242_v22 = vadd.f32 %v1241_v27, %v1240_v11  ;;  %v1437_v37 = vadd.f32 %v1436_v15, %v1435_v12  ;;  %v1456_v12 = vsel %vm1155_vm2, %v1341_v3, 0.0  ;;  %v1343_v15 = vmul.f32 %v2609_v63, %v2609_v63 }
 0x17e   :  { %v1267_v63 = vsel %vm1155_vm2, %v2665_v0, 0.0 }
 0x17f   :  { %v1244_v33 = vadd.f32 %v1243_v39, %v1242_v22  ;;  %v1439_v30 = vadd.f32 %v1438_v5, %v1437_v37  ;;  %v1458_v22 = vsel %vm1155_vm2, %v1342_v17, 0.0  ;;  %v1344_v37 = vmul.f32 %v2637_v28, %v2637_v28 }
 0x180   :  { %v1460_v48 = vsel %vm1155_vm2, %v1343_v15, 0.0  ;;  %v1269_v28 = vsel %vm1155_vm2, %v2691_v31, 0.0  ;;  %v1273_v31 = vsel %vm1155_vm2, %v2739_v61, 0.0 }
 0x181   :  { %v1246_v40 = vadd.f32 %v1245_v49, %v1244_v33  ;;  %v1441_v41 = vadd.f32 %v1440_v32, %v1439_v30  ;;  %v1345_v33 = vmul.f32 %v2665_v0, %v2665_v0  ;;  %v1462_v49 = vsel %vm1155_vm2, %v1344_v37, 0.0 }
 0x182   :  { %v1271_v0 = vsel %vm1155_vm2, %v2715_v1, 0.0 }
 0x183   :  { %v1248_v42 = vadd.f32 %v1247_v59, %v1246_v40  ;;  %v1443_v43 = vadd.f32 %v1442_v38, %v1441_v41  ;;  %v1464_v38 = vsel %vm1155_vm2, %v1345_v33, 0.0  ;;  %v1347_v59 = vmul.f32 %v2715_v1, %v2715_v1 }
 0x184   :  { %v1275_v1 = vsel %vm1155_vm2, %v2758_v2, 0.0 }
 0x185   :  { %v1250_v47 = vadd.f32 %v1249_v7, %v1248_v42  ;;  %v1445_v50 = vadd.f32 %v1444_v44, %v1443_v43  ;;  %v1466_v43 = vsel %vm1155_vm2, %v1346_v35, 0.0  ;;  %v1348_v44 = vmul.f32 %v2739_v61, %v2739_v61 }
 0x186   :  { %v1277_v61 = vsel %vm1155_vm2, %v2776_v19, 0.0 }
 0x187   :  { %v1252_v54 = vadd.f32 %v1251_v20, %v1250_v47  ;;  %v1447_v16 = vadd.f32 %v1446_v51, %v1445_v50  ;;  %v1468_v47 = vsel %vm1155_vm2, %v1347_v59, 0.0  ;;  %v1349_v50 = vmul.f32 %v2758_v2, %v2758_v2 }
 0x188   :  { %v1470_v45 = vsel %vm1155_vm2, %v1348_v44, 0.0  ;;  %v1279_v2 = vsel %vm1155_vm2, %v2794_v36, 0.0 }
 0x189   :  { %v1254_v55 = vadd.f32 %v1253_v34, %v1252_v54  ;;  %v1449_v62 = vadd.f32 %v1448_v10, %v1447_v16  ;;  %v1350_v54 = vmul.f32 %v2776_v19, %v2776_v19  ;;  %v1472_v34 = vsel %vm1155_vm2, %v1349_v50, 0.0 }
 0x18a   :  { %v1281_v19 = vsel %vm1155_vm2, %v2811_v21, 0.0 }
 0x18b   :  { %v1451_v26 = vadd.f32 %v1450_v4, %v1449_v62  ;;  %v1256_v14 = vadd.f32 %v1255_v56, %v1254_v55  ;;  %v1474_v4 = vsel %vm1155_vm2, %v1350_v54, 0.0  ;;  %v1352_v56 = vmul.f32 %v2811_v21, %v2811_v21 }
 0x18d   :  { %v1453_v8 = vadd.f32 %v1452_v6, %v1451_v26  ;;  %v1258_v9 = vadd.f32 %v1257_v23, %v1256_v14  ;;  %v1476_v14 = vsel %vm1155_vm2, %v1351_v58, 0.0  ;;  %v1478_v3 = vsel %vm1155_vm2, %v1352_v56, 0.0 }
 0x18f   :  { %v1455_v13 = vadd.f32 %v1454_v52, %v1453_v8  ;;  %v1260_v11 = vadd.f32 %v1259_v57, %v1258_v9 }
 0x191   :  { %v1457_v27 = vadd.f32 %v1456_v12, %v1455_v13  ;;  %v1262_v18 = vadd.f32 %v1261_v24, %v1260_v11 }
 0x193   :  { %v1459_v5 = vadd.f32 %v1458_v22, %v1457_v27  ;;  %v1264_v39 = vadd.f32 %v1263_v60, %v1262_v18 }
 0x195   :  { %v1461_v30 = vadd.f32 %v1460_v48, %v1459_v5  ;;  %v1266_v32 = vadd.f32 %v1265_v25, %v1264_v39 }
 0x197   :  { %v1463_v40 = vadd.f32 %v1462_v49, %v1461_v30  ;;  %v1268_v41 = vadd.f32 %v1267_v63, %v1266_v32 }
 0x199   :  { %v1465_v53 = vadd.f32 %v1464_v38, %v1463_v40  ;;  %v1270_v42 = vadd.f32 %v1269_v28, %v1268_v41 }
 0x19b   :  { %v1467_v7 = vadd.f32 %v1466_v43, %v1465_v53  ;;  %v1272_v46 = vadd.f32 %v1271_v0, %v1270_v42 }
 0x19d   :  { %v1469_v51 = vadd.f32 %v1468_v47, %v1467_v7  ;;  %v1274_v20 = vadd.f32 %v1273_v31, %v1272_v46 }
 0x19f   :  { %v1471_v16 = vadd.f32 %v1470_v45, %v1469_v51  ;;  %v1276_v10 = vadd.f32 %v1275_v1, %v1274_v20 }
 0x1a1   :  { %v1473_v55 = vadd.f32 %v1472_v34, %v1471_v16  ;;  %v1278_v62 = vadd.f32 %v1277_v61, %v1276_v10 }
 0x1a3   :  { %v1475_v29 = vadd.f32 %v1474_v4, %v1473_v55  ;;  %v1280_v26 = vadd.f32 %v1279_v2, %v1278_v62 }
 0x1a5   :  { %v1477_v6 = vadd.f32 %v1476_v14, %v1475_v29  ;;  %v1282_v23 = vadd.f32 %v1281_v19, %v1280_v26 }
 0x1a7   :  { %v1283_v8 = vrot.slane %v1282_v23, 4  ;;  %v1479_v9 = vadd.f32 %v1478_v3, %v1477_v6 }
 0x1a9   :  { %v1284_v52 = vadd.f32 %v1283_v8, %v1282_v23  ;;  %v1480_v57 = vrot.slane %v1479_v9, 4 }
 0x1ab   :  { %v1285_v17 = vrot.slane %v1284_v52, 2  ;;  %v1481_v36 = vadd.f32 %v1480_v57, %v1479_v9 }
 0x1ad   :  { %v1286_v13 = vadd.f32 %v1285_v17, %v1284_v52  ;;  %v1482_v11 = vrot.slane %v1481_v36, 2 }
 0x1af   :  { %v1287_v12 = vrot.slane %v1286_v13, 1  ;;  %v1483_v24 = vadd.f32 %v1482_v11, %v1481_v36 }
 0x1b1   :  { %v1484_v15 = vrot.slane %v1483_v24, 1  ;;  %v1288_v27 = vadd.f32 %v1287_v12, %v1286_v13 }
 0x1b3   :  { %v1485_v18 = vadd.f32 %v1484_v15, %v1483_v24 }
 0x1b5   :  { %v1487_v21 = vsel %vm1486_vm3, %v1288_v27, %v1485_v18 }
 0x1b6   :  { %1489 = vst.msk [vmem:[%s2992_s4] sm:$0x3] %vm1488_vm4, %v1487_v21 }

// kernel: decoder_forward.15
= control target key start
LH: loop header
LB: loop body
LE: loop exit
PB: predicated region body
PF: predicated region fallthrough
CT: control target
= control target key end

     0   :  { %s1612_s14 = smov 0   ;;  %s2112_s0 = inlined_call_operand.vmem [shape: bf16[2048,72], index: 0, kind: input, shape index: {}]   ;;  %s2113_s1 = inlined_call_operand.vmem [shape: f32[1,72], index: 1, kind: input, shape index: {}]   ;;  %s2114_s2 = inlined_call_operand.<no memory space> [shape: f32[1,1], index: 2, kind: input, shape index: {}]   ;;  %s2115_s3 = inlined_call_operand.vmem [shape: f32[2048,1], index: 3, kind: output, shape index: {}]  }
   0x1   :  { %v8_v0 = vstv %s2114_s2 }
   0x2   :  { %9 = vst [vmem:[#allocation2] sm:$0x1] %v8_v0 }
   0x3 LB: > { %s1144_s15 = sadd.s32 4294967295, %s1587_s14   ;;  %p1148_p0 = scmp.ge.s32.totalorder %s1587_s14, 1  ;;  %s1587_s14 = sphi %s1612_s14, %s15_s14  }
   0x4   : > { %p140_p1 = scmp.lt.s32.totalorder %s1587_s14, 5 }
   0x6   : > { %p141_p2 = pnand %p1148_p0, %p140_p1 }
   0x7   : > { %s1149_s16 = sshll.u32 (!%p141_p2), %s1144_s15, 6 }
   0x8   : > { %144 = sbr.rel (%p141_p2) target bundleno = 324 (0x144), region = 32  ;;  %p165_p3 = scmp.lt.s32.totalorder (!%p141_p2), %s1149_s16, 255 }
   0xd   : > { %s2117_s16 = smov (!%p165_p3, %s1149_s16), 255  ;;  %v1631_v1 = vld [vmem:[%s2113_s1] ss:$0 sm:$0xff]  ;;  %vm375_vm0 = vcmask 588800   ;;  %vm1023_vm1 = vcmask 7168  }
   0xe   : > { %s1150_s2 = sshll.u32 %s2117_s16, 2  ;;  %s1152_s22 = sshll.u32 %s2117_s16, 3 }
   0xf   : > { %s1626_s19 = scalar_lea.vmem %s2112_s0, %s1150_s2  ;;  %s1938_s25 = scalar_lea.vmem %s2115_s3, %s1152_s22 }
  0x10   : > { %v1285_v2 = vld [vmem:[%s1626_s19 + $0x8] sm:$0xff]   ;;  %v1158_v3 = vld [vmem:[%s1626_s19] sm:$0xff]   ;;  %v1286_v4 = vld [vmem:[%s1626_s19 + $0x10] sm:$0xff]  }
  0x11   : > { %v1163_v5 = vunpack.c.l.bf16 %v1285_v2  ;;  %v1159_v6 = vunpack.c.l.bf16 %v1158_v3  ;;  %v1164_v7 = vunpack.c.h.bf16 %v1285_v2  ;;  %v1160_v8 = vunpack.c.h.bf16 %v1158_v3  ;;  %v1287_v9 = vld [vmem:[%s1626_s19 + $0x18] sm:$0xff]   ;;  %v1288_v21 = vld [vmem:[%s1626_s19 + $0x20] sm:$0xff]   ;;  %v1289_v27 = vld [vmem:[%s1626_s19 + $0x28] sm:$0xff]  }
  0x12   : > { %v1168_v10 = vunpack.c.h.bf16 %v1286_v4  ;;  %v1167_v11 = vunpack.c.l.bf16 %v1286_v4  ;;  %v1172_v12 = vunpack.c.h.bf16 %v1287_v9  ;;  %v1171_v20 = vunpack.c.l.bf16 %v1287_v9  ;;  %v1290_v28 = vld [vmem:[%s1626_s19 + $0x30] sm:$0xff]   ;;  %v1291_v30 = vld [vmem:[%s1626_s19 + $0x38] sm:$0xff]   ;;  %v1292_v31 = vld [vmem:[%s1626_s19 + $0x40] sm:$0xff]  }
  0x13   : > { %v313_v13 = vmul.f32 %v1163_v5, %v1631_v1  ;;  %v311_v14 = vmul.f32 %v1159_v6, %v1631_v1  ;;  %v314_v15 = vmul.f32 %v1164_v7, %v1631_v1  ;;  %v312_v16 = vmul.f32 %v1160_v8, %v1631_v1  ;;  %v1293_v36 = vld [vmem:[%s1626_s19 + $0x48] sm:$0xff]   ;;  %v1294_v41 = vld [vmem:[%s1626_s19 + $0x50] sm:$0xff]   ;;  %v1295_v42 = vld [vmem:[%s1626_s19 + $0x58] sm:$0xff]  }
  0x14   : > { %v316_v19 = vmul.f32 %v1168_v10, %v1631_v1  ;;  %v315_v24 = vmul.f32 %v1167_v11, %v1631_v1  ;;  %v318_v25 = vmul.f32 %v1172_v12, %v1631_v1  ;;  %v1176_v26 = vunpack.c.h.bf16 %v1288_v21  ;;  %v1672_v63 = vld [vmem:[%s1626_s19 + $0x60] sm:$0xff]  }
  0x15   : > { %v382_v17 = vsel %vm375_vm0, %v313_v13, 0.0  ;;  %v376_v18 = vsel %vm375_vm0, %v311_v14, 0.0  ;;  %v385_v22 = vsel %vm375_vm0, %v314_v15, 0.0  ;;  %v379_v23 = vsel %vm375_vm0, %v312_v16, 0.0  ;;  %v1300_v13 = vld [vmem:[%s1626_s19 + $0x80] sm:$0xff]  }
  0x16   : > { %383 = vadd.xlane.f32.xlu1 %v382_v17  ;;  %377 = vadd.xlane.f32.xlu0 %v376_v18  ;;  %v317_v29 = vmul.f32 %v1171_v20, %v1631_v1  ;;  %v391_v32 = vsel %vm375_vm0, %v316_v19, 0.0  ;;  %v388_v33 = vsel %vm375_vm0, %v315_v24, 0.0  ;;  %v397_v34 = vsel %vm375_vm0, %v318_v25, 0.0  ;;  %v1697_v18 = vld [vmem:[%s1626_s19 + $0x68] sm:$0xff]  }
  0x17   : > { %v1175_v35 = vunpack.c.l.bf16 %v1288_v21  ;;  %v1180_v37 = vunpack.c.h.bf16 %v1289_v27  ;;  %v1179_v38 = vunpack.c.l.bf16 %v1289_v27  ;;  %v1184_v39 = vunpack.c.h.bf16 %v1290_v28 }
  0x18   : > { %v1183_v40 = vunpack.c.l.bf16 %v1290_v28  ;;  %v320_v43 = vmul.f32 %v1176_v26, %v1631_v1  ;;  %v1188_v44 = vunpack.c.h.bf16 %v1291_v30  ;;  %v1187_v45 = vunpack.c.l.bf16 %v1291_v30  ;;  %v1302_v28 = vld [vmem:[%s1626_s19 + $0x90] sm:$0xff]  }
  0x19   : > { %v1192_v46 = vunpack.c.h.bf16 %v1292_v31  ;;  %v394_v47 = vsel %vm375_vm0, %v317_v29, 0.0  ;;  %v1191_v48 = vunpack.c.l.bf16 %v1292_v31  ;;  %v1196_v49 = vunpack.c.h.bf16 %v1293_v36  ;;  %v1303_v29 = vld [vmem:[%s1626_s19 + $0x98] sm:$0xff]  }
  0x1a   : > { %386 = vadd.xlane.f32.xlu1 %v385_v22  ;;  %380 = vadd.xlane.f32.xlu0 %v379_v23  ;;  %v1195_v50 = vunpack.c.l.bf16 %v1293_v36  ;;  %v319_v51 = vmul.f32 %v1175_v35, %v1631_v1  ;;  %v1200_v52 = vunpack.c.h.bf16 %v1294_v41  ;;  %v1199_v53 = vunpack.c.l.bf16 %v1294_v41  ;;  %v1301_v23 = vld [vmem:[%s1626_s19 + $0x88] sm:$0xff]  }
  0x1b   : > { %v1204_v54 = vunpack.c.h.bf16 %v1295_v42  ;;  %v322_v55 = vmul.f32 %v1180_v37, %v1631_v1  ;;  %v321_v56 = vmul.f32 %v1179_v38, %v1631_v1  ;;  %v324_v57 = vmul.f32 %v1184_v39, %v1631_v1 }
  0x1c   : > { %v323_v58 = vmul.f32 %v1183_v40, %v1631_v1  ;;  %v403_v59 = vsel %vm375_vm0, %v320_v43, 0.0  ;;  %v326_v60 = vmul.f32 %v1188_v44, %v1631_v1  ;;  %v325_v61 = vmul.f32 %v1187_v45, %v1631_v1 }
  0x1d   : > { %v328_v62 = vmul.f32 %v1192_v46, %v1631_v1  ;;  %v327_v0 = vmul.f32 %v1191_v48, %v1631_v1  ;;  %v330_v2 = vmul.f32 %v1196_v49, %v1631_v1  ;;  %v329_v3 = vmul.f32 %v1195_v50, %v1631_v1 }
  0x1e   : > { %392 = vadd.xlane.f32.xlu1 %v391_v32  ;;  %389 = vadd.xlane.f32.xlu0 %v388_v33  ;;  %v1203_v4 = vunpack.c.l.bf16 %v1295_v42  ;;  %v400_v5 = vsel %vm375_vm0, %v319_v51, 0.0  ;;  %v332_v6 = vmul.f32 %v1200_v52, %v1631_v1  ;;  %v331_v7 = vmul.f32 %v1199_v53, %v1631_v1  ;;  %v1304_v42 = vld [vmem:[%s1626_s19 + $0xa0] sm:$0xff]   ;;  %v1305_v51 = vld [vmem:[%s1626_s19 + $0xa8] sm:$0xff]  }
  0x1f   : > { %v334_v8 = vmul.f32 %v1204_v54, %v1631_v1  ;;  %v409_v9 = vsel %vm375_vm0, %v322_v55, 0.0  ;;  %v406_v10 = vsel %vm375_vm0, %v321_v56, 0.0  ;;  %v415_v11 = vsel %vm375_vm0, %v324_v57, 0.0  ;;  %v1306_v56 = vld [vmem:[%s1626_s19 + $0xb0] sm:$0xff]   ;;  %v1307_v57 = vld [vmem:[%s1626_s19 + $0xb8] sm:$0xff]  }
  0x20   : > { %v1208_v12 = vunpack.c.h.bf16 %v1672_v63  ;;  %v412_v14 = vsel %vm375_vm0, %v323_v58, 0.0  ;;  %v1688_v15 = vsel %vm375_vm0, %v326_v60, 0.0  ;;  %v1691_v16 = vsel %vm375_vm0, %v325_v61, 0.0 }
  0x21   : > { %v1694_v17 = vsel %vm375_vm0, %v328_v62, 0.0  ;;  %v1700_v19 = vsel %vm375_vm0, %v327_v0, 0.0  ;;  %v1703_v20 = vsel %vm375_vm0, %v330_v2, 0.0  ;;  %v1706_v21 = vsel %vm375_vm0, %v329_v3, 0.0 }
  0x22   : > { %398 = vadd.xlane.f32.xlu1 %v397_v34  ;;  %395 = vadd.xlane.f32.xlu0 %v394_v47  ;;  %v333_v22 = vmul.f32 %v1203_v4, %v1631_v1  ;;  %v1711_v24 = vsel %vm375_vm0, %v332_v6, 0.0  ;;  %v1714_v25 = vsel %vm375_vm0, %v331_v7, 0.0  ;;  %v1717_v26 = vsel %vm375_vm0, %v334_v8, 0.0  ;;  %v1308_v8 = vld [vmem:[%s1626_s19 + $0xc0] sm:$0xff]  }
  0x23   : > { %v1224_v27 = vunpack.c.h.bf16 %v1300_v13  ;;  %v1722_v30 = vmul.f32 %v1208_v12, %v1631_v1  ;;  %v1207_v31 = vunpack.c.l.bf16 %v1672_v63  ;;  %v1212_v32 = vunpack.c.h.bf16 %v1697_v18 }
  0x24   : > { %v1211_v33 = vunpack.c.l.bf16 %v1697_v18  ;;  %v1223_v35 = vunpack.c.l.bf16 %v1300_v13  ;;  %v1228_v36 = vunpack.c.h.bf16 %v1301_v23  ;;  %v1227_v37 = vunpack.c.l.bf16 %v1301_v23 }
  0x25   : > { %v344_v34 = vmul.f32 %v1224_v27, %v1631_v1  ;;  %v1729_v38 = vsel %vm375_vm0, %v333_v22, 0.0  ;;  %v1232_v39 = vunpack.c.h.bf16 %v1302_v28  ;;  %v1231_v40 = vunpack.c.l.bf16 %v1302_v28  ;;  %v1309_v27 = vld [vmem:[%s1626_s19 + $0xc8] sm:$0xff]  }
  0x26   : > { %404 = vadd.xlane.f32.xlu1 %v403_v59  ;;  %401 = vadd.xlane.f32.xlu0 %v400_v5  ;;  %v1236_v41 = vunpack.c.h.bf16 %v1303_v29  ;;  %v343_v44 = vmul.f32 %v1223_v35, %v1631_v1  ;;  %v346_v45 = vmul.f32 %v1228_v36, %v1631_v1  ;;  %v345_v46 = vmul.f32 %v1227_v37, %v1631_v1  ;;  %v1310_v35 = vld [vmem:[%s1626_s19 + $0xd0] sm:$0xff]  }
  0x27   : > { %v1733_v43 = vsel %vm375_vm0, %v344_v34, 0.0  ;;  %v348_v47 = vmul.f32 %v1232_v39, %v1631_v1  ;;  %v347_v48 = vmul.f32 %v1231_v40, %v1631_v1  ;;  %v1235_v50 = vunpack.c.l.bf16 %v1303_v29 }
  0x28   : > { %v350_v49 = vmul.f32 %v1236_v41, %v1631_v1  ;;  %v1743_v52 = vsel %vm375_vm0, %v343_v44, 0.0  ;;  %v1746_v53 = vsel %vm375_vm0, %v346_v45, 0.0  ;;  %v1749_v54 = vsel %vm375_vm0, %v345_v46, 0.0 }
  0x29   : > { %v1240_v55 = vunpack.c.h.bf16 %v1304_v42  ;;  %v1754_v58 = vsel %vm375_vm0, %v348_v47, 0.0  ;;  %v1757_v59 = vsel %vm375_vm0, %v347_v48, 0.0  ;;  %v349_v61 = vmul.f32 %v1235_v50, %v1631_v1  ;;  %v1312_v50 = vld [vmem:[%s1626_s19 + $0xe0] sm:$0xff]  }
  0x2a   : > { %410 = vadd.xlane.f32.xlu1 %v409_v9  ;;  %407 = vadd.xlane.f32.xlu0 %v406_v10  ;;  %v1760_v60 = vsel %vm375_vm0, %v350_v49, 0.0  ;;  %v1239_v0 = vunpack.c.l.bf16 %v1304_v42  ;;  %v1244_v2 = vunpack.c.h.bf16 %v1305_v51  ;;  %v1243_v3 = vunpack.c.l.bf16 %v1305_v51 }
  0x2b   : > { %v352_v62 = vmul.f32 %v1240_v55, %v1631_v1  ;;  %v1765_v4 = vsel %vm375_vm0, %v349_v61, 0.0  ;;  %v1248_v5 = vunpack.c.h.bf16 %v1306_v56  ;;  %v1247_v6 = vunpack.c.l.bf16 %v1306_v56 }
  0x2c   : > { %v1252_v7 = vunpack.c.h.bf16 %v1307_v57  ;;  %v351_v10 = vmul.f32 %v1239_v0, %v1631_v1  ;;  %v353_v12 = vmul.f32 %v1243_v3, %v1631_v1  ;;  %v1251_v23 = vunpack.c.l.bf16 %v1307_v57  ;;  %v1313_v0 = vld [vmem:[%s1626_s19 + $0xe8] sm:$0xff]  }
  0x2d   : > { %v1769_v9 = vsel %vm375_vm0, %v352_v62, 0.0  ;;  %v356_v13 = vmul.f32 %v1248_v5, %v1631_v1  ;;  %v1255_v42 = vunpack.c.l.bf16 %v1308_v8  ;;  %v1260_v44 = vunpack.c.h.bf16 %v1309_v27 }
  0x2e   : > { %416 = vadd.xlane.f32.xlu1 %v415_v11  ;;  %413 = vadd.xlane.f32.xlu0 %v412_v14  ;;  %v354_v11 = vmul.f32 %v1244_v2, %v1631_v1  ;;  %v355_v14 = vmul.f32 %v1247_v6, %v1631_v1  ;;  %v358_v22 = vmul.f32 %v1252_v7, %v1631_v1  ;;  %v1781_v28 = vsel %vm375_vm0, %v351_v10, 0.0  ;;  %v1314_v7 = vld [vmem:[%s1626_s19 + $0xf0] sm:$0xff]  }
  0x2f   : > { %v1787_v34 = vsel %vm375_vm0, %v353_v12, 0.0  ;;  %v1792_v36 = vsel %vm375_vm0, %v356_v13, 0.0  ;;  %v357_v40 = vmul.f32 %v1251_v23, %v1631_v1  ;;  %v1259_v45 = vunpack.c.l.bf16 %v1309_v27 }
  0x30   : > { %v1784_v29 = vsel %vm375_vm0, %v354_v11, 0.0  ;;  %v1795_v37 = vsel %vm375_vm0, %v355_v14, 0.0  ;;  %v1798_v39 = vsel %vm375_vm0, %v358_v22, 0.0  ;;  %v1264_v47 = vunpack.c.h.bf16 %v1310_v35 }
  0x31   : > { %v1805_v46 = vsel %vm375_vm0, %v357_v40, 0.0  ;;  %v1263_v48 = vunpack.c.l.bf16 %v1310_v35  ;;  %v359_v55 = vmul.f32 %v1255_v42, %v1631_v1  ;;  %v362_v56 = vmul.f32 %v1260_v44, %v1631_v1 }
  0x32   : > { %422 = vadd.xlane.f32.xlu1 %v1688_v15  ;;  %419 = vadd.xlane.f32.xlu0 %v1691_v16  ;;  %v1256_v15 = vunpack.c.h.bf16 %v1308_v8  ;;  %v1311_v16 = vld [vmem:[%s1626_s19 + $0xd8] sm:$0xff]   ;;  %v1272_v6 = vunpack.c.h.bf16 %v1312_v50  ;;  %v1271_v22 = vunpack.c.l.bf16 %v1312_v50  ;;  %v1276_v23 = vunpack.c.h.bf16 %v1313_v0  ;;  %v1298_v50 = vld [vmem:[%s1626_s19 + $0x70] sm:$0xff]  }
  0x33   : > { %v1268_v49 = vunpack.c.h.bf16 %v1311_v16  ;;  %v363_v57 = vmul.f32 %v1263_v48, %v1631_v1  ;;  %v1267_v62 = vunpack.c.l.bf16 %v1311_v16  ;;  %v1819_v2 = vsel %vm375_vm0, %v359_v55, 0.0  ;;  %v1315_v8 = vld [vmem:[%s1626_s19 + $0xf8] sm:$0xff]  }
  0x34   : > { %v360_v41 = vmul.f32 %v1256_v15, %v1631_v1  ;;  %v1822_v3 = vsel %vm375_vm0, %v362_v56, 0.0  ;;  %v368_v14 = vmul.f32 %v1272_v6, %v1631_v1  ;;  %v1275_v27 = vunpack.c.l.bf16 %v1313_v0 }
  0x35   : > { %v366_v61 = vmul.f32 %v1268_v49, %v1631_v1  ;;  %v1835_v11 = vsel %vm375_vm0, %v363_v57, 0.0  ;;  %v365_v13 = vmul.f32 %v1267_v62, %v1631_v1  ;;  %v1279_v15 = vunpack.c.l.bf16 %v1314_v7 }
  0x36   : > { %428 = vadd.xlane.f32.xlu1 %v1694_v17  ;;  %425 = vadd.xlane.f32.xlu0 %v1700_v19  ;;  %v1809_v51 = vsel %vm375_vm0, %v360_v41, 0.0  ;;  %v361_v17 = vmul.f32 %v1259_v45, %v1631_v1  ;;  %v364_v19 = vmul.f32 %v1264_v47, %v1631_v1  ;;  %v1284_v35 = vunpack.c.h.bf16 %v1315_v8 }
  0x37   : > { %v1838_v12 = vsel %vm375_vm0, %v366_v61, 0.0  ;;  %v1846_v16 = vsel %vm375_vm0, %v368_v14, 0.0  ;;  %v367_v40 = vmul.f32 %v1271_v22, %v1631_v1  ;;  %v370_v41 = vmul.f32 %v1276_v23, %v1631_v1 }
  0x38   : > { %v1825_v5 = vsel %vm375_vm0, %v361_v17, 0.0  ;;  %v1832_v10 = vsel %vm375_vm0, %v364_v19, 0.0  ;;  %v369_v42 = vmul.f32 %v1275_v27, %v1631_v1  ;;  %v371_v45 = vmul.f32 %v1279_v15, %v1631_v1 }
  0x39   : > { %v374_v47 = vmul.f32 %v1284_v35, %v1631_v1  ;;  %v1283_v48 = vunpack.c.l.bf16 %v1315_v8  ;;  %v335_v49 = vmul.f32 %v1207_v31, %v1631_v1  ;;  %v544_v55 = vsel %vm375_vm0, %v367_v40, 0.0 }
  0x3a   : > { %434 = vadd.xlane.f32.xlu1 %v1703_v20  ;;  %431 = vadd.xlane.f32.xlu0 %v1706_v21  ;;  %v1843_v20 = vsel %vm375_vm0, %v365_v13, 0.0  ;;  %v1280_v21 = vunpack.c.h.bf16 %v1314_v7  ;;  %v553_v56 = vsel %vm375_vm0, %v370_v41, 0.0  ;;  %v556_v17 = vsel %vm375_vm0, %v371_v45, 0.0 }
  0x3b   : > { %v565_v19 = vsel %vm375_vm0, %v374_v47, 0.0  ;;  %v373_v57 = vmul.f32 %v1283_v48, %v1631_v1  ;;  %v1216_v63 = vunpack.c.h.bf16 %v1298_v50  ;;  %v1215_v31 = vunpack.c.l.bf16 %v1298_v50 }
  0x3c   : > { %v372_v44 = vmul.f32 %v1280_v21, %v1631_v1  ;;  %v451_v62 = vsel %vm375_vm0, %v1722_v30, 0.0  ;;  %v448_v0 = vsel %vm375_vm0, %v335_v49, 0.0  ;;  %v338_v6 = vmul.f32 %v1212_v32, %v1631_v1 }
  0x3d   : > { %v562_v61 = vsel %vm375_vm0, %v373_v57, 0.0  ;;  %v337_v7 = vmul.f32 %v1211_v33, %v1631_v1  ;;  %v339_v14 = vmul.f32 %v1215_v31, %v1631_v1 }
  0x3e   : > { %440 = vadd.xlane.f32.xlu1 %v1711_v24  ;;  %437 = vadd.xlane.f32.xlu0 %v1714_v25  ;;  %v550_v24 = vsel %vm375_vm0, %v369_v42, 0.0  ;;  %v559_v25 = vsel %vm375_vm0, %v372_v44, 0.0  ;;  %v457_v13 = vsel %vm375_vm0, %v338_v6, 0.0 }
  0x3f   : > { %v454_v30 = vsel %vm375_vm0, %v337_v7, 0.0  ;;  %v460_v18 = vsel %vm375_vm0, %v339_v14, 0.0 }
  0x42   : > { %446 = vadd.xlane.f32.xlu1 %v1717_v26  ;;  %443 = vadd.xlane.f32.xlu0 %v1729_v38  ;;  %v1299_v26 = vld [vmem:[%s1626_s19 + $0x78] sm:$0xff]   ;;  %v340_v38 = vmul.f32 %v1216_v63, %v1631_v1 }
  0x43   : > { %v1220_v8 = vunpack.c.h.bf16 %v1299_v26  ;;  %v1219_v22 = vunpack.c.l.bf16 %v1299_v26 }
  0x44   : > { %v463_v32 = vsel %vm375_vm0, %v340_v38, 0.0 }
  0x45   : > { %v342_v33 = vmul.f32 %v1220_v8, %v1631_v1  ;;  %v341_v23 = vmul.f32 %v1219_v22, %v1631_v1  ;;  %v1915_v1 = vld [vmem:[#allocation2] ss:$0 sm:$0xff] }
  0x46   : > { %452 = vadd.xlane.f32.xlu1 %v451_v62  ;;  %449 = vadd.xlane.f32.xlu0 %v448_v0 }
  0x47   : > { %v469_v27 = vsel %vm375_vm0, %v342_v33, 0.0  ;;  %v466_v21 = vsel %vm375_vm0, %v341_v23, 0.0 }
  0x4a   : > { %458 = vadd.xlane.f32.xlu1 %v457_v13  ;;  %455 = vadd.xlane.f32.xlu0 %v454_v30 }
  0x4e   : > { %464 = vadd.xlane.f32.xlu1 %v463_v32  ;;  %461 = vadd.xlane.f32.xlu0 %v460_v18 }
  0x52   : > { %470 = vadd.xlane.f32.xlu1 %v469_v27  ;;  %467 = vadd.xlane.f32.xlu0 %v466_v21 }
  0x56   : > { %476 = vadd.xlane.f32.xlu1 %v1733_v43  ;;  %473 = vadd.xlane.f32.xlu0 %v1743_v52 }
  0x5a   : > { %482 = vadd.xlane.f32.xlu1 %v1746_v53  ;;  %479 = vadd.xlane.f32.xlu0 %v1749_v54 }
  0x5e   : > { %488 = vadd.xlane.f32.xlu1 %v1754_v58  ;;  %485 = vadd.xlane.f32.xlu0 %v1757_v59 }
  0x62   : > { %494 = vadd.xlane.f32.xlu1 %v1760_v60  ;;  %491 = vadd.xlane.f32.xlu0 %v1765_v4 }
  0x66   : > { %500 = vadd.xlane.f32.xlu1 %v1769_v9  ;;  %497 = vadd.xlane.f32.xlu0 %v1781_v28 }
  0x6a   : > { %506 = vadd.xlane.f32.xlu1 %v1784_v29  ;;  %503 = vadd.xlane.f32.xlu0 %v1787_v34 }
  0x6e   : > { %512 = vadd.xlane.f32.xlu1 %v1792_v36  ;;  %509 = vadd.xlane.f32.xlu0 %v1795_v37 }
  0x72   : > { %518 = vadd.xlane.f32.xlu1 %v1798_v39  ;;  %515 = vadd.xlane.f32.xlu0 %v1805_v46 }
  0x76   : > { %524 = vadd.xlane.f32.xlu1 %v1809_v51  ;;  %521 = vadd.xlane.f32.xlu0 %v1819_v2 }
  0x7a   : > { %530 = vadd.xlane.f32.xlu1 %v1822_v3  ;;  %527 = vadd.xlane.f32.xlu0 %v1825_v5 }
  0x7e   : > { %536 = vadd.xlane.f32.xlu1 %v1832_v10  ;;  %533 = vadd.xlane.f32.xlu0 %v1835_v11 }
  0x82   : > { %542 = vadd.xlane.f32.xlu1 %v1838_v12  ;;  %539 = vadd.xlane.f32.xlu0 %v1843_v20 }
  0x86   : > { %548 = vadd.xlane.f32.xlu1 %v1846_v16  ;;  %545 = vadd.xlane.f32.xlu0 %v544_v55 }
  0x8a   : > { %554 = vadd.xlane.f32.xlu1 %v553_v56  ;;  %551 = vadd.xlane.f32.xlu0 %v550_v24 }
  0x8e   : > { %560 = vadd.xlane.f32.xlu1 %v559_v25  ;;  %557 = vadd.xlane.f32.xlu0 %v556_v17 }
  0x92   : > { %566 = vadd.xlane.f32.xlu1 %v565_v19  ;;  %563 = vadd.xlane.f32.xlu0 %v562_v61 }
  0x9f   : > { %v384_v43 = vpop.xlane.xlu1 %383  ;;  %v378_v52 = vpop.xlane.xlu0 %377 }
  0xa0   : > { %v577_v53 = vadd.f32 %v1915_v1, %v384_v43  ;;  %v575_v54 = vadd.f32 %v1915_v1, %v378_v52 }
  0xa2   : > { %v641_v58 = vsub.f32 0.0, %v577_v53  ;;  %v639_v59 = vsub.f32 0.0, %v575_v54 }
  0xa3   : > { %v387_v60 = vpop.xlane.xlu1 %386  ;;  %v381_v4 = vpop.xlane.xlu0 %380 }
  0xa4   : > { %v707_v9 = vmul.f32 1.442695, %v641_v58  ;;  %v703_v28 = vmul.f32 1.442695, %v639_v59  ;;  %v578_v29 = vadd.f32 %v1915_v1, %v387_v60  ;;  %v576_v34 = vadd.f32 %v1915_v1, %v381_v4 }
  0xa6   : > { %1324 = vpow2.f32 %v707_v9  ;;  %v642_v36 = vsub.f32 0.0, %v578_v29  ;;  %v640_v37 = vsub.f32 0.0, %v576_v34 }
  0xa7   : > { %1326 = vpow2.f32 %v703_v28  ;;  %v393_v39 = vpop.xlane.xlu1 %392  ;;  %v390_v46 = vpop.xlane.xlu0 %389 }
  0xa8   : > { %v709_v51 = vmul.f32 1.442695, %v642_v36  ;;  %v705_v2 = vmul.f32 1.442695, %v640_v37  ;;  %v580_v3 = vadd.f32 %v1915_v1, %v393_v39  ;;  %v579_v5 = vadd.f32 %v1915_v1, %v390_v46 }
  0xaa   : > { %1328 = vpow2.f32 %v709_v51  ;;  %v644_v10 = vsub.f32 0.0, %v580_v3  ;;  %v643_v11 = vsub.f32 0.0, %v579_v5 }
  0xab   : > { %1330 = vpow2.f32 %v705_v2  ;;  %v399_v12 = vpop.xlane.xlu1 %398  ;;  %v396_v20 = vpop.xlane.xlu0 %395 }
  0xac   : > { %v713_v15 = vmul.f32 1.442695, %v644_v10  ;;  %v711_v35 = vmul.f32 1.442695, %v643_v11  ;;  %v582_v16 = vadd.f32 %v1915_v1, %v399_v12  ;;  %v581_v40 = vadd.f32 %v1915_v1, %v396_v20 }
  0xae   : > { %1332 = vpow2.f32 %v713_v15  ;;  %v646_v41 = vsub.f32 0.0, %v582_v16  ;;  %v645_v42 = vsub.f32 0.0, %v581_v40 }
  0xaf   : > { %1334 = vpow2.f32 %v711_v35  ;;  %v405_v44 = vpop.xlane.xlu1 %404  ;;  %v402_v45 = vpop.xlane.xlu0 %401 }
  0xb0   : > { %v717_v47 = vmul.f32 1.442695, %v646_v41  ;;  %v715_v48 = vmul.f32 1.442695, %v645_v42  ;;  %v584_v49 = vadd.f32 %v1915_v1, %v405_v44  ;;  %v583_v50 = vadd.f32 %v1915_v1, %v402_v45 }
  0xb2   : > { %1336 = vpow2.f32 %v717_v47  ;;  %v648_v55 = vsub.f32 0.0, %v584_v49  ;;  %v647_v56 = vsub.f32 0.0, %v583_v50 }
  0xb3   : > { %v1325_v24 = vpop.eup %1324  ;;  %1338 = vpow2.f32 %v715_v48  ;;  %v411_v25 = vpop.xlane.xlu1 %410 }
  0xb4   : > { %v408_v17 = vpop.xlane.xlu0 %407  ;;  %v1327_v19 = vpop.eup %1326  ;;  %v833_v57 = vadd.f32 1.0, %v1325_v24  ;;  %v721_v63 = vmul.f32 1.442695, %v648_v55  ;;  %v586_v31 = vadd.f32 %v1915_v1, %v411_v25  ;;  %v719_v62 = vmul.f32 1.442695, %v647_v56 }
  0xb5   : > { %v831_v61 = vadd.f32 1.0, %v1327_v19  ;;  %v585_v0 = vadd.f32 %v1915_v1, %v408_v17 }
  0xb6   : > { %1340 = vrcp.f32 %v833_v57  ;;  %v650_v6 = vsub.f32 0.0, %v586_v31 }
  0xb7   : > { %v1329_v7 = vpop.eup %1328  ;;  %1342 = vrcp.f32 %v831_v61  ;;  %v649_v26 = vsub.f32 0.0, %v585_v0  ;;  %v417_v38 = vpop.xlane.xlu1 %416 }
  0xb8   : > { %v414_v8 = vpop.xlane.xlu0 %413  ;;  %v1331_v13 = vpop.eup %1330  ;;  %v834_v30 = vadd.f32 1.0, %v1329_v7  ;;  %1344 = vpow2.f32 %v721_v63  ;;  %v725_v14 = vmul.f32 1.442695, %v650_v6  ;;  %v588_v22 = vadd.f32 %v1915_v1, %v417_v38 }
  0xb9   : > { %v832_v32 = vadd.f32 1.0, %v1331_v13  ;;  %1346 = vpow2.f32 %v719_v62  ;;  %v723_v18 = vmul.f32 1.442695, %v649_v26  ;;  %v587_v33 = vadd.f32 %v1915_v1, %v414_v8 }
  0xba   : > { %1348 = vrcp.f32 %v834_v30  ;;  %v652_v23 = vsub.f32 0.0, %v588_v22 }
  0xbb   : > { %v1333_v27 = vpop.eup %1332  ;;  %1350 = vrcp.f32 %v832_v32  ;;  %v651_v21 = vsub.f32 0.0, %v587_v33  ;;  %v423_v43 = vpop.xlane.xlu1 %422 }
  0xbc   : > { %v420_v52 = vpop.xlane.xlu0 %419  ;;  %v1335_v53 = vpop.eup %1334  ;;  %v836_v54 = vadd.f32 1.0, %v1333_v27  ;;  %1352 = vpow2.f32 %v725_v14  ;;  %v729_v58 = vmul.f32 1.442695, %v652_v23  ;;  %v590_v59 = vadd.f32 %v1915_v1, %v423_v43 }
  0xbd   : > { %v835_v60 = vadd.f32 1.0, %v1335_v53  ;;  %1354 = vpow2.f32 %v723_v18  ;;  %v727_v4 = vmul.f32 1.442695, %v651_v21  ;;  %v589_v9 = vadd.f32 %v1915_v1, %v420_v52 }
  0xbe   : > { %1356 = vrcp.f32 %v836_v54  ;;  %v654_v28 = vsub.f32 0.0, %v590_v59 }
  0xbf   : > { %v1337_v29 = vpop.eup %1336  ;;  %1358 = vrcp.f32 %v835_v60  ;;  %v653_v34 = vsub.f32 0.0, %v589_v9  ;;  %v429_v36 = vpop.xlane.xlu1 %428 }
  0xc0   : > { %v426_v37 = vpop.xlane.xlu0 %425  ;;  %v1339_v39 = vpop.eup %1338  ;;  %v838_v46 = vadd.f32 1.0, %v1337_v29  ;;  %1360 = vpow2.f32 %v729_v58  ;;  %v733_v51 = vmul.f32 1.442695, %v654_v28  ;;  %v592_v2 = vadd.f32 %v1915_v1, %v429_v36 }
  0xc1   : > { %v837_v3 = vadd.f32 1.0, %v1339_v39  ;;  %1362 = vpow2.f32 %v727_v4  ;;  %v731_v5 = vmul.f32 1.442695, %v653_v34  ;;  %v591_v10 = vadd.f32 %v1915_v1, %v426_v37 }
  0xc2   : > { %1364 = vrcp.f32 %v838_v46  ;;  %v656_v11 = vsub.f32 0.0, %v592_v2 }
  0xc3   : > { %v1341_v12 = vpop.eup %1340  ;;  %1366 = vrcp.f32 %v837_v3  ;;  %v655_v20 = vsub.f32 0.0, %v591_v10  ;;  %v435_v15 = vpop.xlane.xlu1 %434 }
  0xc4   : > { %v432_v35 = vpop.xlane.xlu0 %431  ;;  %v1343_v16 = vpop.eup %1342  ;;  %1026 = vst.msk [vmem:[%s1938_s25 + $0x10] sm:$0xff] %vm1023_vm1, %v1341_v12  ;;  %1368 = vpow2.f32 %v733_v51  ;;  %v737_v40 = vmul.f32 1.442695, %v656_v11  ;;  %v594_v41 = vadd.f32 %v1915_v1, %v435_v15 }
  0xc5   : > { %v593_v42 = vadd.f32 %v1915_v1, %v432_v35  ;;  %v1345_v44 = vpop.eup %1344  ;;  %1024 = vst.msk [vmem:[%s1938_s25] sm:$0xff] %vm1023_vm1, %v1343_v16  ;;  %1370 = vpow2.f32 %v731_v5  ;;  %v735_v45 = vmul.f32 1.442695, %v655_v20 }
  0xc6   : > { %v1347_v47 = vpop.eup %1346  ;;  %v840_v48 = vadd.f32 1.0, %v1345_v44  ;;  %1372 = vpow2.f32 %v737_v40  ;;  %v658_v49 = vsub.f32 0.0, %v594_v41 }
  0xc7   : > { %v657_v50 = vsub.f32 0.0, %v593_v42  ;;  %v1349_v55 = vpop.eup %1348  ;;  %v839_v56 = vadd.f32 1.0, %v1347_v47  ;;  %1374 = vpow2.f32 %v735_v45  ;;  %v441_v24 = vpop.xlane.xlu1 %440 }
  0xc8   : > { %v438_v25 = vpop.xlane.xlu0 %437  ;;  %v1351_v17 = vpop.eup %1350  ;;  %1027 = vst.msk [vmem:[%s1938_s25 + $0x18] sm:$0xff] %vm1023_vm1, %v1349_v55  ;;  %1376 = vrcp.f32 %v840_v48  ;;  %v741_v19 = vmul.f32 1.442695, %v658_v49  ;;  %v596_v63 = vadd.f32 %v1915_v1, %v441_v24 }
  0xc9   : > { %v739_v57 = vmul.f32 1.442695, %v657_v50  ;;  %v1353_v31 = vpop.eup %1352  ;;  %1025 = vst.msk [vmem:[%s1938_s25 + $0x8] sm:$0xff] %vm1023_vm1, %v1351_v17  ;;  %1378 = vrcp.f32 %v839_v56  ;;  %v595_v61 = vadd.f32 %v1915_v1, %v438_v25 }
  0xca   : > { %v1355_v62 = vpop.eup %1354  ;;  %v842_v0 = vadd.f32 1.0, %v1353_v31  ;;  %1380 = vpow2.f32 %v741_v19  ;;  %v660_v6 = vsub.f32 0.0, %v596_v63 }
  0xcb   : > { %v1357_v7 = vpop.eup %1356  ;;  %v841_v26 = vadd.f32 1.0, %v1355_v62  ;;  %1382 = vpow2.f32 %v739_v57  ;;  %v659_v38 = vsub.f32 0.0, %v595_v61  ;;  %v447_v8 = vpop.xlane.xlu1 %446 }
  0xcc   : > { %v444_v13 = vpop.xlane.xlu0 %443  ;;  %v1359_v30 = vpop.eup %1358  ;;  %1029 = vst.msk [vmem:[%s1938_s25 + $0x28] sm:$0xff] %vm1023_vm1, %v1357_v7  ;;  %1384 = vrcp.f32 %v842_v0  ;;  %v745_v14 = vmul.f32 1.442695, %v660_v6  ;;  %v598_v22 = vadd.f32 %v1915_v1, %v447_v8 }
  0xcd   : > { %v597_v32 = vadd.f32 %v1915_v1, %v444_v13  ;;  %v1361_v18 = vpop.eup %1360  ;;  %1028 = vst.msk [vmem:[%s1938_s25 + $0x20] sm:$0xff] %vm1023_vm1, %v1359_v30  ;;  %1386 = vrcp.f32 %v841_v26  ;;  %v743_v33 = vmul.f32 1.442695, %v659_v38 }
  0xce   : > { %v1363_v23 = vpop.eup %1362  ;;  %v844_v27 = vadd.f32 1.0, %v1361_v18  ;;  %1388 = vpow2.f32 %v745_v14  ;;  %v662_v21 = vsub.f32 0.0, %v598_v22 }
  0xcf   : > { %v661_v43 = vsub.f32 0.0, %v597_v32  ;;  %v1365_v52 = vpop.eup %1364  ;;  %v843_v53 = vadd.f32 1.0, %v1363_v23  ;;  %1390 = vpow2.f32 %v743_v33  ;;  %v453_v54 = vpop.xlane.xlu1 %452 }
  0xd0   : > { %v450_v58 = vpop.xlane.xlu0 %449  ;;  %v1367_v59 = vpop.eup %1366  ;;  %1031 = vst.msk [vmem:[%s1938_s25 + $0x38] sm:$0xff] %vm1023_vm1, %v1365_v52  ;;  %1392 = vrcp.f32 %v844_v27  ;;  %v749_v60 = vmul.f32 1.442695, %v662_v21  ;;  %v600_v9 = vadd.f32 %v1915_v1, %v453_v54 }
  0xd1   : > { %v747_v4 = vmul.f32 1.442695, %v661_v43  ;;  %v1369_v28 = vpop.eup %1368  ;;  %1030 = vst.msk [vmem:[%s1938_s25 + $0x30] sm:$0xff] %vm1023_vm1, %v1367_v59  ;;  %1394 = vrcp.f32 %v843_v53  ;;  %v599_v29 = vadd.f32 %v1915_v1, %v450_v58 }
  0xd2   : > { %v1371_v34 = vpop.eup %1370  ;;  %v846_v36 = vadd.f32 1.0, %v1369_v28  ;;  %1396 = vpow2.f32 %v749_v60  ;;  %v664_v37 = vsub.f32 0.0, %v600_v9 }
  0xd3   : > { %v1373_v39 = vpop.eup %1372  ;;  %v845_v46 = vadd.f32 1.0, %v1371_v34  ;;  %1398 = vpow2.f32 %v747_v4  ;;  %v663_v51 = vsub.f32 0.0, %v599_v29  ;;  %v459_v2 = vpop.xlane.xlu1 %458 }
  0xd4   : > { %v456_v3 = vpop.xlane.xlu0 %455  ;;  %v1375_v5 = vpop.eup %1374  ;;  %1400 = vrcp.f32 %v846_v36  ;;  %v848_v10 = vadd.f32 1.0, %v1373_v39  ;;  %v753_v11 = vmul.f32 1.442695, %v664_v37  ;;  %v602_v12 = vadd.f32 %v1915_v1, %v459_v2 }
  0xd5   : > { %v1377_v20 = vpop.eup %1376  ;;  %1402 = vrcp.f32 %v845_v46  ;;  %v847_v15 = vadd.f32 1.0, %v1375_v5  ;;  %v751_v35 = vmul.f32 1.442695, %v663_v51  ;;  %v601_v16 = vadd.f32 %v1915_v1, %v456_v3 }
  0xd6   : > { %v1379_v40 = vpop.eup %1378  ;;  %1033 = vst.msk [vmem:[%s1938_s25 + $0x48] sm:$0xff] %vm1023_vm1, %v1377_v20  ;;  %1404 = vrcp.f32 %v848_v10  ;;  %v666_v41 = vsub.f32 0.0, %v602_v12 }
  0xd7   : > { %v1381_v42 = vpop.eup %1380  ;;  %1032 = vst.msk [vmem:[%s1938_s25 + $0x40] sm:$0xff] %vm1023_vm1, %v1379_v40  ;;  %1406 = vrcp.f32 %v847_v15  ;;  %v665_v44 = vsub.f32 0.0, %v601_v16  ;;  %v465_v45 = vpop.xlane.xlu1 %464 }
  0xd8   : > { %v462_v47 = vpop.xlane.xlu0 %461  ;;  %v1383_v48 = vpop.eup %1382  ;;  %v850_v49 = vadd.f32 1.0, %v1381_v42  ;;  %1408 = vpow2.f32 %v753_v11  ;;  %v757_v50 = vmul.f32 1.442695, %v666_v41  ;;  %v604_v55 = vadd.f32 %v1915_v1, %v465_v45 }
  0xd9   : > { %v1385_v56 = vpop.eup %1384  ;;  %v849_v24 = vadd.f32 1.0, %v1383_v48  ;;  %1410 = vpow2.f32 %v751_v35  ;;  %v755_v25 = vmul.f32 1.442695, %v665_v44  ;;  %v603_v17 = vadd.f32 %v1915_v1, %v462_v47 }
  0xda   : > { %v1387_v19 = vpop.eup %1386  ;;  %1035 = vst.msk [vmem:[%s1938_s25 + $0x58] sm:$0xff] %vm1023_vm1, %v1385_v56  ;;  %1412 = vrcp.f32 %v850_v49  ;;  %v668_v57 = vsub.f32 0.0, %v604_v55 }
  0xdb   : > { %v1389_v63 = vpop.eup %1388  ;;  %1034 = vst.msk [vmem:[%s1938_s25 + $0x50] sm:$0xff] %vm1023_vm1, %v1387_v19  ;;  %1414 = vrcp.f32 %v849_v24  ;;  %v667_v31 = vsub.f32 0.0, %v603_v17  ;;  %v471_v61 = vpop.xlane.xlu1 %470 }
  0xdc   : > { %v468_v62 = vpop.xlane.xlu0 %467  ;;  %v1391_v0 = vpop.eup %1390  ;;  %v852_v6 = vadd.f32 1.0, %v1389_v63  ;;  %1416 = vpow2.f32 %v757_v50  ;;  %v761_v7 = vmul.f32 1.442695, %v668_v57  ;;  %v606_v26 = vadd.f32 %v1915_v1, %v471_v61 }
  0xdd   : > { %v1393_v38 = vpop.eup %1392  ;;  %v851_v8 = vadd.f32 1.0, %v1391_v0  ;;  %1418 = vpow2.f32 %v755_v25  ;;  %v759_v13 = vmul.f32 1.442695, %v667_v31  ;;  %v605_v30 = vadd.f32 %v1915_v1, %v468_v62 }
  0xde   : > { %v1395_v14 = vpop.eup %1394  ;;  %1037 = vst.msk [vmem:[%s1938_s25 + $0x68] sm:$0xff] %vm1023_vm1, %v1393_v38  ;;  %1420 = vrcp.f32 %v852_v6  ;;  %v670_v22 = vsub.f32 0.0, %v606_v26 }
  0xdf   : > { %v1397_v32 = vpop.eup %1396  ;;  %1036 = vst.msk [vmem:[%s1938_s25 + $0x60] sm:$0xff] %vm1023_vm1, %v1395_v14  ;;  %1422 = vrcp.f32 %v851_v8  ;;  %v669_v18 = vsub.f32 0.0, %v605_v30  ;;  %v477_v33 = vpop.xlane.xlu1 %476 }
  0xe0   : > { %v474_v23 = vpop.xlane.xlu0 %473  ;;  %v1399_v27 = vpop.eup %1398  ;;  %v854_v21 = vadd.f32 1.0, %v1397_v32  ;;  %1424 = vpow2.f32 %v761_v7  ;;  %v765_v43 = vmul.f32 1.442695, %v670_v22  ;;  %v608_v52 = vadd.f32 %v1915_v1, %v477_v33 }
  0xe1   : > { %v1401_v53 = vpop.eup %1400  ;;  %v853_v54 = vadd.f32 1.0, %v1399_v27  ;;  %1426 = vpow2.f32 %v759_v13  ;;  %v763_v58 = vmul.f32 1.442695, %v669_v18  ;;  %v607_v59 = vadd.f32 %v1915_v1, %v474_v23 }
  0xe2   : > { %v1403_v60 = vpop.eup %1402  ;;  %1039 = vst.msk [vmem:[%s1938_s25 + $0x78] sm:$0xff] %vm1023_vm1, %v1401_v53  ;;  %1428 = vrcp.f32 %v854_v21  ;;  %v672_v4 = vsub.f32 0.0, %v608_v52 }
  0xe3   : > { %v1405_v9 = vpop.eup %1404  ;;  %1038 = vst.msk [vmem:[%s1938_s25 + $0x70] sm:$0xff] %vm1023_vm1, %v1403_v60  ;;  %1430 = vrcp.f32 %v853_v54  ;;  %v671_v28 = vsub.f32 0.0, %v607_v59  ;;  %v483_v29 = vpop.xlane.xlu1 %482 }
  0xe4   : > { %v480_v34 = vpop.xlane.xlu0 %479  ;;  %v1407_v36 = vpop.eup %1406  ;;  %1041 = vst.msk [vmem:[%s1938_s25 + $0x88] sm:$0xff] %vm1023_vm1, %v1405_v9  ;;  %1432 = vpow2.f32 %v765_v43  ;;  %v769_v37 = vmul.f32 1.442695, %v672_v4  ;;  %v610_v39 = vadd.f32 %v1915_v1, %v483_v29 }
  0xe5   : > { %v609_v46 = vadd.f32 %v1915_v1, %v480_v34  ;;  %v1409_v51 = vpop.eup %1408  ;;  %1040 = vst.msk [vmem:[%s1938_s25 + $0x80] sm:$0xff] %vm1023_vm1, %v1407_v36  ;;  %1434 = vpow2.f32 %v763_v58  ;;  %v767_v2 = vmul.f32 1.442695, %v671_v28 }
  0xe6   : > { %v1411_v3 = vpop.eup %1410  ;;  %v856_v5 = vadd.f32 1.0, %v1409_v51  ;;  %1436 = vpow2.f32 %v769_v37  ;;  %v674_v10 = vsub.f32 0.0, %v610_v39 }
  0xe7   : > { %v673_v11 = vsub.f32 0.0, %v609_v46  ;;  %v1413_v12 = vpop.eup %1412  ;;  %v855_v20 = vadd.f32 1.0, %v1411_v3  ;;  %1438 = vpow2.f32 %v767_v2  ;;  %v489_v15 = vpop.xlane.xlu1 %488 }
  0xe8   : > { %v486_v35 = vpop.xlane.xlu0 %485  ;;  %v1415_v16 = vpop.eup %1414  ;;  %1043 = vst.msk [vmem:[%s1938_s25 + $0x98] sm:$0xff] %vm1023_vm1, %v1413_v12  ;;  %1440 = vrcp.f32 %v856_v5  ;;  %v773_v40 = vmul.f32 1.442695, %v674_v10  ;;  %v612_v42 = vadd.f32 %v1915_v1, %v489_v15 }
  0xe9   : > { %v771_v41 = vmul.f32 1.442695, %v673_v11  ;;  %v1417_v44 = vpop.eup %1416  ;;  %1042 = vst.msk [vmem:[%s1938_s25 + $0x90] sm:$0xff] %vm1023_vm1, %v1415_v16  ;;  %1442 = vrcp.f32 %v855_v20  ;;  %v611_v45 = vadd.f32 %v1915_v1, %v486_v35 }
  0xea   : > { %v1419_v47 = vpop.eup %1418  ;;  %v858_v48 = vadd.f32 1.0, %v1417_v44  ;;  %1444 = vpow2.f32 %v773_v40  ;;  %v676_v49 = vsub.f32 0.0, %v612_v42 }
  0xeb   : > { %v1421_v50 = vpop.eup %1420  ;;  %v857_v55 = vadd.f32 1.0, %v1419_v47  ;;  %1446 = vpow2.f32 %v771_v41  ;;  %v675_v56 = vsub.f32 0.0, %v611_v45  ;;  %v495_v24 = vpop.xlane.xlu1 %494 }
  0xec   : > { %v492_v25 = vpop.xlane.xlu0 %491  ;;  %v1423_v17 = vpop.eup %1422  ;;  %1045 = vst.msk [vmem:[%s1938_s25 + $0xa8] sm:$0xff] %vm1023_vm1, %v1421_v50  ;;  %1448 = vrcp.f32 %v858_v48  ;;  %v777_v19 = vmul.f32 1.442695, %v676_v49  ;;  %v614_v57 = vadd.f32 %v1915_v1, %v495_v24 }
  0xed   : > { %v613_v63 = vadd.f32 %v1915_v1, %v492_v25  ;;  %v1425_v31 = vpop.eup %1424  ;;  %1044 = vst.msk [vmem:[%s1938_s25 + $0xa0] sm:$0xff] %vm1023_vm1, %v1423_v17  ;;  %1450 = vrcp.f32 %v857_v55  ;;  %v775_v61 = vmul.f32 1.442695, %v675_v56 }
  0xee   : > { %v1427_v62 = vpop.eup %1426  ;;  %v860_v0 = vadd.f32 1.0, %v1425_v31  ;;  %1452 = vpow2.f32 %v777_v19  ;;  %v678_v6 = vsub.f32 0.0, %v614_v57 }
  0xef   : > { %v677_v7 = vsub.f32 0.0, %v613_v63  ;;  %v1429_v26 = vpop.eup %1428  ;;  %v859_v38 = vadd.f32 1.0, %v1427_v62  ;;  %1454 = vpow2.f32 %v775_v61  ;;  %v501_v8 = vpop.xlane.xlu1 %500 }
  0xf0   : > { %v498_v13 = vpop.xlane.xlu0 %497  ;;  %v1431_v30 = vpop.eup %1430  ;;  %1047 = vst.msk [vmem:[%s1938_s25 + $0xb8] sm:$0xff] %vm1023_vm1, %v1429_v26  ;;  %1456 = vrcp.f32 %v860_v0  ;;  %v781_v14 = vmul.f32 1.442695, %v678_v6  ;;  %v616_v32 = vadd.f32 %v1915_v1, %v501_v8 }
  0xf1   : > { %v779_v22 = vmul.f32 1.442695, %v677_v7  ;;  %v1433_v18 = vpop.eup %1432  ;;  %1046 = vst.msk [vmem:[%s1938_s25 + $0xb0] sm:$0xff] %vm1023_vm1, %v1431_v30  ;;  %1458 = vrcp.f32 %v859_v38  ;;  %v615_v33 = vadd.f32 %v1915_v1, %v498_v13 }
  0xf2   : > { %v1435_v23 = vpop.eup %1434  ;;  %v862_v27 = vadd.f32 1.0, %v1433_v18  ;;  %1460 = vpow2.f32 %v781_v14  ;;  %v680_v21 = vsub.f32 0.0, %v616_v32 }
  0xf3   : > { %v1437_v43 = vpop.eup %1436  ;;  %v861_v52 = vadd.f32 1.0, %v1435_v23  ;;  %1462 = vpow2.f32 %v779_v22  ;;  %v679_v53 = vsub.f32 0.0, %v615_v33  ;;  %v507_v54 = vpop.xlane.xlu1 %506 }
  0xf4   : > { %v504_v58 = vpop.xlane.xlu0 %503  ;;  %v1439_v59 = vpop.eup %1438  ;;  %1464 = vrcp.f32 %v862_v27  ;;  %v864_v60 = vadd.f32 1.0, %v1437_v43  ;;  %v785_v4 = vmul.f32 1.442695, %v680_v21  ;;  %v618_v9 = vadd.f32 %v1915_v1, %v507_v54 }
  0xf5   : > { %v1441_v28 = vpop.eup %1440  ;;  %1466 = vrcp.f32 %v861_v52  ;;  %v863_v29 = vadd.f32 1.0, %v1439_v59  ;;  %v783_v34 = vmul.f32 1.442695, %v679_v53  ;;  %v617_v36 = vadd.f32 %v1915_v1, %v504_v58 }
  0xf6   : > { %v1443_v37 = vpop.eup %1442  ;;  %1049 = vst.msk [vmem:[%s1938_s25 + $0xc8] sm:$0xff] %vm1023_vm1, %v1441_v28  ;;  %1468 = vrcp.f32 %v864_v60  ;;  %v682_v39 = vsub.f32 0.0, %v618_v9 }
  0xf7   : > { %v1445_v46 = vpop.eup %1444  ;;  %1048 = vst.msk [vmem:[%s1938_s25 + $0xc0] sm:$0xff] %vm1023_vm1, %v1443_v37  ;;  %1470 = vrcp.f32 %v863_v29  ;;  %v681_v51 = vsub.f32 0.0, %v617_v36  ;;  %v513_v2 = vpop.xlane.xlu1 %512 }
  0xf8   : > { %v510_v3 = vpop.xlane.xlu0 %509  ;;  %v1447_v5 = vpop.eup %1446  ;;  %v866_v10 = vadd.f32 1.0, %v1445_v46  ;;  %1472 = vpow2.f32 %v785_v4  ;;  %v789_v11 = vmul.f32 1.442695, %v682_v39  ;;  %v620_v12 = vadd.f32 %v1915_v1, %v513_v2 }
  0xf9   : > { %v1449_v20 = vpop.eup %1448  ;;  %v865_v15 = vadd.f32 1.0, %v1447_v5  ;;  %1474 = vpow2.f32 %v783_v34  ;;  %v787_v35 = vmul.f32 1.442695, %v681_v51  ;;  %v619_v16 = vadd.f32 %v1915_v1, %v510_v3 }
  0xfa   : > { %v1451_v40 = vpop.eup %1450  ;;  %1051 = vst.msk [vmem:[%s1938_s25 + $0xd8] sm:$0xff] %vm1023_vm1, %v1449_v20  ;;  %1476 = vrcp.f32 %v866_v10  ;;  %v684_v41 = vsub.f32 0.0, %v620_v12 }
  0xfb   : > { %v1453_v42 = vpop.eup %1452  ;;  %1050 = vst.msk [vmem:[%s1938_s25 + $0xd0] sm:$0xff] %vm1023_vm1, %v1451_v40  ;;  %1478 = vrcp.f32 %v865_v15  ;;  %v683_v44 = vsub.f32 0.0, %v619_v16  ;;  %v519_v45 = vpop.xlane.xlu1 %518 }
  0xfc   : > { %v516_v47 = vpop.xlane.xlu0 %515  ;;  %v1455_v48 = vpop.eup %1454  ;;  %v868_v49 = vadd.f32 1.0, %v1453_v42  ;;  %1480 = vpow2.f32 %v789_v11  ;;  %v793_v50 = vmul.f32 1.442695, %v684_v41  ;;  %v622_v55 = vadd.f32 %v1915_v1, %v519_v45 }
  0xfd   : > { %v1457_v56 = vpop.eup %1456  ;;  %v867_v24 = vadd.f32 1.0, %v1455_v48  ;;  %1482 = vpow2.f32 %v787_v35  ;;  %v791_v25 = vmul.f32 1.442695, %v683_v44  ;;  %v621_v17 = vadd.f32 %v1915_v1, %v516_v47 }
  0xfe   : > { %v1459_v19 = vpop.eup %1458  ;;  %1053 = vst.msk [vmem:[%s1938_s25 + $0xe8] sm:$0xff] %vm1023_vm1, %v1457_v56  ;;  %1484 = vrcp.f32 %v868_v49  ;;  %v686_v57 = vsub.f32 0.0, %v622_v55 }
  0xff   : > { %v1461_v63 = vpop.eup %1460  ;;  %1052 = vst.msk [vmem:[%s1938_s25 + $0xe0] sm:$0xff] %vm1023_vm1, %v1459_v19  ;;  %1486 = vrcp.f32 %v867_v24  ;;  %v685_v31 = vsub.f32 0.0, %v621_v17  ;;  %v525_v61 = vpop.xlane.xlu1 %524 }
 0x100   : > { %v522_v62 = vpop.xlane.xlu0 %521  ;;  %v1463_v0 = vpop.eup %1462  ;;  %v870_v6 = vadd.f32 1.0, %v1461_v63  ;;  %1488 = vpow2.f32 %v793_v50  ;;  %v797_v7 = vmul.f32 1.442695, %v686_v57  ;;  %v624_v26 = vadd.f32 %v1915_v1, %v525_v61 }
 0x101   : > { %v1465_v38 = vpop.eup %1464  ;;  %v869_v8 = vadd.f32 1.0, %v1463_v0  ;;  %1490 = vpow2.f32 %v791_v25  ;;  %v795_v13 = vmul.f32 1.442695, %v685_v31  ;;  %v623_v30 = vadd.f32 %v1915_v1, %v522_v62 }
 0x102   : > { %v1467_v14 = vpop.eup %1466  ;;  %1055 = vst.msk [vmem:[%s1938_s25 + $0xf8] sm:$0xff] %vm1023_vm1, %v1465_v38  ;;  %1492 = vrcp.f32 %v870_v6  ;;  %v688_v22 = vsub.f32 0.0, %v624_v26 }
 0x103   : > { %v1469_v32 = vpop.eup %1468  ;;  %1054 = vst.msk [vmem:[%s1938_s25 + $0xf0] sm:$0xff] %vm1023_vm1, %v1467_v14  ;;  %1494 = vrcp.f32 %v869_v8  ;;  %v687_v18 = vsub.f32 0.0, %v623_v30  ;;  %v531_v33 = vpop.xlane.xlu1 %530 }
 0x104   : > { %v528_v23 = vpop.xlane.xlu0 %527  ;;  %v1471_v27 = vpop.eup %1470  ;;  %1057 = vst.msk [vmem:[%s1938_s25 + $0x108] sm:$0xff] %vm1023_vm1, %v1469_v32  ;;  %1496 = vpow2.f32 %v797_v7  ;;  %v801_v21 = vmul.f32 1.442695, %v688_v22  ;;  %v626_v43 = vadd.f32 %v1915_v1, %v531_v33  ;;  %v1580_v32 = vld [vmem:[#allocation2] ss:$0 sm:$0xff] }
 0x105   : > { %v625_v52 = vadd.f32 %v1915_v1, %v528_v23  ;;  %v1473_v53 = vpop.eup %1472  ;;  %1056 = vst.msk [vmem:[%s1938_s25 + $0x100] sm:$0xff] %vm1023_vm1, %v1471_v27  ;;  %1498 = vpow2.f32 %v795_v13  ;;  %v799_v54 = vmul.f32 1.442695, %v687_v18 }
 0x106   : > { %v1475_v58 = vpop.eup %1474  ;;  %v872_v59 = vadd.f32 1.0, %v1473_v53  ;;  %1500 = vpow2.f32 %v801_v21  ;;  %v690_v60 = vsub.f32 0.0, %v626_v43 }
 0x107   : > { %v689_v4 = vsub.f32 0.0, %v625_v52  ;;  %v1477_v9 = vpop.eup %1476  ;;  %v871_v28 = vadd.f32 1.0, %v1475_v58  ;;  %1502 = vpow2.f32 %v799_v54  ;;  %v537_v29 = vpop.xlane.xlu1 %536 }
 0x108   : > { %v534_v34 = vpop.xlane.xlu0 %533  ;;  %v1479_v36 = vpop.eup %1478  ;;  %1059 = vst.msk [vmem:[%s1938_s25 + $0x118] sm:$0xff] %vm1023_vm1, %v1477_v9  ;;  %1504 = vrcp.f32 %v872_v59  ;;  %v805_v37 = vmul.f32 1.442695, %v690_v60  ;;  %v628_v46 = vadd.f32 %v1915_v1, %v537_v29 }
 0x109   : > { %v803_v39 = vmul.f32 1.442695, %v689_v4  ;;  %v1481_v51 = vpop.eup %1480  ;;  %1058 = vst.msk [vmem:[%s1938_s25 + $0x110] sm:$0xff] %vm1023_vm1, %v1479_v36  ;;  %1506 = vrcp.f32 %v871_v28  ;;  %v627_v2 = vadd.f32 %v1915_v1, %v534_v34 }
 0x10a   : > { %v1483_v3 = vpop.eup %1482  ;;  %v874_v5 = vadd.f32 1.0, %v1481_v51  ;;  %1508 = vpow2.f32 %v805_v37  ;;  %v692_v10 = vsub.f32 0.0, %v628_v46 }
 0x10b   : > { %v1485_v11 = vpop.eup %1484  ;;  %v873_v12 = vadd.f32 1.0, %v1483_v3  ;;  %1510 = vpow2.f32 %v803_v39  ;;  %v691_v20 = vsub.f32 0.0, %v627_v2  ;;  %v543_v15 = vpop.xlane.xlu1 %542 }
 0x10c   : > { %v540_v35 = vpop.xlane.xlu0 %539  ;;  %v1487_v16 = vpop.eup %1486  ;;  %1061 = vst.msk [vmem:[%s1938_s25 + $0x128] sm:$0xff] %vm1023_vm1, %v1485_v11  ;;  %1512 = vrcp.f32 %v874_v5  ;;  %v809_v40 = vmul.f32 1.442695, %v692_v10  ;;  %v630_v41 = vadd.f32 %v1915_v1, %v543_v15 }
 0x10d   : > { %v629_v42 = vadd.f32 %v1915_v1, %v540_v35  ;;  %v1489_v44 = vpop.eup %1488  ;;  %1060 = vst.msk [vmem:[%s1938_s25 + $0x120] sm:$0xff] %vm1023_vm1, %v1487_v16  ;;  %1514 = vrcp.f32 %v873_v12  ;;  %v807_v45 = vmul.f32 1.442695, %v691_v20 }
 0x10e   : > { %v1491_v47 = vpop.eup %1490  ;;  %v876_v48 = vadd.f32 1.0, %v1489_v44  ;;  %1516 = vpow2.f32 %v809_v40  ;;  %v694_v49 = vsub.f32 0.0, %v630_v41 }
 0x10f   : > { %v693_v50 = vsub.f32 0.0, %v629_v42  ;;  %v1493_v55 = vpop.eup %1492  ;;  %v875_v56 = vadd.f32 1.0, %v1491_v47  ;;  %1518 = vpow2.f32 %v807_v45  ;;  %v549_v24 = vpop.xlane.xlu1 %548 }
 0x110   : > { %v546_v25 = vpop.xlane.xlu0 %545  ;;  %v1495_v17 = vpop.eup %1494  ;;  %1063 = vst.msk [vmem:[%s1938_s25 + $0x138] sm:$0xff] %vm1023_vm1, %v1493_v55  ;;  %1520 = vrcp.f32 %v876_v48  ;;  %v813_v19 = vmul.f32 1.442695, %v694_v49  ;;  %v632_v63 = vadd.f32 %v1915_v1, %v549_v24 }
 0x111   : > { %v811_v57 = vmul.f32 1.442695, %v693_v50  ;;  %v1497_v31 = vpop.eup %1496  ;;  %1062 = vst.msk [vmem:[%s1938_s25 + $0x130] sm:$0xff] %vm1023_vm1, %v1495_v17  ;;  %1522 = vrcp.f32 %v875_v56  ;;  %v631_v61 = vadd.f32 %v1915_v1, %v546_v25 }
 0x112   : > { %v1499_v62 = vpop.eup %1498  ;;  %v878_v0 = vadd.f32 1.0, %v1497_v31  ;;  %1524 = vpow2.f32 %v813_v19  ;;  %v696_v6 = vsub.f32 0.0, %v632_v63 }
 0x113   : > { %v1501_v7 = vpop.eup %1500  ;;  %v877_v26 = vadd.f32 1.0, %v1499_v62  ;;  %1526 = vpow2.f32 %v811_v57  ;;  %v695_v38 = vsub.f32 0.0, %v631_v61  ;;  %v555_v8 = vpop.xlane.xlu1 %554 }
 0x114   : > { %v552_v13 = vpop.xlane.xlu0 %551  ;;  %v1503_v30 = vpop.eup %1502  ;;  %1528 = vrcp.f32 %v878_v0  ;;  %v880_v14 = vadd.f32 1.0, %v1501_v7  ;;  %v817_v22 = vmul.f32 1.442695, %v696_v6  ;;  %v634_v18 = vadd.f32 %v1580_v32, %v555_v8 }
 0x115   : > { %v1505_v33 = vpop.eup %1504  ;;  %1530 = vrcp.f32 %v877_v26  ;;  %v879_v1 = vadd.f32 1.0, %v1503_v30  ;;  %v815_v23 = vmul.f32 1.442695, %v695_v38  ;;  %v633_v27 = vadd.f32 %v1580_v32, %v552_v13 }
 0x116   : > { %v1507_v21 = vpop.eup %1506  ;;  %1065 = vst.msk [vmem:[%s1938_s25 + $0x148] sm:$0xff] %vm1023_vm1, %v1505_v33  ;;  %1532 = vrcp.f32 %v880_v14  ;;  %v698_v43 = vsub.f32 0.0, %v634_v18 }
 0x117   : > { %v1509_v52 = vpop.eup %1508  ;;  %1064 = vst.msk [vmem:[%s1938_s25 + $0x140] sm:$0xff] %vm1023_vm1, %v1507_v21  ;;  %1534 = vrcp.f32 %v879_v1  ;;  %v697_v53 = vsub.f32 0.0, %v633_v27  ;;  %v561_v54 = vpop.xlane.xlu1 %560 }
 0x118   : > { %v558_v58 = vpop.xlane.xlu0 %557  ;;  %v1511_v59 = vpop.eup %1510  ;;  %v882_v60 = vadd.f32 1.0, %v1509_v52  ;;  %1536 = vpow2.f32 %v817_v22  ;;  %v821_v4 = vmul.f32 1.442695, %v698_v43  ;;  %v636_v9 = vadd.f32 %v1580_v32, %v561_v54 }
 0x119   : > { %v1513_v28 = vpop.eup %1512  ;;  %v881_v29 = vadd.f32 1.0, %v1511_v59  ;;  %1538 = vpow2.f32 %v815_v23  ;;  %v819_v34 = vmul.f32 1.442695, %v697_v53  ;;  %v635_v36 = vadd.f32 %v1580_v32, %v558_v58 }
 0x11a   : > { %v1515_v37 = vpop.eup %1514  ;;  %1067 = vst.msk [vmem:[%s1938_s25 + $0x158] sm:$0xff] %vm1023_vm1, %v1513_v28  ;;  %1540 = vrcp.f32 %v882_v60  ;;  %v700_v39 = vsub.f32 0.0, %v636_v9 }
 0x11b   : > { %v1517_v46 = vpop.eup %1516  ;;  %1066 = vst.msk [vmem:[%s1938_s25 + $0x150] sm:$0xff] %vm1023_vm1, %v1515_v37  ;;  %1542 = vrcp.f32 %v881_v29  ;;  %v699_v51 = vsub.f32 0.0, %v635_v36  ;;  %v567_v2 = vpop.xlane.xlu1 %566 }
 0x11c   : > { %v564_v3 = vpop.xlane.xlu0 %563  ;;  %v1519_v5 = vpop.eup %1518  ;;  %v884_v10 = vadd.f32 1.0, %v1517_v46  ;;  %1544 = vpow2.f32 %v821_v4  ;;  %v825_v11 = vmul.f32 1.442695, %v700_v39  ;;  %v638_v12 = vadd.f32 %v1580_v32, %v567_v2 }
 0x11d   : > { %v1521_v20 = vpop.eup %1520  ;;  %v883_v15 = vadd.f32 1.0, %v1519_v5  ;;  %1546 = vpow2.f32 %v819_v34  ;;  %v823_v35 = vmul.f32 1.442695, %v699_v51  ;;  %v637_v16 = vadd.f32 %v1580_v32, %v564_v3 }
 0x11e   : > { %v1523_v40 = vpop.eup %1522  ;;  %1069 = vst.msk [vmem:[%s1938_s25 + $0x168] sm:$0xff] %vm1023_vm1, %v1521_v20  ;;  %1548 = vrcp.f32 %v884_v10  ;;  %v702_v41 = vsub.f32 0.0, %v638_v12 }
 0x11f   : > { %v1525_v42 = vpop.eup %1524  ;;  %1068 = vst.msk [vmem:[%s1938_s25 + $0x160] sm:$0xff] %vm1023_vm1, %v1523_v40  ;;  %1550 = vrcp.f32 %v883_v15  ;;  %v701_v44 = vsub.f32 0.0, %v637_v16 }
 0x120   : > { %v1527_v45 = vpop.eup %1526  ;;  %v886_v47 = vadd.f32 1.0, %v1525_v42  ;;  %1552 = vpow2.f32 %v825_v11  ;;  %v829_v48 = vmul.f32 1.442695, %v702_v41 }
 0x121   : > { %v1529_v49 = vpop.eup %1528  ;;  %v885_v50 = vadd.f32 1.0, %v1527_v45  ;;  %1554 = vpow2.f32 %v823_v35  ;;  %v827_v55 = vmul.f32 1.442695, %v701_v44 }
 0x122   : > { %v1531_v56 = vpop.eup %1530  ;;  %1071 = vst.msk [vmem:[%s1938_s25 + $0x178] sm:$0xff] %vm1023_vm1, %v1529_v49  ;;  %1556 = vrcp.f32 %v886_v47 }
 0x123   : > { %v1533_v24 = vpop.eup %1532  ;;  %1070 = vst.msk [vmem:[%s1938_s25 + $0x170] sm:$0xff] %vm1023_vm1, %v1531_v56  ;;  %1558 = vrcp.f32 %v885_v50 }
 0x124   : > { %v1535_v25 = vpop.eup %1534  ;;  %1073 = vst.msk [vmem:[%s1938_s25 + $0x188] sm:$0xff] %vm1023_vm1, %v1533_v24  ;;  %1560 = vpow2.f32 %v829_v48 }
 0x125   : > { %v1537_v17 = vpop.eup %1536  ;;  %1072 = vst.msk [vmem:[%s1938_s25 + $0x180] sm:$0xff] %vm1023_vm1, %v1535_v25  ;;  %1562 = vpow2.f32 %v827_v55 }
 0x126   : > { %v1539_v19 = vpop.eup %1538  ;;  %v888_v57 = vadd.f32 1.0, %v1537_v17 }
 0x127   : > { %v1541_v63 = vpop.eup %1540  ;;  %v887_v31 = vadd.f32 1.0, %v1539_v19 }
 0x128   : > { %v1543_v61 = vpop.eup %1542  ;;  %1075 = vst.msk [vmem:[%s1938_s25 + $0x198] sm:$0xff] %vm1023_vm1, %v1541_v63  ;;  %1564 = vrcp.f32 %v888_v57 }
 0x129   : > { %v1545_v62 = vpop.eup %1544  ;;  %1074 = vst.msk [vmem:[%s1938_s25 + $0x190] sm:$0xff] %vm1023_vm1, %v1543_v61  ;;  %1566 = vrcp.f32 %v887_v31 }
 0x12a   : > { %v1547_v0 = vpop.eup %1546  ;;  %v890_v6 = vadd.f32 1.0, %v1545_v62 }
 0x12b   : > { %v1549_v7 = vpop.eup %1548  ;;  %v889_v26 = vadd.f32 1.0, %v1547_v0 }
 0x12c   : > { %v1551_v38 = vpop.eup %1550  ;;  %1077 = vst.msk [vmem:[%s1938_s25 + $0x1a8] sm:$0xff] %vm1023_vm1, %v1549_v7  ;;  %1568 = vrcp.f32 %v890_v6 }
 0x12d   : > { %v1553_v8 = vpop.eup %1552  ;;  %1076 = vst.msk [vmem:[%s1938_s25 + $0x1a0] sm:$0xff] %vm1023_vm1, %v1551_v38  ;;  %1570 = vrcp.f32 %v889_v26 }
 0x12e   : > { %v1555_v13 = vpop.eup %1554  ;;  %v892_v30 = vadd.f32 1.0, %v1553_v8 }
 0x12f   : > { %v1557_v14 = vpop.eup %1556  ;;  %v891_v22 = vadd.f32 1.0, %v1555_v13 }
 0x130   : > { %v1559_v32 = vpop.eup %1558  ;;  %1079 = vst.msk [vmem:[%s1938_s25 + $0x1b8] sm:$0xff] %vm1023_vm1, %v1557_v14  ;;  %1572 = vrcp.f32 %v892_v30 }
 0x131   : > { %v1561_v18 = vpop.eup %1560  ;;  %1078 = vst.msk [vmem:[%s1938_s25 + $0x1b0] sm:$0xff] %vm1023_vm1, %v1559_v32  ;;  %1574 = vrcp.f32 %v891_v22 }
 0x132   : > { %v1563_v33 = vpop.eup %1562  ;;  %v894_v1 = vadd.f32 1.0, %v1561_v18 }
 0x133   : > { %v893_v23 = vadd.f32 1.0, %v1563_v33 }
 0x134   : > { %1576 = vrcp.f32 %v894_v1 }
 0x135   : > { %v1565_v27 = vpop.eup %1564  ;;  %1578 = vrcp.f32 %v893_v23 }
 0x136   : > { %v1567_v21 = vpop.eup %1566  ;;  %1081 = vst.msk [vmem:[%s1938_s25 + $0x1c8] sm:$0xff] %vm1023_vm1, %v1565_v27 }
 0x137   : > { %1080 = vst.msk [vmem:[%s1938_s25 + $0x1c0] sm:$0xff] %vm1023_vm1, %v1567_v21 }
 0x139   : > { %v1569_v43 = vpop.eup %1568 }
 0x13a   : > { %v1571_v52 = vpop.eup %1570  ;;  %1083 = vst.msk [vmem:[%s1938_s25 + $0x1d8] sm:$0xff] %vm1023_vm1, %v1569_v43 }
 0x13b   : > { %1082 = vst.msk [vmem:[%s1938_s25 + $0x1d0] sm:$0xff] %vm1023_vm1, %v1571_v52 }
 0x13d   : > { %v1573_v53 = vpop.eup %1572 }
 0x13e   : > { %v1575_v54 = vpop.eup %1574  ;;  %1085 = vst.msk [vmem:[%s1938_s25 + $0x1e8] sm:$0xff] %vm1023_vm1, %v1573_v53 }
 0x13f   : > { %1084 = vst.msk [vmem:[%s1938_s25 + $0x1e0] sm:$0xff] %vm1023_vm1, %v1575_v54 }
 0x141   : > { %v1577_v58 = vpop.eup %1576 }
 0x142   : > { %v1579_v59 = vpop.eup %1578  ;;  %1087 = vst.msk [vmem:[%s1938_s25 + $0x1f8] sm:$0xff] %vm1023_vm1, %v1577_v58 }
 0x143   : > { %1086 = vst.msk [vmem:[%s1938_s25 + $0x1f0] sm:$0xff] %vm1023_vm1, %v1579_v59 }
 0x144 PF: > { %s15_s14 = sadd.s32 1, %s1587_s14  }
 0x145   : > { %p12_p4 = scmp.ge.s32.totalorder %s15_s14, 6  }
 0x147   :  { %14 = sbr.rel (!%p12_p4) target bundleno = 3 (0x3), region = 62 }

</bundles_post_ra>
